<compile_context>
chip_gen: v7x
topology: tpu7x:2x2x1
jax: 0.10.0
libtpu: 0.0.40
codegen_flags: <defaults>
</compile_context>

<pallas_src>
import functools
import math

import jax
import jax.numpy as jnp
from jax.experimental import pallas as pl
from jax.experimental.pallas import tpu as pltpu


TILE_M = 1024   # rows per grid step; ~1 MiB/operand in bf16 -> safe on v5e/v6e/v7x


# ----------------------------------------------------------------------------
# Pallas kernel: fused  sum_i(x_i @ w_i) + bias + per-column ReLU/sigmoid
# ----------------------------------------------------------------------------
def _fused_matmul_kernel(*refs, n_in, n_relu, n_sig):
    x_refs = refs[:n_in]
    w_refs = refs[n_in:2 * n_in]
    b_ref = refs[2 * n_in]
    o_ref = refs[2 * n_in + 1]

    # Split-K accumulation (used for the folded skip-concats), f32 accumulator.
    acc = jnp.dot(x_refs[0][...], w_refs[0][...],
                  preferred_element_type=jnp.float32)
    for i in range(1, n_in):
        acc = acc + jnp.dot(x_refs[i][...], w_refs[i][...],
                            preferred_element_type=jnp.float32)
    acc = acc + b_ref[...]                      # (1, Nc) broadcast, f32 epilogue

    if n_sig == 0:                              # pure feature conv
        out = jnp.maximum(acc, 0.0)
    elif n_relu == 0:                           # pure disparity head
        out = jax.nn.sigmoid(acc)
    else:                                       # fused feature + disp head
        col = jax.lax.broadcasted_iota(jnp.int32, acc.shape, dimension=1)
        out = jnp.where(col < n_relu, jnp.maximum(acc, 0.0),
                        jax.nn.sigmoid(acc))
    o_ref[...] = out.astype(o_ref.dtype)


def fused_matmul_bias_act(xs, ws, b, *, n_relu, n_sig, out_dtype):
    """xs: list of (M, K_i) bf16 patch mats; ws: list of (K_i, Nc) bf16;
    b: (Nc,) f32.  Returns (M, Nc) in out_dtype."""
    n_in = len(xs)
    M = xs[0].shape[0]
    Nc = ws[0].shape[1]
    for x, w in zip(xs, ws):
        assert x.shape[0] == M and x.shape[1] == w.shape[0] and w.shape[1] == Nc

    # Tile M (parallel grid). If M is small, the block covers the full dim
    # (legal for any size); otherwise TILE_M (multiple of 8) with a masked
    # partial last block -- no zero-padded copies in HBM.
    tm = M if M <= TILE_M else TILE_M
    grid = (pl.cdiv(M, tm),)

    in_specs = (
        [pl.BlockSpec((tm, x.shape[1]), lambda m: (m, 0)) for x in xs]   # M-tiled
        + [pl.BlockSpec(w.shape, lambda m: (0, 0)) for w in ws]          # resident
        + [pl.BlockSpec((1, Nc), lambda m: (0, 0))]                      # bias
    )
    out_specs = pl.BlockSpec((tm, Nc), lambda m: (m, 0))

    flops = 2 * M * sum(int(w.shape[0]) for w in ws) * Nc
    bytes_accessed = (sum(int(x.size) * x.dtype.itemsize for x in xs)
                      + sum(int(w.size) * w.dtype.itemsize for w in ws)
                      + Nc * 4 + M * Nc * jnp.dtype(out_dtype).itemsize)

    kernel = functools.partial(_fused_matmul_kernel, n_in=n_in,
                               n_relu=n_relu, n_sig=n_sig)
    return pl.pallas_call(
        kernel,
        out_shape=jax.ShapeDtypeStruct((M, Nc), out_dtype),
        grid=grid,
        in_specs=in_specs,
        out_specs=out_specs,
        compiler_params=pltpu.CompilerParams(
            dimension_semantics=("parallel",)),
        cost_estimate=pl.CostEstimate(flops=flops,
                                      transcendentals=M * n_sig,
                                      bytes_accessed=bytes_accessed),
    )(*xs, *ws, b.reshape(1, Nc).astype(jnp.float32))


# ----------------------------------------------------------------------------
# Patch construction (XLA glue; bf16)
# ----------------------------------------------------------------------------
def _im2col(x, kh, kw, stride, pad):
    """x: (N,H,W,C) -> (N*Ho*Wo, kh*kw*C) patch matrix (no channel padding)."""
    n, h, w, c = x.shape
    xp = jnp.pad(x, ((0, 0), (pad, pad), (pad, pad), (0, 0)))
    ho = (h + 2 * pad - kh) // stride + 1
    wo = (w + 2 * pad - kw) // stride + 1
    cols = []
    for di in range(kh):
        for dj in range(kw):
            cols.append(xp[:, di:di + stride * ho:stride,
                           dj:dj + stride * wo:stride, :])
    patches = jnp.concatenate(cols, axis=-1).reshape(n * ho * wo, kh * kw * c)
    return patches, (n, ho, wo)


def _im2col_upsample2x(x, kh=3, kw=3):
    """Patches of a 3x3/s1/p1 conv applied to nearest-neighbor upsample2x(x),
    gathered directly from x: pad(up2x(x),1)[u] == pad(x,1)[(u+1)//2], so the
    4x-larger upsampled map is never materialized in HBM."""
    n, h, w, c = x.shape
    ho, wo = 2 * h, 2 * w
    xp = jnp.pad(x, ((0, 0), (1, 1), (1, 1), (0, 0)))
    cols = []
    for di in range(kh):
        idx_h = (jnp.arange(ho) + di + 1) // 2
        xh = jnp.take(xp, idx_h, axis=1)
        for dj in range(kw):
            idx_w = (jnp.arange(wo) + dj + 1) // 2
            cols.append(jnp.take(xh, idx_w, axis=2))
    patches = jnp.concatenate(cols, axis=-1).reshape(n * ho * wo, kh * kw * c)
    return patches, (n, ho, wo)


def _wmat(w):
    """(kh,kw,Cin,Cout) -> (kh*kw*Cin, Cout) bf16 (matches patch column order)."""
    kh, kw, ci, co = w.shape
    return w.reshape(kh * kw * ci, co).astype(jnp.bfloat16)


# ----------------------------------------------------------------------------
# Conv building blocks
# ----------------------------------------------------------------------------
def conv_relu(x, w, b, *, stride):
    kh, kw, _, co = w.shape
    patches, (n, ho, wo) = _im2col(x, kh, kw, stride, pad=1)
    out = fused_matmul_bias_act([patches], [_wmat(w)], b,
                                n_relu=co, n_sig=0, out_dtype=jnp.bfloat16)
    return out.reshape(n, ho, wo, co)


def upconv_skip_relu(d, skip, w, b):
    """conv3x3(concat(upsample2x(d), skip), w) with the upsample folded into
    the patch gather and the concat replaced by split-K accumulation."""
    kh, kw, _, co = w.shape
    c1 = d.shape[-1]
    p1, (n, ho, wo) = _im2col_upsample2x(d, kh, kw)
    xs, ws = [p1], [_wmat(w[:, :, :c1, :])]
    if skip is not None:
        p2, _ = _im2col(skip, kh, kw, stride=1, pad=1)
        xs.append(p2)
        ws.append(_wmat(w[:, :, c1:, :]))
    out = fused_matmul_bias_act(xs, ws, b, n_relu=co, n_sig=0,
                                out_dtype=jnp.bfloat16)
    return out.reshape(n, ho, wo, co)


def fused_feature_disp_head(d, w_feat, b_feat, w_disp, b_disp):
    """One kernel pass producing both the next ReLU feature map and the sigmoid
    disparity head, which read the same input patches."""
    kh, kw, _, co = w_feat.shape
    nd = w_disp.shape[-1]
    patches, (n, ho, wo) = _im2col(d, kh, kw, stride=1, pad=1)
    w_cat = jnp.concatenate([_wmat(w_feat), _wmat(w_disp)], axis=1)
    b_cat = jnp.concatenate([b_feat, b_disp], axis=0)
    out = fused_matmul_bias_act([patches], [w_cat], b_cat,
                                n_relu=co, n_sig=nd, out_dtype=jnp.float32)
    out = out.reshape(n, ho, wo, co + nd)
    feat = out[..., :co].astype(jnp.bfloat16)
    disp = out[..., co:]
    return feat, disp


def disp_head(d, w, b):
    kh, kw, _, co = w.shape
    patches, (n, ho, wo) = _im2col(d, kh, kw, stride=1, pad=1)
    out = fused_matmul_bias_act([patches], [_wmat(w)], b,
                                n_relu=0, n_sig=co, out_dtype=jnp.float32)
    return out.reshape(n, ho, wo, co)


# ----------------------------------------------------------------------------
# Deterministic parameter init (shapes implied by the synthetic arch)
# ----------------------------------------------------------------------------
def _conv_init(key, kh, kw, cin, cout):
    k1, k2 = jax.random.split(key)
    scale = 1.0 / math.sqrt(kh * kw * cin)
    w = jax.random.uniform(k1, (kh, kw, cin, cout), jnp.float32, -scale, scale)
    b = jax.random.uniform(k2, (cout,), jnp.float32, -scale, scale)
    return w, b


def init_params(key, cin=3):
    names_shapes = [
        ("enc1", (3, 3, cin, 16)),
        ("enc2", (3, 3, 16, 32)),
        ("enc3", (3, 3, 32, 64)),
        ("up3a", (3, 3, 64, 32)),
        ("up3b", (3, 3, 64, 32)),   # after concat with f2 (32+32)
        ("disp2", (3, 3, 32, 1)),
        ("up2a", (3, 3, 32, 16)),
        ("up2b", (3, 3, 32, 16)),   # after concat with f1 (16+16)
        ("disp1", (3, 3, 16, 1)),
        ("up1a", (3, 3, 16, 16)),
        ("up1b", (3, 3, 16, 16)),
        ("disp0", (3, 3, 16, 1)),
    ]
    params = {}
    keys = jax.random.split(key, len(names_shapes))
    for k, (name, (kh, kw, ci, co)) in zip(keys, names_shapes):
        params[name] = _conv_init(k, kh, kw, ci, co)
    return params


# ----------------------------------------------------------------------------
# MonoDepthInference.forward
# ----------------------------------------------------------------------------
def mono_depth_inference(x_nchw, params):
    x = jnp.transpose(x_nchw, (0, 2, 3, 1)).astype(jnp.bfloat16)   # -> NHWC bf16

    # Pad raw-input channels to a multiple of 8 with zeros (exact math, tiny
    # copy of the input image only) so the first matmul's K dim is even.
    w1, b1 = params["enc1"]
    cpad = (-w1.shape[2]) % 8
    if cpad:
        x = jnp.pad(x, ((0, 0), (0, 0), (0, 0), (0, cpad)))
        w1 = jnp.pad(w1, ((0, 0), (0, 0), (0, cpad), (0, 0)))

    # ---- depth_backbone ----
    f1 = conv_relu(x, w1, b1, stride=2)                     # H/2, 16
    f2 = conv_relu(f1, *params["enc2"], stride=2)           # H/4, 32
    f3 = conv_relu(f2, *params["enc3"], stride=2)           # H/8, 64

    # ---- depth_decoder ----
    d = conv_relu(f3, *params["up3a"], stride=1)            # H/8, 32
    d = upconv_skip_relu(d, f2, *params["up3b"])            # H/4, 32 (up+concat folded)
    d, disp2 = fused_feature_disp_head(d, *params["up2a"], *params["disp2"])
    d = upconv_skip_relu(d, f1, *params["up2b"])            # H/2, 16
    d, disp1 = fused_feature_disp_head(d, *params["up1a"], *params["disp1"])
    d = upconv_skip_relu(d, None, *params["up1b"])          # H,   16
    disp0 = disp_head(d, *params["disp0"])

    to_nchw = lambda t: jnp.transpose(t, (0, 3, 1, 2))
    output_dict = {
        ("depth", 0, 0): to_nchw(disp0),   # (N, 1, H,   W)
        ("depth", 0, 1): to_nchw(disp1),   # (N, 1, H/2, W/2)
        ("depth", 0, 2): to_nchw(disp2),   # (N, 1, H/4, W/4)
    }
    return output_dict


def compute_teacher_depth(x_nchw, params, is_produce_detached=True,
                          output_dict=None):
    # Reuse a precomputed forward pass when available (avoids running the
    # network twice in the teacher path).
    if output_dict is None:
        output_dict = mono_depth_inference(x_nchw, params)
    teacher_output = {}
    for key, val in output_dict.items():
        if key[0] == "depth":
            new_key = ("teacher_depth", key[1], key[2])
            # torch.no_grad() detach -> stop_gradient
            teacher_output[new_key] = (
                jax.lax.stop_gradient(val) if is_produce_detached else val)
    return teacher_output


# ----------------------------------------------------------------------------
if __name__ == "__main__":
    key = jax.random.PRNGKey(0)
    k_x, k_p = jax.random.split(key)

    N, C, H, W = 2, 3, 16, 16
    x = jax.random.normal(k_x, (N, C, H, W), jnp.float32)
    params = init_params(k_p, cin=C)

    fwd = jax.jit(mono_depth_inference)
    out = fwd(x, params)
    jax.block_until_ready(out)

    teacher = compute_teacher_depth(x, params, output_dict=out)
    jax.block_until_ready(teacher)

    assert out[("depth", 0, 0)].shape == (N, 1, H, W)
    assert out[("depth", 0, 1)].shape == (N, 1, H // 2, W // 2)
    assert out[("depth", 0, 2)].shape == (N, 1, H // 4, W // 4)
    assert ("teacher_depth", 0, 0) in teacher
    d0 = out[("depth", 0, 0)]
    assert bool(jnp.all(jnp.isfinite(d0)))
    assert bool(jnp.all(d0 >= 0.0)) and bool(jnp.all(d0 <= 1.0))

    print("KERNEL_OK")
</pallas_src>

<mosaic_0001>
module attributes {stable_mosaic.version = 11 : i64} {
  func.func @_fused_matmul_kernel(%arg0: i32, %arg1: memref<128x72xbf16, #tpu.memory_space<vmem>>, %arg2: memref<72x16xbf16, #tpu.memory_space<vmem>>, %arg3: memref<1x16xf32, #tpu.memory_space<vmem>>, %arg4: memref<128x16xbf16, #tpu.memory_space<vmem>>) attributes {dimension_semantics = [#tpu.dimension_semantics<parallel>], iteration_bounds = array<i64: 1>, scalar_prefetch = 0 : i64, scratch_operands = 0 : i64, tpu.core_type = #tpu.core_type<tc>, window_params = [{transform_indices = @transform_0, window_bounds = array<i64: 128, 72>}, {pipeline_mode = #tpu.pipeline_mode<synchronous>, transform_indices = @transform_1, window_bounds = array<i64: 72, 16>}, {pipeline_mode = #tpu.pipeline_mode<synchronous>, transform_indices = @transform_2, window_bounds = array<i64: 1, 16>}, {transform_indices = @transform_3, window_bounds = array<i64: 128, 16>}]} {
    %c0 = arith.constant 0 : index
    %c0_0 = arith.constant 0 : index
    %0 = vector.load %arg1[%c0, %c0_0] : memref<128x72xbf16, #tpu.memory_space<vmem>>, vector<128x72xbf16>
    %c0_1 = arith.constant 0 : index
    %c0_2 = arith.constant 0 : index
    %1 = vector.load %arg2[%c0_1, %c0_2] : memref<72x16xbf16, #tpu.memory_space<vmem>>, vector<72x16xbf16>
    %cst = arith.constant dense<0.000000e+00> : vector<128x16xf32>
    %2 = tpu.matmul %0, %1, %cst {dimension_numbers = #tpu.dot_dimension_numbers<[1], [0], [0], [1], [0, 0, 1, 1], [], []>} : vector<128x72xbf16>, vector<72x16xbf16>, vector<128x16xf32> -> vector<128x16xf32>
    %c0_3 = arith.constant 0 : index
    %c0_4 = arith.constant 0 : index
    %3 = vector.load %arg3[%c0_3, %c0_4] : memref<1x16xf32, #tpu.memory_space<vmem>>, vector<1x16xf32>
    %4 = vector.broadcast %3 : vector<1x16xf32> to vector<128x16xf32>
    %5 = arith.addf %2, %4 : vector<128x16xf32>
    %cst_5 = arith.constant 0.000000e+00 : f32
    %6 = vector.broadcast %cst_5 : f32 to vector<128x16xf32>
    %7 = arith.maximumf %5, %6 : vector<128x16xf32>
    %8 = arith.truncf %7 : vector<128x16xf32> to vector<128x16xbf16>
    %c0_6 = arith.constant 0 : index
    %c0_7 = arith.constant 0 : index
    %9 = vector.load %arg4[%c0_6, %c0_7] : memref<128x16xbf16, #tpu.memory_space<vmem>>, vector<128x16xbf16>
    tpu.vector_store %arg4[%c0_6, %c0_7], %8 {strides = array<i32>} : memref<128x16xbf16, #tpu.memory_space<vmem>>, vector<128x16xbf16>,
    return
  }
  func.func @transform_0(%arg0: i32) -> (i32, i32) {
    %c0_i32 = arith.constant 0 : i32
    %c0_i32_0 = arith.constant 0 : i32
    return %arg0, %c0_i32 : i32, i32
  }
  func.func @transform_1(%arg0: i32) -> (i32, i32) {
    %c0_i32 = arith.constant 0 : i32
    %c0_i32_0 = arith.constant 0 : i32
    %c0_i32_1 = arith.constant 0 : i32
    return %c0_i32, %c0_i32_0 : i32, i32
  }
  func.func @transform_2(%arg0: i32) -> (i32, i32) {
    %c0_i32 = arith.constant 0 : i32
    %c0_i32_0 = arith.constant 0 : i32
    %c0_i32_1 = arith.constant 0 : i32
    return %c0_i32, %c0_i32_0 : i32, i32
  }
  func.func @transform_3(%arg0: i32) -> (i32, i32) {
    %c0_i32 = arith.constant 0 : i32
    %c0_i32_0 = arith.constant 0 : i32
    return %arg0, %c0_i32 : i32, i32
  }
}

module attributes {stable_mosaic.version = 11 : i64} {
  func.func @_fused_matmul_kernel(%arg0: i32, %arg1: memref<32x144xbf16, #tpu.memory_space<vmem>>, %arg2: memref<144x32xbf16, #tpu.memory_space<vmem>>, %arg3: memref<1x32xf32, #tpu.memory_space<vmem>>, %arg4: memref<32x32xbf16, #tpu.memory_space<vmem>>) attributes {dimension_semantics = [#tpu.dimension_semantics<parallel>], iteration_bounds = array<i64: 1>, scalar_prefetch = 0 : i64, scratch_operands = 0 : i64, tpu.core_type = #tpu.core_type<tc>, window_params = [{transform_indices = @transform_0, window_bounds = array<i64: 32, 144>}, {pipeline_mode = #tpu.pipeline_mode<synchronous>, transform_indices = @transform_1, window_bounds = array<i64: 144, 32>}, {pipeline_mode = #tpu.pipeline_mode<synchronous>, transform_indices = @transform_2, window_bounds = array<i64: 1, 32>}, {transform_indices = @transform_3, window_bounds = array<i64: 32, 32>}]} {
    %c0 = arith.constant 0 : index
    %c0_0 = arith.constant 0 : index
    %0 = vector.load %arg1[%c0, %c0_0] : memref<32x144xbf16, #tpu.memory_space<vmem>>, vector<32x144xbf16>
    %c0_1 = arith.constant 0 : index
    %c0_2 = arith.constant 0 : index
    %1 = vector.load %arg2[%c0_1, %c0_2] : memref<144x32xbf16, #tpu.memory_space<vmem>>, vector<144x32xbf16>
    %cst = arith.constant dense<0.000000e+00> : vector<32x32xf32>
    %2 = tpu.matmul %0, %1, %cst {dimension_numbers = #tpu.dot_dimension_numbers<[1], [0], [0], [1], [0, 0, 1, 1], [], []>} : vector<32x144xbf16>, vector<144x32xbf16>, vector<32x32xf32> -> vector<32x32xf32>
    %c0_3 = arith.constant 0 : index
    %c0_4 = arith.constant 0 : index
    %3 = vector.load %arg3[%c0_3, %c0_4] : memref<1x32xf32, #tpu.memory_space<vmem>>, vector<1x32xf32>
    %4 = vector.broadcast %3 : vector<1x32xf32> to vector<32x32xf32>
    %5 = arith.addf %2, %4 : vector<32x32xf32>
    %cst_5 = arith.constant 0.000000e+00 : f32
    %6 = vector.broadcast %cst_5 : f32 to vector<32x32xf32>
    %7 = arith.maximumf %5, %6 : vector<32x32xf32>
    %8 = arith.truncf %7 : vector<32x32xf32> to vector<32x32xbf16>
    %c0_6 = arith.constant 0 : index
    %c0_7 = arith.constant 0 : index
    %9 = vector.load %arg4[%c0_6, %c0_7] : memref<32x32xbf16, #tpu.memory_space<vmem>>, vector<32x32xbf16>
    tpu.vector_store %arg4[%c0_6, %c0_7], %8 {strides = array<i32>} : memref<32x32xbf16, #tpu.memory_space<vmem>>, vector<32x32xbf16>,
    return
  }
  func.func @transform_0(%arg0: i32) -> (i32, i32) {
    %c0_i32 = arith.constant 0 : i32
    %c0_i32_0 = arith.constant 0 : i32
    return %arg0, %c0_i32 : i32, i32
  }
  func.func @transform_1(%arg0: i32) -> (i32, i32) {
    %c0_i32 = arith.constant 0 : i32
    %c0_i32_0 = arith.constant 0 : i32
    %c0_i32_1 = arith.constant 0 : i32
    return %c0_i32, %c0_i32_0 : i32, i32
  }
  func.func @transform_2(%arg0: i32) -> (i32, i32) {
    %c0_i32 = arith.constant 0 : i32
    %c0_i32_0 = arith.constant 0 : i32
    %c0_i32_1 = arith.constant 0 : i32
    return %c0_i32, %c0_i32_0 : i32, i32
  }
  func.func @transform_3(%arg0: i32) -> (i32, i32) {
    %c0_i32 = arith.constant 0 : i32
    %c0_i32_0 = arith.constant 0 : i32
    return %arg0, %c0_i32 : i32, i32
  }
}

module attributes {stable_mosaic.version = 11 : i64} {
  func.func @_fused_matmul_kernel(%arg0: i32, %arg1: memref<8x288xbf16, #tpu.memory_space<vmem>>, %arg2: memref<288x64xbf16, #tpu.memory_space<vmem>>, %arg3: memref<1x64xf32, #tpu.memory_space<vmem>>, %arg4: memref<8x64xbf16, #tpu.memory_space<vmem>>) attributes {dimension_semantics = [#tpu.dimension_semantics<parallel>], iteration_bounds = array<i64: 1>, scalar_prefetch = 0 : i64, scratch_operands = 0 : i64, tpu.core_type = #tpu.core_type<tc>, window_params = [{transform_indices = @transform_0, window_bounds = array<i64: 8, 288>}, {pipeline_mode = #tpu.pipeline_mode<synchronous>, transform_indices = @transform_1, window_bounds = array<i64: 288, 64>}, {pipeline_mode = #tpu.pipeline_mode<synchronous>, transform_indices = @transform_2, window_bounds = array<i64: 1, 64>}, {transform_indices = @transform_3, window_bounds = array<i64: 8, 64>}]} {
    %c0 = arith.constant 0 : index
    %c0_0 = arith.constant 0 : index
    %0 = vector.load %arg1[%c0, %c0_0] : memref<8x288xbf16, #tpu.memory_space<vmem>>, vector<8x288xbf16>
    %c0_1 = arith.constant 0 : index
    %c0_2 = arith.constant 0 : index
    %1 = vector.load %arg2[%c0_1, %c0_2] : memref<288x64xbf16, #tpu.memory_space<vmem>>, vector<288x64xbf16>
    %cst = arith.constant dense<0.000000e+00> : vector<8x64xf32>
    %2 = tpu.matmul %0, %1, %cst {dimension_numbers = #tpu.dot_dimension_numbers<[1], [0], [0], [1], [0, 0, 1, 1], [], []>} : vector<8x288xbf16>, vector<288x64xbf16>, vector<8x64xf32> -> vector<8x64xf32>
    %c0_3 = arith.constant 0 : index
    %c0_4 = arith.constant 0 : index
    %3 = vector.load %arg3[%c0_3, %c0_4] : memref<1x64xf32, #tpu.memory_space<vmem>>, vector<1x64xf32>
    %4 = vector.broadcast %3 : vector<1x64xf32> to vector<8x64xf32>
    %5 = arith.addf %2, %4 : vector<8x64xf32>
    %cst_5 = arith.constant 0.000000e+00 : f32
    %6 = vector.broadcast %cst_5 : f32 to vector<8x64xf32>
    %7 = arith.maximumf %5, %6 : vector<8x64xf32>
    %8 = arith.truncf %7 : vector<8x64xf32> to vector<8x64xbf16>
    %c0_6 = arith.constant 0 : index
    %c0_7 = arith.constant 0 : index
    %9 = vector.load %arg4[%c0_6, %c0_7] : memref<8x64xbf16, #tpu.memory_space<vmem>>, vector<8x64xbf16>
    tpu.vector_store %arg4[%c0_6, %c0_7], %8 {strides = array<i32>} : memref<8x64xbf16, #tpu.memory_space<vmem>>, vector<8x64xbf16>,
    return
  }
  func.func @transform_0(%arg0: i32) -> (i32, i32) {
    %c0_i32 = arith.constant 0 : i32
    %c0_i32_0 = arith.constant 0 : i32
    return %arg0, %c0_i32 : i32, i32
  }
  func.func @transform_1(%arg0: i32) -> (i32, i32) {
    %c0_i32 = arith.constant 0 : i32
    %c0_i32_0 = arith.constant 0 : i32
    %c0_i32_1 = arith.constant 0 : i32
    return %c0_i32, %c0_i32_0 : i32, i32
  }
  func.func @transform_2(%arg0: i32) -> (i32, i32) {
    %c0_i32 = arith.constant 0 : i32
    %c0_i32_0 = arith.constant 0 : i32
    %c0_i32_1 = arith.constant 0 : i32
    return %c0_i32, %c0_i32_0 : i32, i32
  }
  func.func @transform_3(%arg0: i32) -> (i32, i32) {
    %c0_i32 = arith.constant 0 : i32
    %c0_i32_0 = arith.constant 0 : i32
    return %arg0, %c0_i32 : i32, i32
  }
}

module attributes {stable_mosaic.version = 11 : i64} {
  func.func @_fused_matmul_kernel(%arg0: i32, %arg1: memref<8x576xbf16, #tpu.memory_space<vmem>>, %arg2: memref<576x32xbf16, #tpu.memory_space<vmem>>, %arg3: memref<1x32xf32, #tpu.memory_space<vmem>>, %arg4: memref<8x32xbf16, #tpu.memory_space<vmem>>) attributes {dimension_semantics = [#tpu.dimension_semantics<parallel>], iteration_bounds = array<i64: 1>, scalar_prefetch = 0 : i64, scratch_operands = 0 : i64, tpu.core_type = #tpu.core_type<tc>, window_params = [{transform_indices = @transform_0, window_bounds = array<i64: 8, 576>}, {pipeline_mode = #tpu.pipeline_mode<synchronous>, transform_indices = @transform_1, window_bounds = array<i64: 576, 32>}, {pipeline_mode = #tpu.pipeline_mode<synchronous>, transform_indices = @transform_2, window_bounds = array<i64: 1, 32>}, {transform_indices = @transform_3, window_bounds = array<i64: 8, 32>}]} {
    %c0 = arith.constant 0 : index
    %c0_0 = arith.constant 0 : index
    %0 = vector.load %arg1[%c0, %c0_0] : memref<8x576xbf16, #tpu.memory_space<vmem>>, vector<8x576xbf16>
    %c0_1 = arith.constant 0 : index
    %c0_2 = arith.constant 0 : index
    %1 = vector.load %arg2[%c0_1, %c0_2] : memref<576x32xbf16, #tpu.memory_space<vmem>>, vector<576x32xbf16>
    %cst = arith.constant dense<0.000000e+00> : vector<8x32xf32>
    %2 = tpu.matmul %0, %1, %cst {dimension_numbers = #tpu.dot_dimension_numbers<[1], [0], [0], [1], [0, 0, 1, 1], [], []>} : vector<8x576xbf16>, vector<576x32xbf16>, vector<8x32xf32> -> vector<8x32xf32>
    %c0_3 = arith.constant 0 : index
    %c0_4 = arith.constant 0 : index
    %3 = vector.load %arg3[%c0_3, %c0_4] : memref<1x32xf32, #tpu.memory_space<vmem>>, vector<1x32xf32>
    %4 = vector.broadcast %3 : vector<1x32xf32> to vector<8x32xf32>
    %5 = arith.addf %2, %4 : vector<8x32xf32>
    %cst_5 = arith.constant 0.000000e+00 : f32
    %6 = vector.broadcast %cst_5 : f32 to vector<8x32xf32>
    %7 = arith.maximumf %5, %6 : vector<8x32xf32>
    %8 = arith.truncf %7 : vector<8x32xf32> to vector<8x32xbf16>
    %c0_6 = arith.constant 0 : index
    %c0_7 = arith.constant 0 : index
    %9 = vector.load %arg4[%c0_6, %c0_7] : memref<8x32xbf16, #tpu.memory_space<vmem>>, vector<8x32xbf16>
    tpu.vector_store %arg4[%c0_6, %c0_7], %8 {strides = array<i32>} : memref<8x32xbf16, #tpu.memory_space<vmem>>, vector<8x32xbf16>,
    return
  }
  func.func @transform_0(%arg0: i32) -> (i32, i32) {
    %c0_i32 = arith.constant 0 : i32
    %c0_i32_0 = arith.constant 0 : i32
    return %arg0, %c0_i32 : i32, i32
  }
  func.func @transform_1(%arg0: i32) -> (i32, i32) {
    %c0_i32 = arith.constant 0 : i32
    %c0_i32_0 = arith.constant 0 : i32
    %c0_i32_1 = arith.constant 0 : i32
    return %c0_i32, %c0_i32_0 : i32, i32
  }
  func.func @transform_2(%arg0: i32) -> (i32, i32) {
    %c0_i32 = arith.constant 0 : i32
    %c0_i32_0 = arith.constant 0 : i32
    %c0_i32_1 = arith.constant 0 : i32
    return %c0_i32, %c0_i32_0 : i32, i32
  }
  func.func @transform_3(%arg0: i32) -> (i32, i32) {
    %c0_i32 = arith.constant 0 : i32
    %c0_i32_0 = arith.constant 0 : i32
    return %arg0, %c0_i32 : i32, i32
  }
}

module attributes {stable_mosaic.version = 11 : i64} {
  func.func @_fused_matmul_kernel(%arg0: i32, %arg1: memref<32x288xbf16, #tpu.memory_space<vmem>>, %arg2: memref<32x288xbf16, #tpu.memory_space<vmem>>, %arg3: memref<288x32xbf16, #tpu.memory_space<vmem>>, %arg4: memref<288x32xbf16, #tpu.memory_space<vmem>>, %arg5: memref<1x32xf32, #tpu.memory_space<vmem>>, %arg6: memref<32x32xbf16, #tpu.memory_space<vmem>>) attributes {dimension_semantics = [#tpu.dimension_semantics<parallel>], iteration_bounds = array<i64: 1>, scalar_prefetch = 0 : i64, scratch_operands = 0 : i64, tpu.core_type = #tpu.core_type<tc>, window_params = [{transform_indices = @transform_0, window_bounds = array<i64: 32, 288>}, {transform_indices = @transform_1, window_bounds = array<i64: 32, 288>}, {pipeline_mode = #tpu.pipeline_mode<synchronous>, transform_indices = @transform_2, window_bounds = array<i64: 288, 32>}, {pipeline_mode = #tpu.pipeline_mode<synchronous>, transform_indices = @transform_3, window_bounds = array<i64: 288, 32>}, {pipeline_mode = #tpu.pipeline_mode<synchronous>, transform_indices = @transform_4, window_bounds = array<i64: 1, 32>}, {transform_indices = @transform_5, window_bounds = array<i64: 32, 32>}]} {
    %c0 = arith.constant 0 : index
    %c0_0 = arith.constant 0 : index
    %0 = vector.load %arg1[%c0, %c0_0] : memref<32x288xbf16, #tpu.memory_space<vmem>>, vector<32x288xbf16>
    %c0_1 = arith.constant 0 : index
    %c0_2 = arith.constant 0 : index
    %1 = vector.load %arg3[%c0_1, %c0_2] : memref<288x32xbf16, #tpu.memory_space<vmem>>, vector<288x32xbf16>
    %cst = arith.constant dense<0.000000e+00> : vector<32x32xf32>
    %2 = tpu.matmul %0, %1, %cst {dimension_numbers = #tpu.dot_dimension_numbers<[1], [0], [0], [1], [0, 0, 1, 1], [], []>} : vector<32x288xbf16>, vector<288x32xbf16>, vector<32x32xf32> -> vector<32x32xf32>
    %c0_3 = arith.constant 0 : index
    %c0_4 = arith.constant 0 : index
    %3 = vector.load %arg2[%c0_3, %c0_4] : memref<32x288xbf16, #tpu.memory_space<vmem>>, vector<32x288xbf16>
    %c0_5 = arith.constant 0 : index
    %c0_6 = arith.constant 0 : index
    %4 = vector.load %arg4[%c0_5, %c0_6] : memref<288x32xbf16, #tpu.memory_space<vmem>>, vector<288x32xbf16>
    %cst_7 = arith.constant dense<0.000000e+00> : vector<32x32xf32>
    %5 = tpu.matmul %3, %4, %cst_7 {dimension_numbers = #tpu.dot_dimension_numbers<[1], [0], [0], [1], [0, 0, 1, 1], [], []>} : vector<32x288xbf16>, vector<288x32xbf16>, vector<32x32xf32> -> vector<32x32xf32>
    %6 = arith.addf %2, %5 : vector<32x32xf32>
    %c0_8 = arith.constant 0 : index
    %c0_9 = arith.constant 0 : index
    %7 = vector.load %arg5[%c0_8, %c0_9] : memref<1x32xf32, #tpu.memory_space<vmem>>, vector<1x32xf32>
    %8 = vector.broadcast %7 : vector<1x32xf32> to vector<32x32xf32>
    %9 = arith.addf %6, %8 : vector<32x32xf32>
    %cst_10 = arith.constant 0.000000e+00 : f32
    %10 = vector.broadcast %cst_10 : f32 to vector<32x32xf32>
    %11 = arith.maximumf %9, %10 : vector<32x32xf32>
    %12 = arith.truncf %11 : vector<32x32xf32> to vector<32x32xbf16>
    %c0_11 = arith.constant 0 : index
    %c0_12 = arith.constant 0 : index
    %13 = vector.load %arg6[%c0_11, %c0_12] : memref<32x32xbf16, #tpu.memory_space<vmem>>, vector<32x32xbf16>
    tpu.vector_store %arg6[%c0_11, %c0_12], %12 {strides = array<i32>} : memref<32x32xbf16, #tpu.memory_space<vmem>>, vector<32x32xbf16>,
    return
  }
  func.func @transform_0(%arg0: i32) -> (i32, i32) {
    %c0_i32 = arith.constant 0 : i32
    %c0_i32_0 = arith.constant 0 : i32
    return %arg0, %c0_i32 : i32, i32
  }
  func.func @transform_1(%arg0: i32) -> (i32, i32) {
    %c0_i32 = arith.constant 0 : i32
    %c0_i32_0 = arith.constant 0 : i32
    return %arg0, %c0_i32 : i32, i32
  }
  func.func @transform_2(%arg0: i32) -> (i32, i32) {
    %c0_i32 = arith.constant 0 : i32
    %c0_i32_0 = arith.constant 0 : i32
    %c0_i32_1 = arith.constant 0 : i32
    return %c0_i32, %c0_i32_0 : i32, i32
  }
  func.func @transform_3(%arg0: i32) -> (i32, i32) {
    %c0_i32 = arith.constant 0 : i32
    %c0_i32_0 = arith.constant 0 : i32
    %c0_i32_1 = arith.constant 0 : i32
    return %c0_i32, %c0_i32_0 : i32, i32
  }
  func.func @transform_4(%arg0: i32) -> (i32, i32) {
    %c0_i32 = arith.constant 0 : i32
    %c0_i32_0 = arith.constant 0 : i32
    %c0_i32_1 = arith.constant 0 : i32
    return %c0_i32, %c0_i32_0 : i32, i32
  }
  func.func @transform_5(%arg0: i32) -> (i32, i32) {
    %c0_i32 = arith.constant 0 : i32
    %c0_i32_0 = arith.constant 0 : i32
    return %arg0, %c0_i32 : i32, i32
  }
}

module attributes {stable_mosaic.version = 11 : i64} {
  func.func @_fused_matmul_kernel(%arg0: i32, %arg1: memref<32x288xbf16, #tpu.memory_space<vmem>>, %arg2: memref<288x17xbf16, #tpu.memory_space<vmem>>, %arg3: memref<1x17xf32, #tpu.memory_space<vmem>>, %arg4: memref<32x17xf32, #tpu.memory_space<vmem>>) attributes {dimension_semantics = [#tpu.dimension_semantics<parallel>], iteration_bounds = array<i64: 1>, scalar_prefetch = 0 : i64, scratch_operands = 0 : i64, tpu.core_type = #tpu.core_type<tc>, window_params = [{transform_indices = @transform_0, window_bounds = array<i64: 32, 288>}, {pipeline_mode = #tpu.pipeline_mode<synchronous>, transform_indices = @transform_1, window_bounds = array<i64: 288, 17>}, {pipeline_mode = #tpu.pipeline_mode<synchronous>, transform_indices = @transform_2, window_bounds = array<i64: 1, 17>}, {transform_indices = @transform_3, window_bounds = array<i64: 32, 17>}]} {
    %c0 = arith.constant 0 : index
    %c0_0 = arith.constant 0 : index
    %0 = vector.load %arg1[%c0, %c0_0] : memref<32x288xbf16, #tpu.memory_space<vmem>>, vector<32x288xbf16>
    %c0_1 = arith.constant 0 : index
    %c0_2 = arith.constant 0 : index
    %1 = vector.load %arg2[%c0_1, %c0_2] : memref<288x17xbf16, #tpu.memory_space<vmem>>, vector<288x17xbf16>
    %cst = arith.constant dense<0.000000e+00> : vector<32x17xf32>
    %2 = tpu.matmul %0, %1, %cst {dimension_numbers = #tpu.dot_dimension_numbers<[1], [0], [0], [1], [0, 0, 1, 1], [], []>} : vector<32x288xbf16>, vector<288x17xbf16>, vector<32x17xf32> -> vector<32x17xf32>
    %c0_3 = arith.constant 0 : index
    %c0_4 = arith.constant 0 : index
    %3 = vector.load %arg3[%c0_3, %c0_4] : memref<1x17xf32, #tpu.memory_space<vmem>>, vector<1x17xf32>
    %4 = vector.broadcast %3 : vector<1x17xf32> to vector<32x17xf32>
    %5 = arith.addf %2, %4 : vector<32x17xf32>
    %6 = tpu.iota {dimensions = array<i32: 1>} : vector<32x17xi32>
    %c16_i32 = arith.constant 16 : i32
    %7 = vector.broadcast %c16_i32 : i32 to vector<32x17xi32>
    %8 = arith.cmpi slt, %6, %7 : vector<32x17xi32>
    %cst_5 = arith.constant 0.000000e+00 : f32
    %9 = vector.broadcast %cst_5 : f32 to vector<32x17xf32>
    %10 = arith.maximumf %5, %9 : vector<32x17xf32>
    %11 = arith.negf %5 : vector<32x17xf32>
    %12 = math.exp %11 : vector<32x17xf32>
    %cst_6 = arith.constant 1.000000e+00 : f32
    %13 = vector.broadcast %cst_6 : f32 to vector<32x17xf32>
    %14 = arith.addf %13, %12 : vector<32x17xf32>
    %15 = arith.divf %13, %14 : vector<32x17xf32>
    %16 = arith.select %8, %10, %15 : vector<32x17xi1>, vector<32x17xf32>
    %c0_7 = arith.constant 0 : index
    %c0_8 = arith.constant 0 : index
    %17 = vector.load %arg4[%c0_7, %c0_8] : memref<32x17xf32, #tpu.memory_space<vmem>>, vector<32x17xf32>
    tpu.vector_store %arg4[%c0_7, %c0_8], %16 {strides = array<i32>} : memref<32x17xf32, #tpu.memory_space<vmem>>, vector<32x17xf32>,
    return
  }
  func.func @transform_0(%arg0: i32) -> (i32, i32) {
    %c0_i32 = arith.constant 0 : i32
    %c0_i32_0 = arith.constant 0 : i32
    return %arg0, %c0_i32 : i32, i32
  }
  func.func @transform_1(%arg0: i32) -> (i32, i32) {
    %c0_i32 = arith.constant 0 : i32
    %c0_i32_0 = arith.constant 0 : i32
    %c0_i32_1 = arith.constant 0 : i32
    return %c0_i32, %c0_i32_0 : i32, i32
  }
  func.func @transform_2(%arg0: i32) -> (i32, i32) {
    %c0_i32 = arith.constant 0 : i32
    %c0_i32_0 = arith.constant 0 : i32
    %c0_i32_1 = arith.constant 0 : i32
    return %c0_i32, %c0_i32_0 : i32, i32
  }
  func.func @transform_3(%arg0: i32) -> (i32, i32) {
    %c0_i32 = arith.constant 0 : i32
    %c0_i32_0 = arith.constant 0 : i32
    return %arg0, %c0_i32 : i32, i32
  }
}

module attributes {stable_mosaic.version = 11 : i64} {
  func.func @_fused_matmul_kernel(%arg0: i32, %arg1: memref<128x144xbf16, #tpu.memory_space<vmem>>, %arg2: memref<128x144xbf16, #tpu.memory_space<vmem>>, %arg3: memref<144x16xbf16, #tpu.memory_space<vmem>>, %arg4: memref<144x16xbf16, #tpu.memory_space<vmem>>, %arg5: memref<1x16xf32, #tpu.memory_space<vmem>>, %arg6: memref<128x16xbf16, #tpu.memory_space<vmem>>) attributes {dimension_semantics = [#tpu.dimension_semantics<parallel>], iteration_bounds = array<i64: 1>, scalar_prefetch = 0 : i64, scratch_operands = 0 : i64, tpu.core_type = #tpu.core_type<tc>, window_params = [{transform_indices = @transform_0, window_bounds = array<i64: 128, 144>}, {transform_indices = @transform_1, window_bounds = array<i64: 128, 144>}, {pipeline_mode = #tpu.pipeline_mode<synchronous>, transform_indices = @transform_2, window_bounds = array<i64: 144, 16>}, {pipeline_mode = #tpu.pipeline_mode<synchronous>, transform_indices = @transform_3, window_bounds = array<i64: 144, 16>}, {pipeline_mode = #tpu.pipeline_mode<synchronous>, transform_indices = @transform_4, window_bounds = array<i64: 1, 16>}, {transform_indices = @transform_5, window_bounds = array<i64: 128, 16>}]} {
    %c0 = arith.constant 0 : index
    %c0_0 = arith.constant 0 : index
    %0 = vector.load %arg1[%c0, %c0_0] : memref<128x144xbf16, #tpu.memory_space<vmem>>, vector<128x144xbf16>
    %c0_1 = arith.constant 0 : index
    %c0_2 = arith.constant 0 : index
    %1 = vector.load %arg3[%c0_1, %c0_2] : memref<144x16xbf16, #tpu.memory_space<vmem>>, vector<144x16xbf16>
    %cst = arith.constant dense<0.000000e+00> : vector<128x16xf32>
    %2 = tpu.matmul %0, %1, %cst {dimension_numbers = #tpu.dot_dimension_numbers<[1], [0], [0], [1], [0, 0, 1, 1], [], []>} : vector<128x144xbf16>, vector<144x16xbf16>, vector<128x16xf32> -> vector<128x16xf32>
    %c0_3 = arith.constant 0 : index
    %c0_4 = arith.constant 0 : index
    %3 = vector.load %arg2[%c0_3, %c0_4] : memref<128x144xbf16, #tpu.memory_space<vmem>>, vector<128x144xbf16>
    %c0_5 = arith.constant 0 : index
    %c0_6 = arith.constant 0 : index
    %4 = vector.load %arg4[%c0_5, %c0_6] : memref<144x16xbf16, #tpu.memory_space<vmem>>, vector<144x16xbf16>
    %cst_7 = arith.constant dense<0.000000e+00> : vector<128x16xf32>
    %5 = tpu.matmul %3, %4, %cst_7 {dimension_numbers = #tpu.dot_dimension_numbers<[1], [0], [0], [1], [0, 0, 1, 1], [], []>} : vector<128x144xbf16>, vector<144x16xbf16>, vector<128x16xf32> -> vector<128x16xf32>
    %6 = arith.addf %2, %5 : vector<128x16xf32>
    %c0_8 = arith.constant 0 : index
    %c0_9 = arith.constant 0 : index
    %7 = vector.load %arg5[%c0_8, %c0_9] : memref<1x16xf32, #tpu.memory_space<vmem>>, vector<1x16xf32>
    %8 = vector.broadcast %7 : vector<1x16xf32> to vector<128x16xf32>
    %9 = arith.addf %6, %8 : vector<128x16xf32>
    %cst_10 = arith.constant 0.000000e+00 : f32
    %10 = vector.broadcast %cst_10 : f32 to vector<128x16xf32>
    %11 = arith.maximumf %9, %10 : vector<128x16xf32>
    %12 = arith.truncf %11 : vector<128x16xf32> to vector<128x16xbf16>
    %c0_11 = arith.constant 0 : index
    %c0_12 = arith.constant 0 : index
    %13 = vector.load %arg6[%c0_11, %c0_12] : memref<128x16xbf16, #tpu.memory_space<vmem>>, vector<128x16xbf16>
    tpu.vector_store %arg6[%c0_11, %c0_12], %12 {strides = array<i32>} : memref<128x16xbf16, #tpu.memory_space<vmem>>, vector<128x16xbf16>,
    return
  }
  func.func @transform_0(%arg0: i32) -> (i32, i32) {
    %c0_i32 = arith.constant 0 : i32
    %c0_i32_0 = arith.constant 0 : i32
    return %arg0, %c0_i32 : i32, i32
  }
  func.func @transform_1(%arg0: i32) -> (i32, i32) {
    %c0_i32 = arith.constant 0 : i32
    %c0_i32_0 = arith.constant 0 : i32
    return %arg0, %c0_i32 : i32, i32
  }
  func.func @transform_2(%arg0: i32) -> (i32, i32) {
    %c0_i32 = arith.constant 0 : i32
    %c0_i32_0 = arith.constant 0 : i32
    %c0_i32_1 = arith.constant 0 : i32
    return %c0_i32, %c0_i32_0 : i32, i32
  }
  func.func @transform_3(%arg0: i32) -> (i32, i32) {
    %c0_i32 = arith.constant 0 : i32
    %c0_i32_0 = arith.constant 0 : i32
    %c0_i32_1 = arith.constant 0 : i32
    return %c0_i32, %c0_i32_0 : i32, i32
  }
  func.func @transform_4(%arg0: i32) -> (i32, i32) {
    %c0_i32 = arith.constant 0 : i32
    %c0_i32_0 = arith.constant 0 : i32
    %c0_i32_1 = arith.constant 0 : i32
    return %c0_i32, %c0_i32_0 : i32, i32
  }
  func.func @transform_5(%arg0: i32) -> (i32, i32) {
    %c0_i32 = arith.constant 0 : i32
    %c0_i32_0 = arith.constant 0 : i32
    return %arg0, %c0_i32 : i32, i32
  }
}

module attributes {stable_mosaic.version = 11 : i64} {
  func.func @_fused_matmul_kernel(%arg0: i32, %arg1: memref<128x144xbf16, #tpu.memory_space<vmem>>, %arg2: memref<144x17xbf16, #tpu.memory_space<vmem>>, %arg3: memref<1x17xf32, #tpu.memory_space<vmem>>, %arg4: memref<128x17xf32, #tpu.memory_space<vmem>>) attributes {dimension_semantics = [#tpu.dimension_semantics<parallel>], iteration_bounds = array<i64: 1>, scalar_prefetch = 0 : i64, scratch_operands = 0 : i64, tpu.core_type = #tpu.core_type<tc>, window_params = [{transform_indices = @transform_0, window_bounds = array<i64: 128, 144>}, {pipeline_mode = #tpu.pipeline_mode<synchronous>, transform_indices = @transform_1, window_bounds = array<i64: 144, 17>}, {pipeline_mode = #tpu.pipeline_mode<synchronous>, transform_indices = @transform_2, window_bounds = array<i64: 1, 17>}, {transform_indices = @transform_3, window_bounds = array<i64: 128, 17>}]} {
    %c0 = arith.constant 0 : index
    %c0_0 = arith.constant 0 : index
    %0 = vector.load %arg1[%c0, %c0_0] : memref<128x144xbf16, #tpu.memory_space<vmem>>, vector<128x144xbf16>
    %c0_1 = arith.constant 0 : index
    %c0_2 = arith.constant 0 : index
    %1 = vector.load %arg2[%c0_1, %c0_2] : memref<144x17xbf16, #tpu.memory_space<vmem>>, vector<144x17xbf16>
    %cst = arith.constant dense<0.000000e+00> : vector<128x17xf32>
    %2 = tpu.matmul %0, %1, %cst {dimension_numbers = #tpu.dot_dimension_numbers<[1], [0], [0], [1], [0, 0, 1, 1], [], []>} : vector<128x144xbf16>, vector<144x17xbf16>, vector<128x17xf32> -> vector<128x17xf32>
    %c0_3 = arith.constant 0 : index
    %c0_4 = arith.constant 0 : index
    %3 = vector.load %arg3[%c0_3, %c0_4] : memref<1x17xf32, #tpu.memory_space<vmem>>, vector<1x17xf32>
    %4 = vector.broadcast %3 : vector<1x17xf32> to vector<128x17xf32>
    %5 = arith.addf %2, %4 : vector<128x17xf32>
    %6 = tpu.iota {dimensions = array<i32: 1>} : vector<128x17xi32>
    %c16_i32 = arith.constant 16 : i32
    %7 = vector.broadcast %c16_i32 : i32 to vector<128x17xi32>
    %8 = arith.cmpi slt, %6, %7 : vector<128x17xi32>
    %cst_5 = arith.constant 0.000000e+00 : f32
    %9 = vector.broadcast %cst_5 : f32 to vector<128x17xf32>
    %10 = arith.maximumf %5, %9 : vector<128x17xf32>
    %11 = arith.negf %5 : vector<128x17xf32>
    %12 = math.exp %11 : vector<128x17xf32>
    %cst_6 = arith.constant 1.000000e+00 : f32
    %13 = vector.broadcast %cst_6 : f32 to vector<128x17xf32>
    %14 = arith.addf %13, %12 : vector<128x17xf32>
    %15 = arith.divf %13, %14 : vector<128x17xf32>
    %16 = arith.select %8, %10, %15 : vector<128x17xi1>, vector<128x17xf32>
    %c0_7 = arith.constant 0 : index
    %c0_8 = arith.constant 0 : index
    %17 = vector.load %arg4[%c0_7, %c0_8] : memref<128x17xf32, #tpu.memory_space<vmem>>, vector<128x17xf32>
    tpu.vector_store %arg4[%c0_7, %c0_8], %16 {strides = array<i32>} : memref<128x17xf32, #tpu.memory_space<vmem>>, vector<128x17xf32>,
    return
  }
  func.func @transform_0(%arg0: i32) -> (i32, i32) {
    %c0_i32 = arith.constant 0 : i32
    %c0_i32_0 = arith.constant 0 : i32
    return %arg0, %c0_i32 : i32, i32
  }
  func.func @transform_1(%arg0: i32) -> (i32, i32) {
    %c0_i32 = arith.constant 0 : i32
    %c0_i32_0 = arith.constant 0 : i32
    %c0_i32_1 = arith.constant 0 : i32
    return %c0_i32, %c0_i32_0 : i32, i32
  }
  func.func @transform_2(%arg0: i32) -> (i32, i32) {
    %c0_i32 = arith.constant 0 : i32
    %c0_i32_0 = arith.constant 0 : i32
    %c0_i32_1 = arith.constant 0 : i32
    return %c0_i32, %c0_i32_0 : i32, i32
  }
  func.func @transform_3(%arg0: i32) -> (i32, i32) {
    %c0_i32 = arith.constant 0 : i32
    %c0_i32_0 = arith.constant 0 : i32
    return %arg0, %c0_i32 : i32, i32
  }
}

module attributes {stable_mosaic.version = 11 : i64} {
  func.func @_fused_matmul_kernel(%arg0: i32, %arg1: memref<512x144xbf16, #tpu.memory_space<vmem>>, %arg2: memref<144x16xbf16, #tpu.memory_space<vmem>>, %arg3: memref<1x16xf32, #tpu.memory_space<vmem>>, %arg4: memref<512x16xbf16, #tpu.memory_space<vmem>>) attributes {dimension_semantics = [#tpu.dimension_semantics<parallel>], iteration_bounds = array<i64: 1>, scalar_prefetch = 0 : i64, scratch_operands = 0 : i64, tpu.core_type = #tpu.core_type<tc>, window_params = [{transform_indices = @transform_0, window_bounds = array<i64: 512, 144>}, {pipeline_mode = #tpu.pipeline_mode<synchronous>, transform_indices = @transform_1, window_bounds = array<i64: 144, 16>}, {pipeline_mode = #tpu.pipeline_mode<synchronous>, transform_indices = @transform_2, window_bounds = array<i64: 1, 16>}, {transform_indices = @transform_3, window_bounds = array<i64: 512, 16>}]} {
    %c0 = arith.constant 0 : index
    %c0_0 = arith.constant 0 : index
    %0 = vector.load %arg1[%c0, %c0_0] : memref<512x144xbf16, #tpu.memory_space<vmem>>, vector<512x144xbf16>
    %c0_1 = arith.constant 0 : index
    %c0_2 = arith.constant 0 : index
    %1 = vector.load %arg2[%c0_1, %c0_2] : memref<144x16xbf16, #tpu.memory_space<vmem>>, vector<144x16xbf16>
    %cst = arith.constant dense<0.000000e+00> : vector<512x16xf32>
    %2 = tpu.matmul %0, %1, %cst {dimension_numbers = #tpu.dot_dimension_numbers<[1], [0], [0], [1], [0, 0, 1, 1], [], []>} : vector<512x144xbf16>, vector<144x16xbf16>, vector<512x16xf32> -> vector<512x16xf32>
    %c0_3 = arith.constant 0 : index
    %c0_4 = arith.constant 0 : index
    %3 = vector.load %arg3[%c0_3, %c0_4] : memref<1x16xf32, #tpu.memory_space<vmem>>, vector<1x16xf32>
    %4 = vector.broadcast %3 : vector<1x16xf32> to vector<512x16xf32>
    %5 = arith.addf %2, %4 : vector<512x16xf32>
    %cst_5 = arith.constant 0.000000e+00 : f32
    %6 = vector.broadcast %cst_5 : f32 to vector<512x16xf32>
    %7 = arith.maximumf %5, %6 : vector<512x16xf32>
    %8 = arith.truncf %7 : vector<512x16xf32> to vector<512x16xbf16>
    %c0_6 = arith.constant 0 : index
    %c0_7 = arith.constant 0 : index
    %9 = vector.load %arg4[%c0_6, %c0_7] : memref<512x16xbf16, #tpu.memory_space<vmem>>, vector<512x16xbf16>
    tpu.vector_store %arg4[%c0_6, %c0_7], %8 {strides = array<i32>} : memref<512x16xbf16, #tpu.memory_space<vmem>>, vector<512x16xbf16>,
    return
  }
  func.func @transform_0(%arg0: i32) -> (i32, i32) {
    %c0_i32 = arith.constant 0 : i32
    %c0_i32_0 = arith.constant 0 : i32
    return %arg0, %c0_i32 : i32, i32
  }
  func.func @transform_1(%arg0: i32) -> (i32, i32) {
    %c0_i32 = arith.constant 0 : i32
    %c0_i32_0 = arith.constant 0 : i32
    %c0_i32_1 = arith.constant 0 : i32
    return %c0_i32, %c0_i32_0 : i32, i32
  }
  func.func @transform_2(%arg0: i32) -> (i32, i32) {
    %c0_i32 = arith.constant 0 : i32
    %c0_i32_0 = arith.constant 0 : i32
    %c0_i32_1 = arith.constant 0 : i32
    return %c0_i32, %c0_i32_0 : i32, i32
  }
  func.func @transform_3(%arg0: i32) -> (i32, i32) {
    %c0_i32 = arith.constant 0 : i32
    %c0_i32_0 = arith.constant 0 : i32
    return %arg0, %c0_i32 : i32, i32
  }
}

module attributes {stable_mosaic.version = 11 : i64} {
  func.func @_fused_matmul_kernel(%arg0: i32, %arg1: memref<512x144xbf16, #tpu.memory_space<vmem>>, %arg2: memref<144x1xbf16, #tpu.memory_space<vmem>>, %arg3: memref<1x1xf32, #tpu.memory_space<vmem>>, %arg4: memref<512x1xf32, #tpu.memory_space<vmem>>) attributes {dimension_semantics = [#tpu.dimension_semantics<parallel>], iteration_bounds = array<i64: 1>, scalar_prefetch = 0 : i64, scratch_operands = 0 : i64, tpu.core_type = #tpu.core_type<tc>, window_params = [{transform_indices = @transform_0, window_bounds = array<i64: 512, 144>}, {pipeline_mode = #tpu.pipeline_mode<synchronous>, transform_indices = @transform_1, window_bounds = array<i64: 144, 1>}, {pipeline_mode = #tpu.pipeline_mode<synchronous>, transform_indices = @transform_2, window_bounds = array<i64: 1, 1>}, {transform_indices = @transform_3, window_bounds = array<i64: 512, 1>}]} {
    %c0 = arith.constant 0 : index
    %c0_0 = arith.constant 0 : index
    %0 = vector.load %arg1[%c0, %c0_0] : memref<512x144xbf16, #tpu.memory_space<vmem>>, vector<512x144xbf16>
    %c0_1 = arith.constant 0 : index
    %c0_2 = arith.constant 0 : index
    %1 = vector.load %arg2[%c0_1, %c0_2] : memref<144x1xbf16, #tpu.memory_space<vmem>>, vector<144x1xbf16>
    %cst = arith.constant dense<0.000000e+00> : vector<512x1xf32>
    %2 = tpu.matmul %0, %1, %cst {dimension_numbers = #tpu.dot_dimension_numbers<[1], [0], [0], [1], [0, 0, 1, 1], [], []>} : vector<512x144xbf16>, vector<144x1xbf16>, vector<512x1xf32> -> vector<512x1xf32>
    %c0_3 = arith.constant 0 : index
    %c0_4 = arith.constant 0 : index
    %3 = vector.load %arg3[%c0_3, %c0_4] : memref<1x1xf32, #tpu.memory_space<vmem>>, vector<1x1xf32>
    %4 = vector.broadcast %3 : vector<1x1xf32> to vector<512x1xf32>
    %5 = arith.addf %2, %4 : vector<512x1xf32>
    %6 = arith.negf %5 : vector<512x1xf32>
    %7 = math.exp %6 : vector<512x1xf32>
    %cst_5 = arith.constant 1.000000e+00 : f32
    %8 = vector.broadcast %cst_5 : f32 to vector<512x1xf32>
    %9 = arith.addf %8, %7 : vector<512x1xf32>
    %10 = arith.divf %8, %9 : vector<512x1xf32>
    %c0_6 = arith.constant 0 : index
    %c0_7 = arith.constant 0 : index
    %11 = vector.load %arg4[%c0_6, %c0_7] : memref<512x1xf32, #tpu.memory_space<vmem>>, vector<512x1xf32>
    tpu.vector_store %arg4[%c0_6, %c0_7], %10 {strides = array<i32>} : memref<512x1xf32, #tpu.memory_space<vmem>>, vector<512x1xf32>,
    return
  }
  func.func @transform_0(%arg0: i32) -> (i32, i32) {
    %c0_i32 = arith.constant 0 : i32
    %c0_i32_0 = arith.constant 0 : i32
    return %arg0, %c0_i32 : i32, i32
  }
  func.func @transform_1(%arg0: i32) -> (i32, i32) {
    %c0_i32 = arith.constant 0 : i32
    %c0_i32_0 = arith.constant 0 : i32
    %c0_i32_1 = arith.constant 0 : i32
    return %c0_i32, %c0_i32_0 : i32, i32
  }
  func.func @transform_2(%arg0: i32) -> (i32, i32) {
    %c0_i32 = arith.constant 0 : i32
    %c0_i32_0 = arith.constant 0 : i32
    %c0_i32_1 = arith.constant 0 : i32
    return %c0_i32, %c0_i32_0 : i32, i32
  }
  func.func @transform_3(%arg0: i32) -> (i32, i32) {
    %c0_i32 = arith.constant 0 : i32
    %c0_i32_0 = arith.constant 0 : i32
    return %arg0, %c0_i32 : i32, i32
  }
}

</mosaic_0001>

<bundles_post_ra>
// kernel: mono_depth_inference.10
= control target key start
LH: loop header
LB: loop body
LE: loop exit
PB: predicated region body
PF: predicated region fallthrough
CT: control target
= control target key end

     0   :  { %vm114_vm0 = vcmask 588800   ;;  %vm139_vm1 = vcmask 1043456   ;;  %vm320_vm2 = vcmask 125952   ;;  %s593_s1 = inlined_call_operand.vmem [shape: bf16[72,16], index: 1, kind: input, shape index: {}]   ;;  %s594_s0 = inlined_call_operand.vmem [shape: bf16[128,72], index: 0, kind: input, shape index: {}]   ;;  %s595_s2 = inlined_call_operand.vmem [shape: f32[1,16], index: 2, kind: input, shape index: {}]   ;;  %s596_s3 = inlined_call_operand.vmem [shape: bf16[128,16], index: 3, kind: output, shape index: {}]  }
   0x1   :  { %v446_v0 = vld [vmem:[%s593_s1] sm:$0xff]   ;;  %v447_v1 = vld [vmem:[%s593_s1 + $0x8] sm:$0xff]   ;;  %v448_v2 = vld [vmem:[%s593_s1 + $0x10] sm:$0xff]  }
   0x2   :  { %408 = vmatprep.subr.bf16.mxu0 %v446_v0  ;;  %434 = vmatprep.subr.bf16.mxu1 %v446_v0  ;;  %v451_v3 = vld [vmem:[%s594_s0] sm:$0xff]   ;;  %v449_v5 = vld [vmem:[%s593_s1 + $0x18] sm:$0xff]   ;;  %v453_v8 = vld [vmem:[%s594_s0 + $0x8] sm:$0xff]  }
   0x3   :  { %409 = vmatpush3.bf16.msra.mxu0 %v446_v0  ;;  %439 = vmatpush3.bf16.msra.mxu1 %v446_v0  ;;  %v452_v4 = vld [vmem:[%s594_s0 + $0x20] sm:$0xff]   ;;  %v454_v9 = vld [vmem:[%s594_s0 + $0x28] sm:$0xff]   ;;  %v455_v10 = vld [vmem:[%s594_s0 + $0x10] sm:$0xff]  }
   0x4   :  { %410 = vmatprep.subr.bf16.mxu0 %v447_v1  ;;  %435 = vmatprep.subr.bf16.mxu1 %v447_v1  ;;  %v450_v6 = vld [vmem:[%s593_s1 + $0x20] ss:$0 sps:$4 sm:$0xff]   ;;  %v456_v11 = vld [vmem:[%s594_s0 + $0x30] sm:$0xff]   ;;  %v457_v12 = vld [vmem:[%s594_s0 + $0x18] sm:$0xff]  }
   0x5   :  { %418 = vmatprep.mubr.msk.bf16.mxu0 %vm114_vm0, %v451_v3  ;;  %426 = vmatprep.mubr.msk.bf16.mxu1 %vm114_vm0, %v452_v4  ;;  %v141_v7 = vsel %vm139_vm1, %v450_v6, 0  ;;  %v458_v13 = vld [vmem:[%s594_s0 + $0x38] sm:$0xff]   ;;  %v341_v14 = vld [vmem:[%s595_s2] ss:$0 sm:$0xff] }
   0x7   :  { %411 = vmatpush3.bf16.msra.mxu0 %v447_v1  ;;  %440 = vmatpush3.bf16.msra.mxu1 %v447_v1 }
   0x8   :  { %412 = vmatprep.subr.bf16.mxu0 %v448_v2  ;;  %436 = vmatprep.subr.bf16.mxu1 %v448_v2 }
   0xb   :  { %413 = vmatpush3.bf16.msra.mxu0 %v448_v2  ;;  %441 = vmatpush3.bf16.msra.mxu1 %v448_v2 }
   0xc   :  { %414 = vmatprep.subr.bf16.mxu0 %v449_v5  ;;  %437 = vmatprep.subr.bf16.mxu1 %v449_v5 }
   0xf   :  { %415 = vmatpush3.bf16.msra.mxu0 %v449_v5  ;;  %442 = vmatpush3.bf16.msra.mxu1 %v449_v5 }
  0x10   :  { %444 = vmatprep.subr.msk.bf16.mxu0 %vm139_vm1, %v450_v6  ;;  %445 = vmatprep.subr.msk.bf16.mxu1 %vm139_vm1, %v450_v6 }
  0x13   :  { %417 = vmatpush3.bf16.msra.mxu0 %v141_v7  ;;  %443 = vmatpush3.bf16.msra.mxu1 %v141_v7 }
  0x16   :  { %419 = vmatmul.mubr.msk.bf16.vlgmr.msra.gmra.mrb[0].mxu0 %vm114_vm0, %v453_v8  ;;  %427 = vmatmul.mubr.msk.bf16.vlgmr.msra.gmra.mrb[0].mxu1 %vm114_vm0, %v454_v9 }
  0x17   :  { %422 = vmatprep.mubr.msk.bf16.mxu0 %vm114_vm0, %v455_v10  ;;  %430 = vmatprep.mubr.msk.bf16.mxu1 %vm114_vm0, %v456_v11 }
  0x1e   :  { %423 = vmatmul.mubr.msk.bf16.gmra.mrb[4].mxu0 %vm114_vm0, %v457_v12  ;;  %431 = vmatmul.mubr.msk.bf16.gmra.mrb[4].mxu1 %vm114_vm0, %v458_v13 }
  0xe9   :  { %v420_v15 = vpop.f32.mrb[0].mxu0  ;;  %v428_v16 = vpop.f32.mrb[0].mxu1 }
  0xea   :  { %v186_v17 = vadd.f32 %v420_v15, %v341_v14  ;;  %v218_v18 = vadd.f32 %v428_v16, %v341_v14  ;;  %v177_v19 = vpop.f32.mrb[1].mxu0  ;;  %v209_v20 = vpop.f32.mrb[1].mxu1 }
  0xeb   :  { %v178_v21 = vadd.f32 %v341_v14, %v177_v19  ;;  %v210_v22 = vadd.f32 %v341_v14, %v209_v20  ;;  %v421_v23 = vpop.f32.mrb[2].mxu0  ;;  %v429_v24 = vpop.f32.mrb[2].mxu1 }
  0xec   :  { %v242_v25 = vmax.f32 %v186_v17, 0.0  ;;  %v250_v26 = vmax.f32 %v218_v18, 0.0  ;;  %v189_v27 = vadd.f32 %v421_v23, %v341_v14  ;;  %v221_v28 = vadd.f32 %v429_v24, %v341_v14  ;;  %v180_v29 = vpop.f32.mrb[3].mxu0  ;;  %v212_v30 = vpop.f32.mrb[3].mxu1 }
  0xed   :  { %v240_v31 = vmax.f32 %v178_v21, 0.0  ;;  %v248_v32 = vmax.f32 %v210_v22, 0.0  ;;  %v181_v33 = vadd.f32 %v341_v14, %v180_v29  ;;  %v213_v34 = vadd.f32 %v341_v14, %v212_v30 }
  0xee   :  { %v381_v35 = vpack.c.bf16 %v242_v25, %v242_v25  ;;  %v389_v36 = vpack.c.bf16 %v250_v26, %v250_v26  ;;  %v243_v37 = vmax.f32 %v189_v27, 0.0  ;;  %v251_v38 = vmax.f32 %v221_v28, 0.0 }
  0xef   :  { %v379_v39 = vpack.c.bf16 %v240_v31, %v240_v31  ;;  %v387_v40 = vpack.c.bf16 %v248_v32, %v248_v32  ;;  %v241_v41 = vmax.f32 %v181_v33, 0.0  ;;  %v249_v42 = vmax.f32 %v213_v34, 0.0 }
  0xf0   :  { %323 = vst.msk [vmem:[%s596_s3 + $0x8] sm:$0xf] %vm320_vm2, %v381_v35  ;;  %331 = vst.msk [vmem:[%s596_s3 + $0x28] sm:$0xf] %vm320_vm2, %v389_v36  ;;  %v382_v43 = vpack.c.bf16 %v243_v37, %v243_v37  ;;  %v390_v44 = vpack.c.bf16 %v251_v38, %v251_v38 }
  0xf1   :  { %321 = vst.msk [vmem:[%s596_s3] sm:$0xf] %vm320_vm2, %v379_v39  ;;  %329 = vst.msk [vmem:[%s596_s3 + $0x20] sm:$0xf] %vm320_vm2, %v387_v40  ;;  %v380_v45 = vpack.c.bf16 %v241_v41, %v241_v41  ;;  %v388_v46 = vpack.c.bf16 %v249_v42, %v249_v42  ;;  %v424_v47 = vpop.f32.mrb[4].mxu0  ;;  %v432_v48 = vpop.f32.mrb[4].mxu1 }
  0xf2   :  { %324 = vst.msk [vmem:[%s596_s3 + $0xc] sm:$0xf] %vm320_vm2, %v382_v43  ;;  %332 = vst.msk [vmem:[%s596_s3 + $0x2c] sm:$0xf] %vm320_vm2, %v390_v44  ;;  %v202_v49 = vadd.f32 %v424_v47, %v341_v14  ;;  %v234_v50 = vadd.f32 %v432_v48, %v341_v14  ;;  %v193_v51 = vpop.f32.mrb[5].mxu0  ;;  %v225_v52 = vpop.f32.mrb[5].mxu1 }
  0xf3   :  { %322 = vst.msk [vmem:[%s596_s3 + $0x4] sm:$0xf] %vm320_vm2, %v380_v45  ;;  %330 = vst.msk [vmem:[%s596_s3 + $0x24] sm:$0xf] %vm320_vm2, %v388_v46  ;;  %v194_v53 = vadd.f32 %v341_v14, %v193_v51  ;;  %v226_v54 = vadd.f32 %v341_v14, %v225_v52  ;;  %v425_v55 = vpop.f32.mrb[6].mxu0  ;;  %v433_v56 = vpop.f32.mrb[6].mxu1 }
  0xf4   :  { %v246_v57 = vmax.f32 %v202_v49, 0.0  ;;  %v254_v58 = vmax.f32 %v234_v50, 0.0  ;;  %v205_v59 = vadd.f32 %v425_v55, %v341_v14  ;;  %v237_v60 = vadd.f32 %v433_v56, %v341_v14  ;;  %v196_v61 = vpop.f32.mrb[7].mxu0  ;;  %v228_v62 = vpop.f32.mrb[7].mxu1 }
  0xf5   :  { %v244_v63 = vmax.f32 %v194_v53, 0.0  ;;  %v252_v0 = vmax.f32 %v226_v54, 0.0  ;;  %v197_v1 = vadd.f32 %v341_v14, %v196_v61  ;;  %v229_v2 = vadd.f32 %v341_v14, %v228_v62 }
  0xf6   :  { %v385_v3 = vpack.c.bf16 %v246_v57, %v246_v57  ;;  %v393_v4 = vpack.c.bf16 %v254_v58, %v254_v58  ;;  %v247_v5 = vmax.f32 %v205_v59, 0.0  ;;  %v255_v6 = vmax.f32 %v237_v60, 0.0 }
  0xf7   :  { %v383_v7 = vpack.c.bf16 %v244_v63, %v244_v63  ;;  %v391_v8 = vpack.c.bf16 %v252_v0, %v252_v0  ;;  %v245_v9 = vmax.f32 %v197_v1, 0.0  ;;  %v253_v10 = vmax.f32 %v229_v2, 0.0 }
  0xf8   :  { %327 = vst.msk [vmem:[%s596_s3 + $0x18] sm:$0xf] %vm320_vm2, %v385_v3  ;;  %335 = vst.msk [vmem:[%s596_s3 + $0x38] sm:$0xf] %vm320_vm2, %v393_v4  ;;  %v386_v11 = vpack.c.bf16 %v247_v5, %v247_v5  ;;  %v394_v12 = vpack.c.bf16 %v255_v6, %v255_v6 }
  0xf9   :  { %325 = vst.msk [vmem:[%s596_s3 + $0x10] sm:$0xf] %vm320_vm2, %v383_v7  ;;  %333 = vst.msk [vmem:[%s596_s3 + $0x30] sm:$0xf] %vm320_vm2, %v391_v8  ;;  %v384_v13 = vpack.c.bf16 %v245_v9, %v245_v9  ;;  %v392_v14 = vpack.c.bf16 %v253_v10, %v253_v10 }
  0xfa   :  { %328 = vst.msk [vmem:[%s596_s3 + $0x1c] sm:$0xf] %vm320_vm2, %v386_v11  ;;  %336 = vst.msk [vmem:[%s596_s3 + $0x3c] sm:$0xf] %vm320_vm2, %v394_v12 }
  0xfb   :  { %326 = vst.msk [vmem:[%s596_s3 + $0x14] sm:$0xf] %vm320_vm2, %v384_v13  ;;  %334 = vst.msk [vmem:[%s596_s3 + $0x34] sm:$0xf] %vm320_vm2, %v392_v14 }

// kernel: mono_depth_inference.11
= control target key start
LH: loop header
LB: loop body
LE: loop exit
PB: predicated region body
PF: predicated region fallthrough
CT: control target
= control target key end

     0   :  { %v259_v0 = vmov 0   ;;  %vm116_vm0 = vcmask 130048   ;;  %vm192_vm1 = vcmask 257024   ;;  %s334_s1 = inlined_call_operand.vmem [shape: bf16[144,32], index: 1, kind: input, shape index: {}]   ;;  %s335_s0 = inlined_call_operand.vmem [shape: bf16[32,144], index: 0, kind: input, shape index: {}]   ;;  %s336_s2 = inlined_call_operand.vmem [shape: f32[1,32], index: 2, kind: input, shape index: {}]   ;;  %s337_s3 = inlined_call_operand.vmem [shape: bf16[32,32], index: 3, kind: output, shape index: {}]  }
   0x1   :  { %123 = vmatprep.subr.bf16.mxu0 %v259_v0  ;;  %225 = vmatprep.subr.bf16.mxu1 %v259_v0  ;;  %v244_v1 = vld [vmem:[%s334_s1] sm:$0xff]   ;;  %v245_v2 = vld [vmem:[%s334_s1 + $0x8] sm:$0xff]   ;;  %v246_v3 = vld [vmem:[%s334_s1 + $0x10] sm:$0xff]  }
   0x2   :  { %124 = vmatpush1.bf16.msra.mxu0 %v244_v1  ;;  %234 = vmatpush1.bf16.msra.mxu1 %v244_v1  ;;  %v247_v4 = vld [vmem:[%s334_s1 + $0x18] sm:$0xff]   ;;  %v255_v5 = vld [vmem:[%s335_s0 + $0x4] ss:$8 sps:$4 sm:$0xff]   ;;  %v250_v9 = vld [vmem:[%s334_s1 + $0x30] sm:$0xff]  }
   0x3   :  { %125 = vmatprep.subr.bf16.mxu0 %v259_v0  ;;  %226 = vmatprep.subr.bf16.mxu1 %v259_v0  ;;  %v258_v6 = vld [vmem:[%s335_s0 + $0x14] ss:$8 sps:$4 sm:$0xff]   ;;  %v248_v7 = vld [vmem:[%s334_s1 + $0x20] sm:$0xff]   ;;  %v249_v8 = vld [vmem:[%s334_s1 + $0x28] sm:$0xff]  }
   0x4   :  { %215 = vmatprep.mubr.msk.bf16.mxu0 %vm116_vm0, %v255_v5  ;;  %216 = vmatprep.mubr.msk.bf16.mxu1 %vm116_vm0, %v258_v6  ;;  %v251_v10 = vld [vmem:[%s334_s1 + $0x38] sm:$0xff]   ;;  %v252_v11 = vld [vmem:[%s334_s1 + $0x40] sm:$0xff]  }
   0x5   :  { %v253_v12 = vld [vmem:[%s335_s0] ss:$8 sps:$4 sm:$0xff]   ;;  %v256_v13 = vld [vmem:[%s335_s0 + $0x10] ss:$8 sps:$4 sm:$0xff]  }
   0x6   :  { %126 = vmatpush1.bf16.msra.mxu0 %v245_v2  ;;  %235 = vmatpush1.bf16.msra.mxu1 %v245_v2  ;;  %v201_v14 = vld [vmem:[%s336_s2] ss:$0 sm:$0xff] }
   0x7   :  { %127 = vmatprep.subr.bf16.mxu0 %v259_v0  ;;  %227 = vmatprep.subr.bf16.mxu1 %v259_v0 }
   0xa   :  { %128 = vmatpush1.bf16.msra.mxu0 %v246_v3  ;;  %236 = vmatpush1.bf16.msra.mxu1 %v246_v3 }
   0xb   :  { %129 = vmatprep.subr.bf16.mxu0 %v259_v0  ;;  %228 = vmatprep.subr.bf16.mxu1 %v259_v0 }
   0xe   :  { %130 = vmatpush1.bf16.msra.mxu0 %v247_v4  ;;  %237 = vmatpush1.bf16.msra.mxu1 %v247_v4 }
   0xf   :  { %131 = vmatprep.subr.bf16.mxu0 %v259_v0  ;;  %229 = vmatprep.subr.bf16.mxu1 %v259_v0 }
  0x12   :  { %132 = vmatpush1.bf16.msra.mxu0 %v248_v7  ;;  %238 = vmatpush1.bf16.msra.mxu1 %v248_v7 }
  0x13   :  { %133 = vmatprep.subr.bf16.mxu0 %v259_v0  ;;  %230 = vmatprep.subr.bf16.mxu1 %v259_v0 }
  0x16   :  { %134 = vmatpush1.bf16.msra.mxu0 %v249_v8  ;;  %239 = vmatpush1.bf16.msra.mxu1 %v249_v8 }
  0x17   :  { %135 = vmatprep.subr.bf16.mxu0 %v259_v0  ;;  %231 = vmatprep.subr.bf16.mxu1 %v259_v0 }
  0x1a   :  { %136 = vmatpush1.bf16.msra.mxu0 %v250_v9  ;;  %240 = vmatpush1.bf16.msra.mxu1 %v250_v9 }
  0x1b   :  { %137 = vmatprep.subr.bf16.mxu0 %v259_v0  ;;  %232 = vmatprep.subr.bf16.mxu1 %v259_v0 }
  0x1e   :  { %138 = vmatpush1.bf16.msra.mxu0 %v251_v10  ;;  %241 = vmatpush1.bf16.msra.mxu1 %v251_v10 }
  0x1f   :  { %139 = vmatprep.subr.bf16.mxu0 %v259_v0  ;;  %233 = vmatprep.subr.bf16.mxu1 %v259_v0 }
  0x22   :  { %140 = vmatpush1.bf16.msra.mxu0 %v252_v11  ;;  %242 = vmatpush1.bf16.msra.mxu1 %v252_v11 }
  0x25   :  { %156 = vmatmul.mubr.bf16.vlgmr.msra.gmra.mrb[0].mxu0 %v253_v12  ;;  %164 = vmatmul.mubr.bf16.vlgmr.msra.gmra.mrb[0].mxu1 %v256_v13 }
  0xf8   :  { %v157_v15 = vpop.f32.mrb[0].mxu0  ;;  %v165_v16 = vpop.f32.mrb[0].mxu1 }
  0xf9   :  { %v158_v17 = vadd.f32 %v201_v14, %v157_v15  ;;  %v166_v18 = vadd.f32 %v201_v14, %v165_v16  ;;  %v159_v19 = vpop.f32.mrb[1].mxu0  ;;  %v167_v20 = vpop.f32.mrb[1].mxu1 }
  0xfa   :  { %v160_v21 = vpop.f32.mrb[2].mxu0  ;;  %v168_v22 = vpop.f32.mrb[2].mxu1 }
  0xfb   :  { %v172_v23 = vmax.f32 %v158_v17, 0.0  ;;  %v174_v24 = vmax.f32 %v166_v18, 0.0  ;;  %v161_v25 = vadd.f32 %v201_v14, %v160_v21  ;;  %v169_v26 = vadd.f32 %v201_v14, %v168_v22  ;;  %v162_v27 = vpop.f32.mrb[3].mxu0  ;;  %v170_v28 = vpop.f32.mrb[3].mxu1 }
  0xfd   :  { %v221_v29 = vpack.c.bf16 %v172_v23, %v172_v23  ;;  %v223_v30 = vpack.c.bf16 %v174_v24, %v174_v24  ;;  %v173_v31 = vmax.f32 %v161_v25, 0.0  ;;  %v175_v32 = vmax.f32 %v169_v26, 0.0 }
  0xff   :  { %193 = vst.msk [vmem:[%s337_s3] sm:$0xf] %vm192_vm1, %v221_v29  ;;  %195 = vst.msk [vmem:[%s337_s3 + $0x8] sm:$0xf] %vm192_vm1, %v223_v30  ;;  %v222_v33 = vpack.c.bf16 %v173_v31, %v173_v31  ;;  %v224_v34 = vpack.c.bf16 %v175_v32, %v175_v32 }
 0x101   :  { %194 = vst.msk [vmem:[%s337_s3 + $0x4] sm:$0xf] %vm192_vm1, %v222_v33  ;;  %196 = vst.msk [vmem:[%s337_s3 + $0xc] sm:$0xf] %vm192_vm1, %v224_v34 }

// kernel: mono_depth_inference.12
= control target key start
LH: loop header
LB: loop body
LE: loop exit
PB: predicated region body
PF: predicated region fallthrough
CT: control target
= control target key end

     0   :  { %v349_v1 = vmov 0.0   ;;  %vm350_vm0 = vmmov 0   ;;  %vm178_vm1 = vcmask 261120   ;;  %vm264_vm2 = vcmask 519168   ;;  %s437_s1 = inlined_call_operand.vmem [shape: bf16[288,64], index: 1, kind: input, shape index: {}]   ;;  %s438_s0 = inlined_call_operand.vmem [shape: bf16[8,288], index: 0, kind: input, shape index: {}]   ;;  %s439_s2 = inlined_call_operand.vmem [shape: f32[1,64], index: 2, kind: input, shape index: {}]   ;;  %s440_s3 = inlined_call_operand.vmem [shape: bf16[8,64], index: 3, kind: output, shape index: {}]  }
   0x1   :  { %v328_v0 = vld [vmem:[%s437_s1 + $0x40] sm:$0xff]   ;;  %318 = vmatprep.subr.bf16.mxu1 %v349_v1  ;;  %322 = vmatprep.mubr.msk.bf16.mxu1 %vm350_vm0, %v349_v1  ;;  %v330_v3 = vld [vmem:[%s437_s1 + $0x48] sm:$0xff]   ;;  %v332_v5 = vld [vmem:[%s437_s1 + $0x50] sm:$0xff]  }
   0x2   :  { %v329_v2 = vld [vmem:[%s437_s1] sm:$0xff]   ;;  %293 = vmatprep.subr.bf16.mxu0 %v328_v0  ;;  %v331_v4 = vld [vmem:[%s437_s1 + $0x8] sm:$0xff]   ;;  %v333_v6 = vld [vmem:[%s437_s1 + $0x10] sm:$0xff]  }
   0x3   :  { %294 = vmatpush3.bf16.msra.mxu0 %v329_v2  ;;  %v334_v7 = vld [vmem:[%s437_s1 + $0x58] sm:$0xff]   ;;  %v336_v9 = vld [vmem:[%s437_s1 + $0x60] sm:$0xff]   ;;  %v338_v12 = vld [vmem:[%s437_s1 + $0x68] sm:$0xff]  }
   0x4   :  { %295 = vmatprep.subr.bf16.mxu0 %v330_v3  ;;  %v335_v8 = vld [vmem:[%s437_s1 + $0x18] sm:$0xff]   ;;  %v342_v10 = vld [vmem:[%s437_s1 + $0x80] sm:$0xff]   ;;  %v348_v15 = vld [vmem:[%s437_s1 + $0x88] sm:$0xff]  }
   0x5   :  { %v337_v11 = vld [vmem:[%s437_s1 + $0x20] sm:$0xff]   ;;  %319 = vmatpush3.bf16.msra.mxu1 %v342_v10  ;;  %v339_v16 = vld [vmem:[%s437_s1 + $0x28] sm:$0xff]   ;;  %v340_v17 = vld [vmem:[%s437_s1 + $0x70] sm:$0xff]  }
   0x6   :  { %320 = vmatprep.subr.bf16.mxu1 %v349_v1  ;;  %v15_v13 = vld [vmem:[%s438_s0] sm:$0xff]  ;;  %v347_v18 = vld [vmem:[%s438_s0 + $0x8] ss:$0 sps:$4 sm:$0xff]   ;;  %v341_v19 = vld [vmem:[%s437_s1 + $0x30] sm:$0xff]  }
   0x7   :  { %296 = vmatpush3.bf16.msra.mxu0 %v331_v4  ;;  %v272_v14 = vcombine.high %v15_v13, %v15_v13  ;;  %v343_v20 = vld [vmem:[%s437_s1 + $0x78] sm:$0xff]   ;;  %v271_v22 = vcombine.low %v15_v13, %v15_v13  ;;  %v270_v29 = vld [vmem:[%s439_s2] ss:$0 sm:$0xff] }
   0x8   :  { %297 = vmatprep.subr.bf16.mxu0 %v332_v5  ;;  %v344_v21 = vld [vmem:[%s437_s1 + $0x38] sm:$0xff]  }
   0x9   :  { %214 = vmatprep.mubr.bf16.mxu0 %v272_v14  ;;  %321 = vmatpush3.bf16.msra.mxu1 %v348_v15 }
   0xb   :  { %298 = vmatpush3.bf16.msra.mxu0 %v333_v6 }
   0xc   :  { %299 = vmatprep.subr.bf16.mxu0 %v334_v7  ;;  %323 = vmatmul.mubr.msk.bf16.vlgmr.msra.gmra.mrb[0].mxu1 %vm178_vm1, %v347_v18 }
   0xf   :  { %300 = vmatpush3.bf16.msra.mxu0 %v335_v8 }
  0x10   :  { %301 = vmatprep.subr.bf16.mxu0 %v336_v9 }
  0x13   :  { %302 = vmatpush3.bf16.msra.mxu0 %v337_v11 }
  0x14   :  { %303 = vmatprep.subr.bf16.mxu0 %v338_v12 }
  0x17   :  { %304 = vmatpush3.bf16.msra.mxu0 %v339_v16 }
  0x18   :  { %305 = vmatprep.subr.bf16.mxu0 %v340_v17 }
  0x1b   :  { %306 = vmatpush3.bf16.msra.mxu0 %v341_v19 }
  0x1c   :  { %307 = vmatprep.subr.bf16.mxu0 %v343_v20 }
  0x1f   :  { %308 = vmatpush3.bf16.msra.mxu0 %v344_v21 }
  0x22   :  { %215 = vmatmul.mubr.bf16.vlgmr.msra.gmra.mrb[0].mxu0 %v271_v22 }
  0xdf   :  { %v256_v23 = vpop.f32.mrb[0].mxu1 }
  0xe0   :  { %v324_v24 = vpop.f32.mrb[1].mxu1 }
  0xe1   :  { %v259_v25 = vpop.f32.mrb[2].mxu1 }
  0xe2   :  { %v325_v26 = vpop.f32.mrb[3].mxu1 }
  0xf5   :  { %v309_v27 = vpop.f32.mrb[0].mxu0 }
  0xf6   :  { %v310_v28 = vpop.f32.mrb[1].mxu0 }
  0xf7   :  { %v311_v30 = vadd.f32 %v310_v28, %v309_v27  ;;  %v312_v31 = vpop.f32.mrb[2].mxu0 }
  0xf8   :  { %v313_v32 = vpop.f32.mrb[3].mxu0 }
  0xf9   :  { %v217_v33 = vadd.f32 %v311_v30, %v270_v29 }
  0xfb   :  { %v257_v34 = vadd.f32 %v256_v23, %v217_v33 }
  0xfd   :  { %v262_v35 = vmax.f32 %v257_v34, 0.0 }
  0xff   :  { %v263_v36 = vpack.c.bf16 %v262_v35, %v262_v35 }
 0x101   :  { %265 = vst.msk [vmem:[%s440_s3] sm:$0xf] %vm264_vm2, %v263_v36 }

// kernel: mono_depth_inference.13
= control target key start
LH: loop header
LB: loop body
LE: loop exit
PB: predicated region body
PF: predicated region fallthrough
CT: control target
= control target key end

     0   :  { %v609_v35 = vmov 0.0   ;;  %vm610_vm0 = vmmov 0   ;;  %vm330_vm1 = vcmask 523264   ;;  %vm456_vm2 = vcmask 257024   ;;  %s754_s1 = inlined_call_operand.vmem [shape: bf16[576,32], index: 1, kind: input, shape index: {}]   ;;  %s755_s0 = inlined_call_operand.vmem [shape: bf16[8,576], index: 0, kind: input, shape index: {}]   ;;  %s756_s2 = inlined_call_operand.vmem [shape: f32[1,32], index: 2, kind: input, shape index: {}]   ;;  %s757_s3 = inlined_call_operand.vmem [shape: bf16[8,32], index: 3, kind: output, shape index: {}]  }
   0x1   :  { %v568_v0 = vld [vmem:[%s754_s1 + $0x40] sm:$0xff]   ;;  %v572_v4 = vld [vmem:[%s754_s1 + $0x48] sm:$0xff]   ;;  %v576_v8 = vld [vmem:[%s754_s1 + $0x50] sm:$0xff]  }
   0x2   :  { %v569_v1 = vld [vmem:[%s754_s1] sm:$0xff]   ;;  %505 = vmatprep.subr.bf16.mxu0 %v568_v0  ;;  %v573_v5 = vld [vmem:[%s754_s1 + $0x8] sm:$0xff]   ;;  %v577_v9 = vld [vmem:[%s754_s1 + $0x10] sm:$0xff]  }
   0x3   :  { %v570_v2 = vld [vmem:[%s754_s1 + $0xc0] sm:$0xff]   ;;  %506 = vmatpush3.bf16.msra.mxu0 %v569_v1  ;;  %v574_v6 = vld [vmem:[%s754_s1 + $0xc8] sm:$0xff]   ;;  %v578_v10 = vld [vmem:[%s754_s1 + $0xd0] sm:$0xff]  }
   0x4   :  { %v571_v3 = vld [vmem:[%s754_s1 + $0x80] sm:$0xff]   ;;  %527 = vmatprep.subr.bf16.mxu1 %v570_v2  ;;  %507 = vmatprep.subr.bf16.mxu0 %v572_v4  ;;  %v575_v7 = vld [vmem:[%s754_s1 + $0x88] sm:$0xff]   ;;  %v579_v11 = vld [vmem:[%s754_s1 + $0x90] sm:$0xff]  }
   0x5   :  { %528 = vmatpush3.bf16.msra.mxu1 %v571_v3  ;;  %v580_v12 = vld [vmem:[%s754_s1 + $0x58] sm:$0xff]   ;;  %v584_v16 = vld [vmem:[%s754_s1 + $0x60] sm:$0xff]   ;;  %v588_v20 = vld [vmem:[%s754_s1 + $0x68] sm:$0xff]  }
   0x6   :  { %529 = vmatprep.subr.bf16.mxu1 %v574_v6  ;;  %v581_v13 = vld [vmem:[%s754_s1 + $0x18] sm:$0xff]   ;;  %v585_v17 = vld [vmem:[%s754_s1 + $0x20] sm:$0xff]   ;;  %v589_v21 = vld [vmem:[%s754_s1 + $0x28] sm:$0xff]  }
   0x7   :  { %508 = vmatpush3.bf16.msra.mxu0 %v573_v5  ;;  %v582_v14 = vld [vmem:[%s754_s1 + $0xd8] sm:$0xff]   ;;  %v586_v18 = vld [vmem:[%s754_s1 + $0xe0] sm:$0xff]   ;;  %v590_v22 = vld [vmem:[%s754_s1 + $0xe8] sm:$0xff]  }
   0x8   :  { %509 = vmatprep.subr.bf16.mxu0 %v576_v8  ;;  %v583_v15 = vld [vmem:[%s754_s1 + $0x98] sm:$0xff]   ;;  %v587_v19 = vld [vmem:[%s754_s1 + $0xa0] sm:$0xff]   ;;  %v591_v23 = vld [vmem:[%s754_s1 + $0xa8] sm:$0xff]  }
   0x9   :  { %530 = vmatpush3.bf16.msra.mxu1 %v575_v7  ;;  %v592_v24 = vld [vmem:[%s754_s1 + $0x70] sm:$0xff]   ;;  %v596_v28 = vld [vmem:[%s754_s1 + $0x78] sm:$0xff]   ;;  %v15_v31 = vld [vmem:[%s755_s0] sm:$0xff] }
   0xa   :  { %531 = vmatprep.subr.bf16.mxu1 %v578_v10  ;;  %v593_v25 = vld [vmem:[%s754_s1 + $0x30] sm:$0xff]   ;;  %v597_v29 = vld [vmem:[%s754_s1 + $0x38] sm:$0xff]   ;;  %v463_v32 = vcombine.low %v15_v31, %v15_v31  ;;  %v464_v33 = vcombine.high %v15_v31, %v15_v31  ;;  %v16_v36 = vld [vmem:[%s755_s0 + $0x8] sm:$0xff] }
   0xb   :  { %510 = vmatpush3.bf16.msra.mxu0 %v577_v9  ;;  %v594_v26 = vld [vmem:[%s754_s1 + $0xf0] sm:$0xff]   ;;  %v598_v30 = vld [vmem:[%s754_s1 + $0xf8] sm:$0xff]   ;;  %v465_v37 = vcombine.low %v16_v36, %v16_v36  ;;  %v466_v38 = vcombine.high %v16_v36, %v16_v36  ;;  %v605_v39 = vld [vmem:[%s754_s1 + $0x100] sm:$0xff]  }
   0xc   :  { %511 = vmatprep.subr.bf16.mxu0 %v580_v12  ;;  %v595_v27 = vld [vmem:[%s754_s1 + $0xb0] sm:$0xff]   ;;  %v602_v34 = vld [vmem:[%s754_s1 + $0xb8] sm:$0xff]   ;;  %366 = vmatprep.mubr.bf16.mxu0 %v464_v33  ;;  %v606_v40 = vld [vmem:[%s754_s1 + $0x108] sm:$0xff]  }
   0xd   :  { %532 = vmatpush3.bf16.msra.mxu1 %v579_v11  ;;  %406 = vmatprep.mubr.bf16.mxu1 %v466_v38  ;;  %v607_v41 = vld [vmem:[%s754_s1 + $0x110] sm:$0xff]   ;;  %v608_v42 = vld [vmem:[%s754_s1 + $0x118] sm:$0xff]   ;;  %v462_v45 = vld [vmem:[%s756_s2] ss:$0 sm:$0xff] }
   0xe   :  { %533 = vmatprep.subr.bf16.mxu1 %v582_v14  ;;  %v601_v43 = vld [vmem:[%s755_s0 + $0x10] ss:$0 sps:$4 sm:$0xff]  }
   0xf   :  { %512 = vmatpush3.bf16.msra.mxu0 %v581_v13 }
  0x10   :  { %513 = vmatprep.subr.bf16.mxu0 %v584_v16 }
  0x11   :  { %534 = vmatpush3.bf16.msra.mxu1 %v583_v15 }
  0x12   :  { %535 = vmatprep.subr.bf16.mxu1 %v586_v18 }
  0x13   :  { %514 = vmatpush3.bf16.msra.mxu0 %v585_v17 }
  0x14   :  { %515 = vmatprep.subr.bf16.mxu0 %v588_v20 }
  0x15   :  { %536 = vmatpush3.bf16.msra.mxu1 %v587_v19 }
  0x16   :  { %537 = vmatprep.subr.bf16.mxu1 %v590_v22 }
  0x17   :  { %516 = vmatpush3.bf16.msra.mxu0 %v589_v21 }
  0x18   :  { %517 = vmatprep.subr.bf16.mxu0 %v592_v24 }
  0x19   :  { %538 = vmatpush3.bf16.msra.mxu1 %v591_v23 }
  0x1a   :  { %539 = vmatprep.subr.bf16.mxu1 %v594_v26 }
  0x1b   :  { %518 = vmatpush3.bf16.msra.mxu0 %v593_v25 }
  0x1c   :  { %519 = vmatprep.subr.bf16.mxu0 %v596_v28 }
  0x1d   :  { %540 = vmatpush3.bf16.msra.mxu1 %v595_v27 }
  0x1e   :  { %541 = vmatprep.subr.bf16.mxu1 %v598_v30 }
  0x1f   :  { %520 = vmatpush3.bf16.msra.mxu0 %v597_v29 }
  0x20   :  { %554 = vmatprep.subr.bf16.mxu0 %v609_v35 }
  0x21   :  { %542 = vmatpush3.bf16.msra.mxu1 %v602_v34 }
  0x22   :  { %367 = vmatmul.mubr.bf16.vlgmr.msra.gmra.mrb[0].mxu0 %v463_v32 }
  0x23   :  { %555 = vmatpush3.bf16.msra.mxu0 %v605_v39  ;;  %562 = vmatprep.mubr.msk.bf16.mxu0 %vm610_vm0, %v609_v35 }
  0x24   :  { %407 = vmatmul.mubr.bf16.vlgmr.msra.gmra.mrb[0].mxu1 %v465_v37  ;;  %556 = vmatprep.subr.bf16.mxu0 %v609_v35 }
  0x27   :  { %557 = vmatpush3.bf16.msra.mxu0 %v606_v40 }
  0x28   :  { %558 = vmatprep.subr.bf16.mxu0 %v609_v35 }
  0x2b   :  { %559 = vmatpush3.bf16.msra.mxu0 %v607_v41 }
  0x2c   :  { %560 = vmatprep.subr.bf16.mxu0 %v609_v35 }
  0x2f   :  { %561 = vmatpush3.bf16.msra.mxu0 %v608_v42 }
  0x32   :  { %563 = vmatmul.mubr.msk.bf16.vlgmr.msra.gmra.mrb[4].mxu0 %vm330_vm1, %v601_v43 }
  0xf5   :  { %v521_v44 = vpop.f32.mrb[0].mxu0 }
  0xf6   :  { %v522_v46 = vpop.f32.mrb[1].mxu0 }
  0xf7   :  { %v523_v47 = vadd.f32 %v522_v46, %v521_v44  ;;  %v524_v48 = vpop.f32.mrb[2].mxu0  ;;  %v543_v49 = vpop.f32.mrb[0].mxu1 }
  0xf8   :  { %v525_v50 = vpop.f32.mrb[3].mxu0  ;;  %v544_v51 = vpop.f32.mrb[1].mxu1 }
  0xf9   :  { %v369_v52 = vadd.f32 %v523_v47, %v462_v45  ;;  %v545_v53 = vadd.f32 %v544_v51, %v543_v49  ;;  %v546_v54 = vpop.f32.mrb[2].mxu1 }
  0xfa   :  { %v547_v55 = vpop.f32.mrb[3].mxu1 }
  0xfb   :  { %v409_v56 = vadd.f32 %v545_v53, %v369_v52 }
 0x105   :  { %v448_v57 = vpop.f32.mrb[4].mxu0 }
 0x106   :  { %v449_v58 = vadd.f32 %v448_v57, %v409_v56  ;;  %v564_v59 = vpop.f32.mrb[5].mxu0 }
 0x107   :  { %v451_v60 = vpop.f32.mrb[6].mxu0 }
 0x108   :  { %v454_v61 = vmax.f32 %v449_v58, 0.0  ;;  %v565_v62 = vpop.f32.mrb[7].mxu0 }
 0x10a   :  { %v455_v63 = vpack.c.bf16 %v454_v61, %v454_v61 }
 0x10c   :  { %457 = vst.msk [vmem:[%s757_s3] sm:$0xf] %vm456_vm2, %v455_v63 }

// kernel: mono_depth_inference.14
= control target key start
LH: loop header
LB: loop body
LE: loop exit
PB: predicated region body
PF: predicated region fallthrough
CT: control target
= control target key end

     0   :  { %vm247_vm0 = vcmask 261120   ;;  %vm625_vm1 = vcmask 257024   ;;  %s1028_s3 = inlined_call_operand.vmem [shape: bf16[288,32], index: 3, kind: input, shape index: {}]   ;;  %s1029_s2 = inlined_call_operand.vmem [shape: bf16[288,32], index: 2, kind: input, shape index: {}]   ;;  %s1030_s1 = inlined_call_operand.vmem [shape: bf16[32,288], index: 1, kind: input, shape index: {}]   ;;  %s1031_s0 = inlined_call_operand.vmem [shape: bf16[32,288], index: 0, kind: input, shape index: {}]   ;;  %s1032_s4 = inlined_call_operand.vmem [shape: f32[1,32], index: 4, kind: input, shape index: {}]   ;;  %s1033_s5 = inlined_call_operand.vmem [shape: bf16[32,32], index: 5, kind: output, shape index: {}]  }
   0x1   :  { %v787_v0 = vld [vmem:[%s1028_s3 + $0x40] sm:$0xff]   ;;  %v791_v4 = vld [vmem:[%s1028_s3 + $0x48] sm:$0xff]   ;;  %v795_v8 = vld [vmem:[%s1028_s3 + $0x50] sm:$0xff]  }
   0x2   :  { %v788_v1 = vld [vmem:[%s1028_s3] sm:$0xff]   ;;  %695 = vmatprep.subr.bf16.mxu0 %v787_v0  ;;  %v792_v5 = vld [vmem:[%s1028_s3 + $0x8] sm:$0xff]   ;;  %v796_v9 = vld [vmem:[%s1028_s3 + $0x10] sm:$0xff]  }
   0x3   :  { %v789_v2 = vld [vmem:[%s1029_s2 + $0x40] sm:$0xff]   ;;  %696 = vmatpush3.bf16.msra.mxu0 %v788_v1  ;;  %v793_v6 = vld [vmem:[%s1029_s2 + $0x48] sm:$0xff]   ;;  %v797_v10 = vld [vmem:[%s1029_s2 + $0x50] sm:$0xff]  }
   0x4   :  { %v790_v3 = vld [vmem:[%s1029_s2] sm:$0xff]   ;;  %727 = vmatprep.subr.bf16.mxu1 %v789_v2  ;;  %697 = vmatprep.subr.bf16.mxu0 %v791_v4  ;;  %v794_v7 = vld [vmem:[%s1029_s2 + $0x8] sm:$0xff]   ;;  %v798_v11 = vld [vmem:[%s1029_s2 + $0x10] sm:$0xff]  }
   0x5   :  { %728 = vmatpush3.bf16.msra.mxu1 %v790_v3  ;;  %v799_v12 = vld [vmem:[%s1028_s3 + $0x58] sm:$0xff]   ;;  %v803_v16 = vld [vmem:[%s1028_s3 + $0x60] sm:$0xff]   ;;  %v807_v20 = vld [vmem:[%s1028_s3 + $0x68] sm:$0xff]  }
   0x6   :  { %729 = vmatprep.subr.bf16.mxu1 %v793_v6  ;;  %v800_v13 = vld [vmem:[%s1028_s3 + $0x18] sm:$0xff]   ;;  %v804_v17 = vld [vmem:[%s1028_s3 + $0x20] sm:$0xff]   ;;  %v808_v21 = vld [vmem:[%s1028_s3 + $0x28] sm:$0xff]  }
   0x7   :  { %698 = vmatpush3.bf16.msra.mxu0 %v792_v5  ;;  %v801_v14 = vld [vmem:[%s1029_s2 + $0x58] sm:$0xff]   ;;  %v805_v18 = vld [vmem:[%s1029_s2 + $0x60] sm:$0xff]   ;;  %v809_v22 = vld [vmem:[%s1029_s2 + $0x68] sm:$0xff]  }
   0x8   :  { %699 = vmatprep.subr.bf16.mxu0 %v795_v8  ;;  %v802_v15 = vld [vmem:[%s1029_s2 + $0x18] sm:$0xff]   ;;  %v806_v19 = vld [vmem:[%s1029_s2 + $0x20] sm:$0xff]   ;;  %v810_v23 = vld [vmem:[%s1029_s2 + $0x28] sm:$0xff]  }
   0x9   :  { %730 = vmatpush3.bf16.msra.mxu1 %v794_v7  ;;  %v811_v24 = vld [vmem:[%s1028_s3 + $0x70] sm:$0xff]   ;;  %v815_v28 = vld [vmem:[%s1028_s3 + $0x78] sm:$0xff]   ;;  %v818_v31 = vld [vmem:[%s1030_s1] ss:$12 sps:$4 sm:$0xff]  }
   0xa   :  { %731 = vmatprep.subr.bf16.mxu1 %v797_v10  ;;  %v812_v25 = vld [vmem:[%s1028_s3 + $0x30] sm:$0xff]   ;;  %v816_v29 = vld [vmem:[%s1028_s3 + $0x38] sm:$0xff]   ;;  %v822_v34 = vld [vmem:[%s1028_s3 + $0x80] sm:$0xff]  }
   0xb   :  { %700 = vmatpush3.bf16.msra.mxu0 %v796_v9  ;;  %v813_v26 = vld [vmem:[%s1029_s2 + $0x70] sm:$0xff]   ;;  %v817_v30 = vld [vmem:[%s1029_s2 + $0x78] sm:$0xff]   ;;  %v823_v35 = vld [vmem:[%s1031_s0] ss:$12 sps:$4 sm:$0xff]  }
   0xc   :  { %701 = vmatprep.subr.bf16.mxu0 %v799_v12  ;;  %v814_v27 = vld [vmem:[%s1029_s2 + $0x30] sm:$0xff]   ;;  %v821_v33 = vld [vmem:[%s1029_s2 + $0x38] sm:$0xff]   ;;  %v826_v37 = vld [vmem:[%s1029_s2 + $0x80] sm:$0xff]  }
   0xd   :  { %732 = vmatpush3.bf16.msra.mxu1 %v798_v11  ;;  %v820_v32 = vld [vmem:[%s1030_s1 + $0x4] ss:$12 sps:$4 sm:$0xff]   ;;  %v827_v38 = vld [vmem:[%s1030_s1 + $0x1c] ss:$12 sps:$4 sm:$0xff]   ;;  %v836_v46 = vld [vmem:[%s1030_s1 + $0x20] ss:$12 sps:$4 sm:$0xff]  }
   0xe   :  { %733 = vmatprep.subr.bf16.mxu1 %v801_v14  ;;  %286 = vmatprep.mubr.bf16.mxu0 %v820_v32  ;;  %v825_v36 = vld [vmem:[%s1031_s0 + $0x4] ss:$12 sps:$4 sm:$0xff]   ;;  %v830_v40 = vld [vmem:[%s1028_s3 + $0x88] sm:$0xff]  }
   0xf   :  { %702 = vmatpush3.bf16.msra.mxu0 %v800_v13  ;;  %528 = vmatprep.mubr.bf16.mxu1 %v825_v36  ;;  %v829_v39 = vld [vmem:[%s1030_s1 + $0x18] ss:$12 sps:$4 sm:$0xff]   ;;  %v831_v41 = vld [vmem:[%s1031_s0 + $0x1c] ss:$12 sps:$4 sm:$0xff]   ;;  %v838_v47 = vld [vmem:[%s1031_s0 + $0x20] ss:$12 sps:$4 sm:$0xff]  }
  0x10   :  { %703 = vmatprep.subr.bf16.mxu0 %v803_v16  ;;  %v833_v42 = vld [vmem:[%s1031_s0 + $0x18] ss:$12 sps:$4 sm:$0xff]   ;;  %v834_v43 = vld [vmem:[%s1029_s2 + $0x88] sm:$0xff]  }
  0x11   :  { %734 = vmatpush3.bf16.msra.mxu1 %v802_v15  ;;  %v835_v44 = vld [vmem:[%s1030_s1 + $0x8] ss:$12 sps:$4 sm:$0xff]  }
  0x12   :  { %735 = vmatprep.subr.bf16.mxu1 %v805_v18  ;;  %v837_v45 = vld [vmem:[%s1031_s0 + $0x8] ss:$12 sps:$4 sm:$0xff]  }
  0x13   :  { %704 = vmatpush3.bf16.msra.mxu0 %v804_v17  ;;  %v686_v17 = vld [vmem:[%s1032_s4] ss:$0 sm:$0xff] }
  0x14   :  { %705 = vmatprep.subr.bf16.mxu0 %v807_v20 }
  0x15   :  { %736 = vmatpush3.bf16.msra.mxu1 %v806_v19 }
  0x16   :  { %737 = vmatprep.subr.bf16.mxu1 %v809_v22 }
  0x17   :  { %706 = vmatpush3.bf16.msra.mxu0 %v808_v21 }
  0x18   :  { %707 = vmatprep.subr.bf16.mxu0 %v811_v24 }
  0x19   :  { %738 = vmatpush3.bf16.msra.mxu1 %v810_v23 }
  0x1a   :  { %739 = vmatprep.subr.bf16.mxu1 %v813_v26 }
  0x1b   :  { %708 = vmatpush3.bf16.msra.mxu0 %v812_v25 }
  0x1c   :  { %709 = vmatprep.subr.bf16.mxu0 %v815_v28 }
  0x1d   :  { %740 = vmatpush3.bf16.msra.mxu1 %v814_v27 }
  0x1e   :  { %741 = vmatprep.subr.bf16.mxu1 %v817_v30 }
  0x1f   :  { %710 = vmatpush3.bf16.msra.mxu0 %v816_v29 }
  0x20   :  { %759 = vmatprep.subr.bf16.mxu0 %v822_v34 }
  0x21   :  { %742 = vmatpush3.bf16.msra.mxu1 %v821_v33 }
  0x22   :  { %287 = vmatmul.mubr.bf16.vlgmr.msra.gmra.mrb[0].mxu0 %v818_v31  ;;  %767 = vmatprep.subr.bf16.mxu1 %v826_v37 }
  0x23   :  { %760 = vmatpush3.bf16.msra.mxu0 %v822_v34  ;;  %294 = vmatprep.mubr.bf16.mxu0 %v827_v38 }
  0x24   :  { %529 = vmatmul.mubr.bf16.vlgmr.msra.gmra.mrb[0].mxu1 %v823_v35  ;;  %761 = vmatprep.subr.bf16.mxu0 %v830_v40 }
  0x25   :  { %768 = vmatpush3.bf16.msra.mxu1 %v826_v37  ;;  %536 = vmatprep.mubr.bf16.mxu1 %v831_v41 }
  0x26   :  { %769 = vmatprep.subr.bf16.mxu1 %v834_v43 }
  0x27   :  { %762 = vmatpush3.bf16.msra.mxu0 %v830_v40 }
  0x29   :  { %770 = vmatpush3.bf16.msra.mxu1 %v834_v43 }
  0x2a   :  { %295 = vmatmul.mubr.bf16.gmra.mrb[4].mxu0 %v829_v39 }
  0x2b   :  { %763 = vmatprep.mubr.msk.bf16.mxu0 %vm247_vm0, %v835_v44 }
  0x2c   :  { %537 = vmatmul.mubr.bf16.gmra.mrb[4].mxu1 %v833_v42 }
  0x2d   :  { %771 = vmatprep.mubr.msk.bf16.mxu1 %vm247_vm0, %v837_v45 }
  0x32   :  { %764 = vmatmul.mubr.msk.bf16.vlgmr.msra.gmra.mrb[8].mxu0 %vm247_vm0, %v836_v46 }
  0x34   :  { %772 = vmatmul.mubr.msk.bf16.vlgmr.msra.gmra.mrb[8].mxu1 %vm247_vm0, %v838_v47 }
  0xf5   :  { %v711_v48 = vpop.f32.mrb[0].mxu0 }
  0xf6   :  { %v712_v49 = vpop.f32.mrb[1].mxu0 }
  0xf7   :  { %v713_v50 = vadd.f32 %v712_v49, %v711_v48  ;;  %v714_v51 = vpop.f32.mrb[2].mxu0  ;;  %v743_v52 = vpop.f32.mrb[0].mxu1 }
  0xf8   :  { %v715_v53 = vpop.f32.mrb[3].mxu0  ;;  %v744_v55 = vpop.f32.mrb[1].mxu1 }
  0xf9   :  { %v716_v54 = vadd.f32 %v715_v53, %v714_v51  ;;  %v745_v56 = vadd.f32 %v744_v55, %v743_v52  ;;  %v746_v57 = vpop.f32.mrb[2].mxu1 }
  0xfa   :  { %v747_v58 = vpop.f32.mrb[3].mxu1 }
  0xfb   :  { %v748_v59 = vadd.f32 %v747_v58, %v746_v57 }
  0xfd   :  { %v717_v60 = vpop.f32.mrb[4].mxu0 }
  0xfe   :  { %v718_v61 = vpop.f32.mrb[5].mxu0 }
  0xff   :  { %v719_v62 = vadd.f32 %v718_v61, %v717_v60  ;;  %v720_v63 = vpop.f32.mrb[6].mxu0  ;;  %v749_v0 = vpop.f32.mrb[4].mxu1 }
 0x100   :  { %v721_v1 = vpop.f32.mrb[7].mxu0  ;;  %v750_v3 = vpop.f32.mrb[5].mxu1 }
 0x101   :  { %v722_v2 = vadd.f32 %v721_v1, %v720_v63  ;;  %v751_v4 = vadd.f32 %v750_v3, %v749_v0  ;;  %v752_v5 = vpop.f32.mrb[6].mxu1 }
 0x102   :  { %v753_v6 = vpop.f32.mrb[7].mxu1 }
 0x103   :  { %v754_v7 = vadd.f32 %v753_v6, %v752_v5 }
 0x105   :  { %v765_v8 = vpop.f32.mrb[8].mxu0 }
 0x106   :  { %v346_v9 = vadd.f32 %v765_v8, %v719_v62  ;;  %v337_v10 = vpop.f32.mrb[9].mxu0 }
 0x107   :  { %v338_v11 = vadd.f32 %v713_v50, %v337_v10  ;;  %v766_v12 = vpop.f32.mrb[10].mxu0  ;;  %v773_v15 = vpop.f32.mrb[8].mxu1 }
 0x108   :  { %v349_v13 = vadd.f32 %v766_v12, %v722_v2  ;;  %v539_v14 = vadd.f32 %v751_v4, %v346_v9  ;;  %v340_v16 = vpop.f32.mrb[11].mxu0  ;;  %v579_v20 = vpop.f32.mrb[9].mxu1 }
 0x109   :  { %v341_v18 = vadd.f32 %v716_v54, %v340_v16  ;;  %v531_v19 = vadd.f32 %v745_v56, %v338_v11  ;;  %v774_v23 = vpop.f32.mrb[10].mxu1 }
 0x10a   :  { %v588_v21 = vadd.f32 %v773_v15, %v539_v14  ;;  %v542_v22 = vadd.f32 %v754_v7, %v349_v13  ;;  %v582_v26 = vpop.f32.mrb[11].mxu1 }
 0x10b   :  { %v580_v24 = vadd.f32 %v579_v20, %v531_v19  ;;  %v534_v25 = vadd.f32 %v748_v59, %v341_v18 }
 0x10c   :  { %v603_v27 = vadd.f32 %v686_v17, %v588_v21  ;;  %v591_v28 = vadd.f32 %v774_v23, %v542_v22 }
 0x10d   :  { %v601_v29 = vadd.f32 %v686_v17, %v580_v24  ;;  %v583_v30 = vadd.f32 %v582_v26, %v534_v25 }
 0x10e   :  { %v607_v31 = vmax.f32 %v603_v27, 0.0  ;;  %v604_v32 = vadd.f32 %v686_v17, %v591_v28 }
 0x10f   :  { %v605_v33 = vmax.f32 %v601_v29, 0.0  ;;  %v602_v34 = vadd.f32 %v686_v17, %v583_v30 }
 0x110   :  { %v693_v35 = vpack.c.bf16 %v607_v31, %v607_v31  ;;  %v608_v36 = vmax.f32 %v604_v32, 0.0 }
 0x111   :  { %v691_v37 = vpack.c.bf16 %v605_v33, %v605_v33  ;;  %v606_v38 = vmax.f32 %v602_v34, 0.0 }
 0x112   :  { %628 = vst.msk [vmem:[%s1033_s5 + $0x8] sm:$0xf] %vm625_vm1, %v693_v35  ;;  %v694_v39 = vpack.c.bf16 %v608_v36, %v608_v36 }
 0x113   :  { %626 = vst.msk [vmem:[%s1033_s5] sm:$0xf] %vm625_vm1, %v691_v37  ;;  %v692_v40 = vpack.c.bf16 %v606_v38, %v606_v38 }
 0x114   :  { %629 = vst.msk [vmem:[%s1033_s5 + $0xc] sm:$0xf] %vm625_vm1, %v694_v39 }
 0x115   :  { %627 = vst.msk [vmem:[%s1033_s5 + $0x4] sm:$0xf] %vm625_vm1, %v692_v40 }

// kernel: mono_depth_inference.15
= control target key start
LH: loop header
LB: loop body
LE: loop exit
PB: predicated region body
PF: predicated region fallthrough
CT: control target
= control target key end

     0   :  { %vm204_vm0 = vcmask 261120   ;;  %v309_v56 = vlaneseq  ;;  %vm344_vm2 = vcmask 138240   ;;  %s581_s1 = inlined_call_operand.vmem [shape: bf16[288,17], index: 1, kind: input, shape index: {}]   ;;  %s582_s0 = inlined_call_operand.vmem [shape: bf16[32,288], index: 0, kind: input, shape index: {}]   ;;  %s583_s2 = inlined_call_operand.vmem [shape: f32[1,17], index: 2, kind: input, shape index: {}]   ;;  %s584_s3 = inlined_call_operand.vmem [shape: f32[32,17], index: 3, kind: output, shape index: {}]  }
   0x1   :  { %v424_v0 = vld [vmem:[%s581_s1 + $0x40] sm:$0xff]   ;;  %v426_v2 = vld [vmem:[%s581_s1 + $0x48] sm:$0xff]   ;;  %v428_v4 = vld [vmem:[%s581_s1 + $0x50] sm:$0xff]  }
   0x2   :  { %v425_v1 = vld [vmem:[%s581_s1] sm:$0xff]   ;;  %384 = vmatprep.subr.bf16.mxu0 %v424_v0  ;;  %v427_v3 = vld [vmem:[%s581_s1 + $0x8] sm:$0xff]   ;;  %v429_v5 = vld [vmem:[%s581_s1 + $0x10] sm:$0xff]   ;;  %v310_v58 = vand.u32 127, %v309_v56 }
   0x3   :  { %385 = vmatpush3.bf16.msra.mxu0 %v425_v1  ;;  %v430_v6 = vld [vmem:[%s581_s1 + $0x58] sm:$0xff]   ;;  %v432_v8 = vld [vmem:[%s581_s1 + $0x60] sm:$0xff]   ;;  %v434_v11 = vld [vmem:[%s581_s1 + $0x68] sm:$0xff]  }
   0x4   :  { %386 = vmatprep.subr.bf16.mxu0 %v426_v2  ;;  %v431_v7 = vld [vmem:[%s581_s1 + $0x18] sm:$0xff]   ;;  %v433_v9 = vld [vmem:[%s581_s1 + $0x20] sm:$0xff]   ;;  %v435_v12 = vld [vmem:[%s581_s1 + $0x28] sm:$0xff]   ;;  %vm311_vm1 = vcmp.lt.s32.totalorder %v310_v58, 16 }
   0x5   :  { %v439_v10 = vld [vmem:[%s581_s1 + $0x80] sm:$0xff]   ;;  %v436_v13 = vld [vmem:[%s581_s1 + $0x70] sm:$0xff]   ;;  %v444_v15 = vld [vmem:[%s581_s1 + $0x88] sm:$0xff]  }
   0x6   :  { %416 = vmatprep.subr.bf16.mxu1 %v439_v10  ;;  %v443_v14 = vld [vmem:[%s582_s0 + $0x4] ss:$12 sps:$4 sm:$0xff]   ;;  %v445_v16 = vld [vmem:[%s582_s0 + $0x8] ss:$12 sps:$4 sm:$0xff]   ;;  %v446_v17 = vld [vmem:[%s582_s0 + $0x20] ss:$12 sps:$4 sm:$0xff]  }
   0x7   :  { %387 = vmatpush3.bf16.msra.mxu0 %v427_v3  ;;  %417 = vmatpush3.bf16.msra.mxu1 %v439_v10  ;;  %v437_v18 = vld [vmem:[%s581_s1 + $0x30] sm:$0xff]   ;;  %v438_v19 = vld [vmem:[%s581_s1 + $0x78] sm:$0xff]   ;;  %v441_v21 = vld [vmem:[%s582_s0] ss:$12 sps:$4 sm:$0xff]  }
   0x8   :  { %388 = vmatprep.subr.bf16.mxu0 %v428_v4  ;;  %243 = vmatprep.mubr.bf16.mxu0 %v443_v14  ;;  %v440_v20 = vld [vmem:[%s581_s1 + $0x38] sm:$0xff]   ;;  %v353_v30 = vld [vmem:[%s583_s2] ss:$0 sm:$0xff] }
   0x9   :  { %418 = vmatprep.subr.bf16.mxu1 %v444_v15  ;;  %420 = vmatprep.mubr.msk.bf16.mxu1 %vm204_vm0, %v445_v16  ;;  %v447_v22 = vld [vmem:[%s582_s0 + $0x1c] ss:$12 sps:$4 sm:$0xff]   ;;  %v449_v23 = vld [vmem:[%s582_s0 + $0x18] ss:$12 sps:$4 sm:$0xff]  }
   0xb   :  { %389 = vmatpush3.bf16.msra.mxu0 %v429_v5  ;;  %419 = vmatpush3.bf16.msra.mxu1 %v444_v15 }
   0xc   :  { %390 = vmatprep.subr.bf16.mxu0 %v430_v6 }
   0xe   :  { %421 = vmatmul.mubr.msk.bf16.vlgmr.msra.gmra.mrb[0].mxu1 %vm204_vm0, %v446_v17 }
   0xf   :  { %391 = vmatpush3.bf16.msra.mxu0 %v431_v7 }
  0x10   :  { %392 = vmatprep.subr.bf16.mxu0 %v432_v8 }
  0x13   :  { %393 = vmatpush3.bf16.msra.mxu0 %v433_v9 }
  0x14   :  { %394 = vmatprep.subr.bf16.mxu0 %v434_v11 }
  0x17   :  { %395 = vmatpush3.bf16.msra.mxu0 %v435_v12 }
  0x18   :  { %396 = vmatprep.subr.bf16.mxu0 %v436_v13 }
  0x1b   :  { %397 = vmatpush3.bf16.msra.mxu0 %v437_v18 }
  0x1c   :  { %398 = vmatprep.subr.bf16.mxu0 %v438_v19 }
  0x1f   :  { %399 = vmatpush3.bf16.msra.mxu0 %v440_v20 }
  0x22   :  { %244 = vmatmul.mubr.bf16.vlgmr.msra.gmra.mrb[0].mxu0 %v441_v21 }
  0x23   :  { %251 = vmatprep.mubr.bf16.mxu0 %v447_v22 }
  0x2a   :  { %252 = vmatmul.mubr.bf16.gmra.mrb[4].mxu0 %v449_v23 }
  0xe1   :  { %v422_v24 = vpop.f32.mrb[0].mxu1 }
  0xe2   :  { %v294_v25 = vpop.f32.mrb[1].mxu1 }
  0xe3   :  { %v423_v26 = vpop.f32.mrb[2].mxu1 }
  0xe4   :  { %v297_v27 = vpop.f32.mrb[3].mxu1 }
  0xf5   :  { %v400_v28 = vpop.f32.mrb[0].mxu0 }
  0xf6   :  { %v401_v29 = vpop.f32.mrb[1].mxu0 }
  0xf7   :  { %v402_v31 = vadd.f32 %v401_v29, %v400_v28  ;;  %v403_v32 = vpop.f32.mrb[2].mxu0 }
  0xf8   :  { %v404_v33 = vpop.f32.mrb[3].mxu0 }
  0xf9   :  { %v405_v34 = vadd.f32 %v404_v33, %v403_v32  ;;  %v246_v35 = vadd.f32 %v402_v31, %v353_v30 }
  0xfb   :  { %v295_v36 = vadd.f32 %v294_v25, %v246_v35  ;;  %v249_v37 = vadd.f32 %v405_v34, %v353_v30 }
  0xfd   :  { %v380_v38 = vmul.f32 -1.442695, %v295_v36  ;;  %v298_v39 = vadd.f32 %v297_v27, %v249_v37  ;;  %v406_v40 = vpop.f32.mrb[4].mxu0  ;;  %v312_v63 = vmax.f32 %v295_v36, 0.0 }
  0xfe   :  { %v407_v41 = vpop.f32.mrb[5].mxu0 }
  0xff   :  { %450 = vpow2.f32 %v380_v38  ;;  %v381_v42 = vmul.f32 -1.442695, %v298_v39  ;;  %v408_v43 = vadd.f32 %v407_v41, %v406_v40  ;;  %v409_v44 = vpop.f32.mrb[6].mxu0  ;;  %v313_v2 = vmax.f32 %v298_v39, 0.0 }
 0x100   :  { %v410_v45 = vpop.f32.mrb[7].mxu0 }
 0x101   :  { %452 = vpow2.f32 %v381_v42  ;;  %v254_v46 = vadd.f32 %v408_v43, %v353_v30  ;;  %v411_v47 = vadd.f32 %v410_v45, %v409_v44 }
 0x103   :  { %v303_v48 = vadd.f32 %v422_v24, %v254_v46  ;;  %v257_v49 = vadd.f32 %v411_v47, %v353_v30 }
 0x105   :  { %v382_v50 = vmul.f32 -1.442695, %v303_v48  ;;  %v306_v51 = vadd.f32 %v423_v26, %v257_v49  ;;  %v314_v5 = vmax.f32 %v303_v48, 0.0 }
 0x107   :  { %454 = vpow2.f32 %v382_v50  ;;  %v383_v52 = vmul.f32 -1.442695, %v306_v51  ;;  %v315_v8 = vmax.f32 %v306_v51, 0.0 }
 0x109   :  { %v451_v53 = vpop.eup %450  ;;  %456 = vpow2.f32 %v383_v52 }
 0x10a   :  { %v328_v54 = vadd.f32 1.0, %v451_v53 }
 0x10b   :  { %v453_v55 = vpop.eup %452 }
 0x10c   :  { %458 = vrcp.f32 %v328_v54  ;;  %v329_v57 = vadd.f32 1.0, %v453_v55 }
 0x10e   :  { %460 = vrcp.f32 %v329_v57 }
 0x111   :  { %v455_v59 = vpop.eup %454 }
 0x112   :  { %v330_v60 = vadd.f32 1.0, %v455_v59 }
 0x113   :  { %v457_v61 = vpop.eup %456 }
 0x114   :  { %462 = vrcp.f32 %v330_v60  ;;  %v331_v62 = vadd.f32 1.0, %v457_v61 }
 0x116   :  { %v459_v0 = vpop.eup %458  ;;  %464 = vrcp.f32 %v331_v62 }
 0x117   :  { %v340_v1 = vsel %vm311_vm1, %v312_v63, %v459_v0 }
 0x118   :  { %v461_v3 = vpop.eup %460  ;;  %345 = vst.msk [vmem:[%s584_s3] sm:$0xff] %vm344_vm2, %v340_v1 }
 0x119   :  { %v341_v4 = vsel %vm311_vm1, %v313_v2, %v461_v3 }
 0x11a   :  { %346 = vst.msk [vmem:[%s584_s3 + $0x8] sm:$0xff] %vm344_vm2, %v341_v4 }
 0x11e   :  { %v463_v6 = vpop.eup %462 }
 0x11f   :  { %v342_v7 = vsel %vm311_vm1, %v314_v5, %v463_v6 }
 0x120   :  { %v465_v9 = vpop.eup %464  ;;  %347 = vst.msk [vmem:[%s584_s3 + $0x10] sm:$0xff] %vm344_vm2, %v342_v7 }
 0x121   :  { %v343_v10 = vsel %vm311_vm1, %v315_v8, %v465_v9 }
 0x122   :  { %348 = vst.msk [vmem:[%s584_s3 + $0x18] sm:$0xff] %vm344_vm2, %v343_v10 }

// kernel: mono_depth_inference.16
= control target key start
LH: loop header
LB: loop body
LE: loop exit
PB: predicated region body
PF: predicated region fallthrough
CT: control target
= control target key end

     0   :  { %v874_v0 = vmov 0   ;;  %vm215_vm0 = vcmask 130048   ;;  %vm687_vm1 = vcmask 125952   ;;  %s1156_s3 = inlined_call_operand.vmem [shape: bf16[144,16], index: 3, kind: input, shape index: {}]   ;;  %s1157_s2 = inlined_call_operand.vmem [shape: bf16[144,16], index: 2, kind: input, shape index: {}]   ;;  %s1158_s1 = inlined_call_operand.vmem [shape: bf16[128,144], index: 1, kind: input, shape index: {}]   ;;  %s1159_s0 = inlined_call_operand.vmem [shape: bf16[128,144], index: 0, kind: input, shape index: {}]   ;;  %s1160_s4 = inlined_call_operand.vmem [shape: f32[1,16], index: 4, kind: input, shape index: {}]   ;;  %s1161_s5 = inlined_call_operand.vmem [shape: bf16[128,16], index: 5, kind: output, shape index: {}]  }
   0x1   :  { %240 = vmatprep.subr.bf16.mxu0 %v874_v0  ;;  %487 = vmatprep.subr.bf16.mxu1 %v874_v0  ;;  %v808_v1 = vld [vmem:[%s1156_s3] sm:$0xff]   ;;  %v810_v3 = vld [vmem:[%s1156_s3 + $0x8] sm:$0xff]   ;;  %v812_v5 = vld [vmem:[%s1156_s3 + $0x10] sm:$0xff]  }
   0x2   :  { %v809_v2 = vld [vmem:[%s1157_s2] sm:$0xff]   ;;  %241 = vmatpush1.bf16.msra.mxu0 %v808_v1  ;;  %v811_v4 = vld [vmem:[%s1157_s2 + $0x8] sm:$0xff]   ;;  %v813_v6 = vld [vmem:[%s1157_s2 + $0x10] sm:$0xff]  }
   0x3   :  { %488 = vmatpush1.bf16.msra.mxu1 %v809_v2  ;;  %242 = vmatprep.subr.bf16.mxu0 %v874_v0  ;;  %v814_v7 = vld [vmem:[%s1156_s3 + $0x18] sm:$0xff]   ;;  %v816_v9 = vld [vmem:[%s1156_s3 + $0x20] sm:$0xff]   ;;  %v818_v11 = vld [vmem:[%s1156_s3 + $0x28] sm:$0xff]  }
   0x4   :  { %489 = vmatprep.subr.bf16.mxu1 %v874_v0  ;;  %v815_v8 = vld [vmem:[%s1157_s2 + $0x18] sm:$0xff]   ;;  %v817_v10 = vld [vmem:[%s1157_s2 + $0x20] sm:$0xff]   ;;  %v819_v12 = vld [vmem:[%s1157_s2 + $0x28] sm:$0xff]  }
   0x5   :  { %v828_v13 = vld [vmem:[%s1158_s1 + $0x4] ss:$8 sps:$4 sm:$0xff]   ;;  %v820_v15 = vld [vmem:[%s1156_s3 + $0x30] sm:$0xff]   ;;  %v822_v17 = vld [vmem:[%s1156_s3 + $0x38] sm:$0xff]  }
   0x6   :  { %243 = vmatpush1.bf16.msra.mxu0 %v810_v3  ;;  %v831_v14 = vld [vmem:[%s1159_s0 + $0x4] ss:$8 sps:$4 sm:$0xff]   ;;  %733 = vmatprep.mubr.msk.bf16.mxu0 %vm215_vm0, %v828_v13  ;;  %v821_v16 = vld [vmem:[%s1157_s2 + $0x30] sm:$0xff]   ;;  %v823_v18 = vld [vmem:[%s1157_s2 + $0x38] sm:$0xff]  }
   0x7   :  { %490 = vmatpush1.bf16.msra.mxu1 %v811_v4  ;;  %244 = vmatprep.subr.bf16.mxu0 %v874_v0  ;;  %v824_v19 = vld [vmem:[%s1156_s3 + $0x40] sm:$0xff]   ;;  %v832_v23 = vld [vmem:[%s1158_s1 + $0x14] ss:$8 sps:$4 sm:$0xff]   ;;  %v836_v25 = vld [vmem:[%s1158_s1 + $0x10] ss:$8 sps:$4 sm:$0xff]  }
   0x8   :  { %491 = vmatprep.subr.bf16.mxu1 %v874_v0  ;;  %766 = vmatprep.mubr.msk.bf16.mxu1 %vm215_vm0, %v831_v14  ;;  %v825_v20 = vld [vmem:[%s1157_s2 + $0x40] sm:$0xff]   ;;  %v834_v24 = vld [vmem:[%s1159_s0 + $0x14] ss:$8 sps:$4 sm:$0xff]   ;;  %v837_v26 = vld [vmem:[%s1159_s0 + $0x10] ss:$8 sps:$4 sm:$0xff]  }
   0x9   :  { %v826_v21 = vld [vmem:[%s1158_s1] ss:$8 sps:$4 sm:$0xff]   ;;  %v838_v27 = vld [vmem:[%s1158_s1 + $0x24] ss:$8 sps:$4 sm:$0xff]   ;;  %v844_v31 = vld [vmem:[%s1158_s1 + $0x34] ss:$8 sps:$4 sm:$0xff]  }
   0xa   :  { %245 = vmatpush1.bf16.msra.mxu0 %v812_v5  ;;  %v829_v22 = vld [vmem:[%s1159_s0] ss:$8 sps:$4 sm:$0xff]   ;;  %v840_v28 = vld [vmem:[%s1159_s0 + $0x24] ss:$8 sps:$4 sm:$0xff]   ;;  %v846_v32 = vld [vmem:[%s1159_s0 + $0x34] ss:$8 sps:$4 sm:$0xff]  }
   0xb   :  { %492 = vmatpush1.bf16.msra.mxu1 %v813_v6  ;;  %246 = vmatprep.subr.bf16.mxu0 %v874_v0  ;;  %v842_v29 = vld [vmem:[%s1158_s1 + $0x20] ss:$8 sps:$4 sm:$0xff]   ;;  %v848_v33 = vld [vmem:[%s1158_s1 + $0x30] ss:$8 sps:$4 sm:$0xff]   ;;  %v850_v35 = vld [vmem:[%s1158_s1 + $0x44] ss:$8 sps:$4 sm:$0xff]  }
   0xc   :  { %493 = vmatprep.subr.bf16.mxu1 %v874_v0  ;;  %v843_v30 = vld [vmem:[%s1159_s0 + $0x20] ss:$8 sps:$4 sm:$0xff]   ;;  %v849_v34 = vld [vmem:[%s1159_s0 + $0x30] ss:$8 sps:$4 sm:$0xff]   ;;  %v852_v36 = vld [vmem:[%s1159_s0 + $0x44] ss:$8 sps:$4 sm:$0xff]  }
   0xd   :  { %v854_v37 = vld [vmem:[%s1158_s1 + $0x40] ss:$8 sps:$4 sm:$0xff]   ;;  %v856_v39 = vld [vmem:[%s1158_s1 + $0x54] ss:$8 sps:$4 sm:$0xff]   ;;  %v860_v41 = vld [vmem:[%s1158_s1 + $0x50] ss:$8 sps:$4 sm:$0xff]  }
   0xe   :  { %247 = vmatpush1.bf16.msra.mxu0 %v814_v7  ;;  %v855_v38 = vld [vmem:[%s1159_s0 + $0x40] ss:$8 sps:$4 sm:$0xff]   ;;  %v858_v40 = vld [vmem:[%s1159_s0 + $0x54] ss:$8 sps:$4 sm:$0xff]   ;;  %v861_v42 = vld [vmem:[%s1159_s0 + $0x50] ss:$8 sps:$4 sm:$0xff]  }
   0xf   :  { %494 = vmatpush1.bf16.msra.mxu1 %v815_v8  ;;  %248 = vmatprep.subr.bf16.mxu0 %v874_v0  ;;  %v862_v43 = vld [vmem:[%s1158_s1 + $0x64] ss:$8 sps:$4 sm:$0xff]   ;;  %v866_v45 = vld [vmem:[%s1158_s1 + $0x60] ss:$8 sps:$4 sm:$0xff]   ;;  %v868_v47 = vld [vmem:[%s1158_s1 + $0x74] ss:$8 sps:$4 sm:$0xff]  }
  0x10   :  { %495 = vmatprep.subr.bf16.mxu1 %v874_v0  ;;  %v864_v44 = vld [vmem:[%s1159_s0 + $0x64] ss:$8 sps:$4 sm:$0xff]   ;;  %v867_v46 = vld [vmem:[%s1159_s0 + $0x60] ss:$8 sps:$4 sm:$0xff]   ;;  %v870_v48 = vld [vmem:[%s1159_s0 + $0x74] ss:$8 sps:$4 sm:$0xff]  }
  0x11   :  { %v872_v49 = vld [vmem:[%s1158_s1 + $0x70] ss:$8 sps:$4 sm:$0xff]   ;;  %v1074_v53 = vld [vmem:[%s1160_s4] ss:$0 sm:$0xff] }
  0x12   :  { %249 = vmatpush1.bf16.msra.mxu0 %v816_v9  ;;  %v873_v50 = vld [vmem:[%s1159_s0 + $0x70] ss:$8 sps:$4 sm:$0xff]  }
  0x13   :  { %496 = vmatpush1.bf16.msra.mxu1 %v817_v10  ;;  %250 = vmatprep.subr.bf16.mxu0 %v874_v0 }
  0x14   :  { %497 = vmatprep.subr.bf16.mxu1 %v874_v0 }
  0x16   :  { %251 = vmatpush1.bf16.msra.mxu0 %v818_v11 }
  0x17   :  { %498 = vmatpush1.bf16.msra.mxu1 %v819_v12  ;;  %252 = vmatprep.subr.bf16.mxu0 %v874_v0 }
  0x18   :  { %499 = vmatprep.subr.bf16.mxu1 %v874_v0 }
  0x1a   :  { %253 = vmatpush1.bf16.msra.mxu0 %v820_v15 }
  0x1b   :  { %500 = vmatpush1.bf16.msra.mxu1 %v821_v16  ;;  %254 = vmatprep.subr.bf16.mxu0 %v874_v0 }
  0x1c   :  { %501 = vmatprep.subr.bf16.mxu1 %v874_v0 }
  0x1e   :  { %255 = vmatpush1.bf16.msra.mxu0 %v822_v17 }
  0x1f   :  { %502 = vmatpush1.bf16.msra.mxu1 %v823_v18  ;;  %256 = vmatprep.subr.bf16.mxu0 %v874_v0 }
  0x20   :  { %503 = vmatprep.subr.bf16.mxu1 %v874_v0 }
  0x22   :  { %257 = vmatpush1.bf16.msra.mxu0 %v824_v19 }
  0x23   :  { %504 = vmatpush1.bf16.msra.mxu1 %v825_v20 }
  0x25   :  { %273 = vmatmul.mubr.bf16.vlgmr.msra.gmra.mrb[0].mxu0 %v826_v21 }
  0x26   :  { %520 = vmatmul.mubr.bf16.vlgmr.msra.gmra.mrb[0].mxu1 %v829_v22  ;;  %734 = vmatprep.mubr.msk.bf16.mxu0 %vm215_vm0, %v832_v23 }
  0x27   :  { %767 = vmatprep.mubr.msk.bf16.mxu1 %vm215_vm0, %v834_v24 }
  0x2d   :  { %281 = vmatmul.mubr.bf16.gmra.mrb[4].mxu0 %v836_v25 }
  0x2e   :  { %528 = vmatmul.mubr.bf16.gmra.mrb[4].mxu1 %v837_v26  ;;  %735 = vmatprep.mubr.msk.bf16.mxu0 %vm215_vm0, %v838_v27 }
  0x2f   :  { %768 = vmatprep.mubr.msk.bf16.mxu1 %vm215_vm0, %v840_v28 }
  0x35   :  { %289 = vmatmul.mubr.bf16.gmra.mrb[8].mxu0 %v842_v29 }
  0x36   :  { %536 = vmatmul.mubr.bf16.gmra.mrb[8].mxu1 %v843_v30  ;;  %736 = vmatprep.mubr.msk.bf16.mxu0 %vm215_vm0, %v844_v31 }
  0x37   :  { %769 = vmatprep.mubr.msk.bf16.mxu1 %vm215_vm0, %v846_v32 }
  0x3d   :  { %297 = vmatmul.mubr.bf16.gmra.mrb[12].mxu0 %v848_v33 }
  0x3e   :  { %544 = vmatmul.mubr.bf16.gmra.mrb[12].mxu1 %v849_v34  ;;  %737 = vmatprep.mubr.msk.bf16.mxu0 %vm215_vm0, %v850_v35 }
  0x3f   :  { %770 = vmatprep.mubr.msk.bf16.mxu1 %vm215_vm0, %v852_v36 }
  0x45   :  { %305 = vmatmul.mubr.bf16.gmra.mrb[16].mxu0 %v854_v37 }
  0x46   :  { %552 = vmatmul.mubr.bf16.gmra.mrb[16].mxu1 %v855_v38  ;;  %738 = vmatprep.mubr.msk.bf16.mxu0 %vm215_vm0, %v856_v39 }
  0x47   :  { %771 = vmatprep.mubr.msk.bf16.mxu1 %vm215_vm0, %v858_v40 }
  0x4d   :  { %313 = vmatmul.mubr.bf16.gmra.mrb[20].mxu0 %v860_v41 }
  0x4e   :  { %560 = vmatmul.mubr.bf16.gmra.mrb[20].mxu1 %v861_v42  ;;  %739 = vmatprep.mubr.msk.bf16.mxu0 %vm215_vm0, %v862_v43 }
  0x4f   :  { %772 = vmatprep.mubr.msk.bf16.mxu1 %vm215_vm0, %v864_v44 }
  0x55   :  { %321 = vmatmul.mubr.bf16.gmra.mrb[24].mxu0 %v866_v45 }
  0x56   :  { %568 = vmatmul.mubr.bf16.gmra.mrb[24].mxu1 %v867_v46  ;;  %740 = vmatprep.mubr.msk.bf16.mxu0 %vm215_vm0, %v868_v47 }
  0x57   :  { %773 = vmatprep.mubr.msk.bf16.mxu1 %vm215_vm0, %v870_v48 }
  0x5d   :  { %329 = vmatmul.mubr.bf16.gmra.mrb[28].mxu0 %v872_v49 }
  0x5e   :  { %576 = vmatmul.mubr.bf16.gmra.mrb[28].mxu1 %v873_v50 }
  0xf8   :  { %v274_v51 = vpop.f32.mrb[0].mxu0 }
  0xf9   :  { %v521_v52 = vpop.f32.mrb[0].mxu1  ;;  %v276_v54 = vpop.f32.mrb[1].mxu0 }
  0xfa   :  { %v522_v55 = vadd.f32 %v521_v52, %v274_v51  ;;  %v523_v56 = vpop.f32.mrb[1].mxu1  ;;  %v277_v57 = vpop.f32.mrb[2].mxu0 }
  0xfb   :  { %v524_v58 = vpop.f32.mrb[2].mxu1  ;;  %v279_v59 = vpop.f32.mrb[3].mxu0 }
  0xfc   :  { %v591_v60 = vadd.f32 %v1074_v53, %v522_v55  ;;  %v525_v61 = vadd.f32 %v524_v58, %v277_v57  ;;  %v526_v62 = vpop.f32.mrb[3].mxu1 }
  0xfe   :  { %v607_v63 = vmax.f32 %v591_v60, 0.0  ;;  %v592_v0 = vadd.f32 %v1074_v53, %v525_v61 }
 0x100   :  { %v791_v1 = vpack.c.bf16 %v607_v63, %v607_v63  ;;  %v608_v2 = vmax.f32 %v592_v0, 0.0  ;;  %v282_v3 = vpop.f32.mrb[4].mxu0 }
 0x101   :  { %v529_v4 = vpop.f32.mrb[4].mxu1  ;;  %v284_v5 = vpop.f32.mrb[5].mxu0 }
 0x102   :  { %688 = vst.msk [vmem:[%s1161_s5] sm:$0xf] %vm687_vm1, %v791_v1  ;;  %v792_v6 = vpack.c.bf16 %v608_v2, %v608_v2  ;;  %v530_v7 = vadd.f32 %v529_v4, %v282_v3  ;;  %v531_v8 = vpop.f32.mrb[5].mxu1  ;;  %v285_v9 = vpop.f32.mrb[6].mxu0 }
 0x103   :  { %v532_v10 = vpop.f32.mrb[6].mxu1  ;;  %v287_v11 = vpop.f32.mrb[7].mxu0 }
 0x104   :  { %689 = vst.msk [vmem:[%s1161_s5 + $0x4] sm:$0xf] %vm687_vm1, %v792_v6  ;;  %v593_v12 = vadd.f32 %v1074_v53, %v530_v7  ;;  %v533_v13 = vadd.f32 %v532_v10, %v285_v9  ;;  %v534_v14 = vpop.f32.mrb[7].mxu1 }
 0x106   :  { %v609_v15 = vmax.f32 %v593_v12, 0.0  ;;  %v594_v16 = vadd.f32 %v1074_v53, %v533_v13 }
 0x108   :  { %v793_v17 = vpack.c.bf16 %v609_v15, %v609_v15  ;;  %v610_v18 = vmax.f32 %v594_v16, 0.0  ;;  %v290_v19 = vpop.f32.mrb[8].mxu0 }
 0x109   :  { %v537_v20 = vpop.f32.mrb[8].mxu1  ;;  %v292_v21 = vpop.f32.mrb[9].mxu0 }
 0x10a   :  { %690 = vst.msk [vmem:[%s1161_s5 + $0x8] sm:$0xf] %vm687_vm1, %v793_v17  ;;  %v794_v22 = vpack.c.bf16 %v610_v18, %v610_v18  ;;  %v538_v23 = vadd.f32 %v537_v20, %v290_v19  ;;  %v539_v24 = vpop.f32.mrb[9].mxu1  ;;  %v293_v25 = vpop.f32.mrb[10].mxu0 }
 0x10b   :  { %v540_v26 = vpop.f32.mrb[10].mxu1  ;;  %v295_v27 = vpop.f32.mrb[11].mxu0 }
 0x10c   :  { %691 = vst.msk [vmem:[%s1161_s5 + $0xc] sm:$0xf] %vm687_vm1, %v794_v22  ;;  %v595_v28 = vadd.f32 %v1074_v53, %v538_v23  ;;  %v541_v29 = vadd.f32 %v540_v26, %v293_v25  ;;  %v542_v30 = vpop.f32.mrb[11].mxu1 }
 0x10e   :  { %v611_v31 = vmax.f32 %v595_v28, 0.0  ;;  %v596_v32 = vadd.f32 %v1074_v53, %v541_v29 }
 0x110   :  { %v795_v33 = vpack.c.bf16 %v611_v31, %v611_v31  ;;  %v612_v34 = vmax.f32 %v596_v32, 0.0  ;;  %v298_v35 = vpop.f32.mrb[12].mxu0 }
 0x111   :  { %v545_v36 = vpop.f32.mrb[12].mxu1  ;;  %v300_v37 = vpop.f32.mrb[13].mxu0 }
 0x112   :  { %692 = vst.msk [vmem:[%s1161_s5 + $0x10] sm:$0xf] %vm687_vm1, %v795_v33  ;;  %v796_v38 = vpack.c.bf16 %v612_v34, %v612_v34  ;;  %v546_v39 = vadd.f32 %v545_v36, %v298_v35  ;;  %v547_v40 = vpop.f32.mrb[13].mxu1  ;;  %v301_v41 = vpop.f32.mrb[14].mxu0 }
 0x113   :  { %v548_v42 = vpop.f32.mrb[14].mxu1  ;;  %v303_v43 = vpop.f32.mrb[15].mxu0 }
 0x114   :  { %693 = vst.msk [vmem:[%s1161_s5 + $0x14] sm:$0xf] %vm687_vm1, %v796_v38  ;;  %v597_v44 = vadd.f32 %v1074_v53, %v546_v39  ;;  %v549_v45 = vadd.f32 %v548_v42, %v301_v41  ;;  %v550_v46 = vpop.f32.mrb[15].mxu1 }
 0x116   :  { %v613_v47 = vmax.f32 %v597_v44, 0.0  ;;  %v598_v48 = vadd.f32 %v1074_v53, %v549_v45 }
 0x118   :  { %v797_v49 = vpack.c.bf16 %v613_v47, %v613_v47  ;;  %v614_v50 = vmax.f32 %v598_v48, 0.0  ;;  %v306_v51 = vpop.f32.mrb[16].mxu0 }
 0x119   :  { %v553_v52 = vpop.f32.mrb[16].mxu1  ;;  %v308_v54 = vpop.f32.mrb[17].mxu0 }
 0x11a   :  { %694 = vst.msk [vmem:[%s1161_s5 + $0x18] sm:$0xf] %vm687_vm1, %v797_v49  ;;  %v798_v55 = vpack.c.bf16 %v614_v50, %v614_v50  ;;  %v554_v56 = vadd.f32 %v553_v52, %v306_v51  ;;  %v555_v57 = vpop.f32.mrb[17].mxu1  ;;  %v309_v58 = vpop.f32.mrb[18].mxu0 }
 0x11b   :  { %v556_v59 = vpop.f32.mrb[18].mxu1  ;;  %v311_v60 = vpop.f32.mrb[19].mxu0 }
 0x11c   :  { %695 = vst.msk [vmem:[%s1161_s5 + $0x1c] sm:$0xf] %vm687_vm1, %v798_v55  ;;  %v599_v61 = vadd.f32 %v1074_v53, %v554_v56  ;;  %v557_v62 = vadd.f32 %v556_v59, %v309_v58  ;;  %v558_v63 = vpop.f32.mrb[19].mxu1 }
 0x11e   :  { %v615_v0 = vmax.f32 %v599_v61, 0.0  ;;  %v600_v1 = vadd.f32 %v1074_v53, %v557_v62 }
 0x120   :  { %v799_v2 = vpack.c.bf16 %v615_v0, %v615_v0  ;;  %v616_v3 = vmax.f32 %v600_v1, 0.0  ;;  %v314_v4 = vpop.f32.mrb[20].mxu0 }
 0x121   :  { %v561_v5 = vpop.f32.mrb[20].mxu1  ;;  %v316_v6 = vpop.f32.mrb[21].mxu0 }
 0x122   :  { %696 = vst.msk [vmem:[%s1161_s5 + $0x20] sm:$0xf] %vm687_vm1, %v799_v2  ;;  %v800_v7 = vpack.c.bf16 %v616_v3, %v616_v3  ;;  %v562_v8 = vadd.f32 %v561_v5, %v314_v4  ;;  %v563_v9 = vpop.f32.mrb[21].mxu1  ;;  %v317_v10 = vpop.f32.mrb[22].mxu0 }
 0x123   :  { %v564_v11 = vpop.f32.mrb[22].mxu1  ;;  %v319_v12 = vpop.f32.mrb[23].mxu0 }
 0x124   :  { %697 = vst.msk [vmem:[%s1161_s5 + $0x24] sm:$0xf] %vm687_vm1, %v800_v7  ;;  %v601_v13 = vadd.f32 %v1074_v53, %v562_v8  ;;  %v565_v14 = vadd.f32 %v564_v11, %v317_v10  ;;  %v566_v15 = vpop.f32.mrb[23].mxu1 }
 0x126   :  { %v617_v16 = vmax.f32 %v601_v13, 0.0  ;;  %v602_v17 = vadd.f32 %v1074_v53, %v565_v14 }
 0x128   :  { %v801_v18 = vpack.c.bf16 %v617_v16, %v617_v16  ;;  %v618_v19 = vmax.f32 %v602_v17, 0.0  ;;  %v322_v20 = vpop.f32.mrb[24].mxu0 }
 0x129   :  { %v569_v21 = vpop.f32.mrb[24].mxu1  ;;  %v324_v22 = vpop.f32.mrb[25].mxu0 }
 0x12a   :  { %698 = vst.msk [vmem:[%s1161_s5 + $0x28] sm:$0xf] %vm687_vm1, %v801_v18  ;;  %v802_v23 = vpack.c.bf16 %v618_v19, %v618_v19  ;;  %v570_v24 = vadd.f32 %v569_v21, %v322_v20  ;;  %v571_v25 = vpop.f32.mrb[25].mxu1  ;;  %v325_v26 = vpop.f32.mrb[26].mxu0 }
 0x12b   :  { %v572_v27 = vpop.f32.mrb[26].mxu1  ;;  %v327_v28 = vpop.f32.mrb[27].mxu0 }
 0x12c   :  { %699 = vst.msk [vmem:[%s1161_s5 + $0x2c] sm:$0xf] %vm687_vm1, %v802_v23  ;;  %v603_v29 = vadd.f32 %v1074_v53, %v570_v24  ;;  %v573_v30 = vadd.f32 %v572_v27, %v325_v26  ;;  %v574_v31 = vpop.f32.mrb[27].mxu1 }
 0x12e   :  { %v619_v32 = vmax.f32 %v603_v29, 0.0  ;;  %v604_v33 = vadd.f32 %v1074_v53, %v573_v30 }
 0x130   :  { %v803_v34 = vpack.c.bf16 %v619_v32, %v619_v32  ;;  %v620_v35 = vmax.f32 %v604_v33, 0.0  ;;  %v330_v36 = vpop.f32.mrb[28].mxu0 }
 0x131   :  { %v577_v37 = vpop.f32.mrb[28].mxu1  ;;  %v332_v38 = vpop.f32.mrb[29].mxu0 }
 0x132   :  { %700 = vst.msk [vmem:[%s1161_s5 + $0x30] sm:$0xf] %vm687_vm1, %v803_v34  ;;  %v804_v39 = vpack.c.bf16 %v620_v35, %v620_v35  ;;  %v578_v40 = vadd.f32 %v577_v37, %v330_v36  ;;  %v579_v41 = vpop.f32.mrb[29].mxu1  ;;  %v333_v42 = vpop.f32.mrb[30].mxu0 }
 0x133   :  { %v580_v43 = vpop.f32.mrb[30].mxu1  ;;  %v335_v44 = vpop.f32.mrb[31].mxu0 }
 0x134   :  { %701 = vst.msk [vmem:[%s1161_s5 + $0x34] sm:$0xf] %vm687_vm1, %v804_v39  ;;  %v605_v45 = vadd.f32 %v1074_v53, %v578_v40  ;;  %v581_v46 = vadd.f32 %v580_v43, %v333_v42  ;;  %v582_v47 = vpop.f32.mrb[31].mxu1 }
 0x136   :  { %v621_v48 = vmax.f32 %v605_v45, 0.0  ;;  %v606_v49 = vadd.f32 %v1074_v53, %v581_v46 }
 0x138   :  { %v805_v50 = vpack.c.bf16 %v621_v48, %v621_v48  ;;  %v622_v51 = vmax.f32 %v606_v49, 0.0 }
 0x13a   :  { %702 = vst.msk [vmem:[%s1161_s5 + $0x38] sm:$0xf] %vm687_vm1, %v805_v50  ;;  %v806_v52 = vpack.c.bf16 %v622_v51, %v622_v51 }
 0x13c   :  { %703 = vst.msk [vmem:[%s1161_s5 + $0x3c] sm:$0xf] %vm687_vm1, %v806_v52 }

// kernel: mono_depth_inference.17
= control target key start
LH: loop header
LB: loop body
LE: loop exit
PB: predicated region body
PF: predicated region fallthrough
CT: control target
= control target key end

     0   :  { %v622_v0 = vmov 0   ;;  %vm182_vm0 = vcmask 130048   ;;  %vm435_vm2 = vcmask 138240   ;;  %s910_s1 = inlined_call_operand.vmem [shape: bf16[144,17], index: 1, kind: input, shape index: {}]   ;;  %s911_s0 = inlined_call_operand.vmem [shape: bf16[128,144], index: 0, kind: input, shape index: {}]   ;;  %s912_s2 = inlined_call_operand.vmem [shape: f32[1,17], index: 2, kind: input, shape index: {}]   ;;  %s913_s3 = inlined_call_operand.vmem [shape: f32[128,17], index: 3, kind: output, shape index: {}]  }
   0x1   :  { %207 = vmatprep.subr.bf16.mxu0 %v622_v0  ;;  %506 = vmatprep.subr.bf16.mxu1 %v622_v0  ;;  %v525_v1 = vld [vmem:[%s910_s1] sm:$0xff]   ;;  %v526_v2 = vld [vmem:[%s910_s1 + $0x8] sm:$0xff]   ;;  %v527_v3 = vld [vmem:[%s910_s1 + $0x10] sm:$0xff]  }
   0x2   :  { %208 = vmatpush1.bf16.msra.mxu0 %v525_v1  ;;  %515 = vmatpush1.bf16.msra.mxu1 %v525_v1  ;;  %v528_v4 = vld [vmem:[%s910_s1 + $0x18] sm:$0xff]   ;;  %v536_v5 = vld [vmem:[%s911_s0 + $0x4] ss:$8 sps:$4 sm:$0xff]   ;;  %v531_v9 = vld [vmem:[%s910_s1 + $0x30] sm:$0xff]  }
   0x3   :  { %209 = vmatprep.subr.bf16.mxu0 %v622_v0  ;;  %507 = vmatprep.subr.bf16.mxu1 %v622_v0  ;;  %v539_v6 = vld [vmem:[%s911_s0 + $0x44] ss:$8 sps:$4 sm:$0xff]   ;;  %v532_v10 = vld [vmem:[%s910_s1 + $0x38] sm:$0xff]   ;;  %v534_v12 = vld [vmem:[%s911_s0] ss:$8 sps:$4 sm:$0xff]  }
   0x4   :  { %482 = vmatprep.mubr.msk.bf16.mxu0 %vm182_vm0, %v536_v5  ;;  %486 = vmatprep.mubr.msk.bf16.mxu1 %vm182_vm0, %v539_v6  ;;  %v529_v7 = vld [vmem:[%s910_s1 + $0x20] sm:$0xff]   ;;  %v530_v8 = vld [vmem:[%s910_s1 + $0x28] sm:$0xff]   ;;  %v540_v14 = vld [vmem:[%s911_s0 + $0x14] ss:$8 sps:$4 sm:$0xff]   ;;  %v304_v6 = vlaneseq }
   0x5   :  { %v533_v11 = vld [vmem:[%s910_s1 + $0x40] sm:$0xff]   ;;  %v542_v15 = vld [vmem:[%s911_s0 + $0x54] ss:$8 sps:$4 sm:$0xff]   ;;  %v544_v16 = vld [vmem:[%s911_s0 + $0x10] ss:$8 sps:$4 sm:$0xff]  }
   0x6   :  { %210 = vmatpush1.bf16.msra.mxu0 %v526_v2  ;;  %516 = vmatpush1.bf16.msra.mxu1 %v526_v2  ;;  %v537_v13 = vld [vmem:[%s911_s0 + $0x40] ss:$8 sps:$4 sm:$0xff]   ;;  %v545_v17 = vld [vmem:[%s911_s0 + $0x50] ss:$8 sps:$4 sm:$0xff]   ;;  %v546_v18 = vld [vmem:[%s911_s0 + $0x24] ss:$8 sps:$4 sm:$0xff]  }
   0x7   :  { %211 = vmatprep.subr.bf16.mxu0 %v622_v0  ;;  %508 = vmatprep.subr.bf16.mxu1 %v622_v0  ;;  %v548_v19 = vld [vmem:[%s911_s0 + $0x64] ss:$8 sps:$4 sm:$0xff]   ;;  %v550_v20 = vld [vmem:[%s911_s0 + $0x20] ss:$8 sps:$4 sm:$0xff]   ;;  %v552_v22 = vld [vmem:[%s911_s0 + $0x34] ss:$8 sps:$4 sm:$0xff]  }
   0x8   :  { %v551_v21 = vld [vmem:[%s911_s0 + $0x60] ss:$8 sps:$4 sm:$0xff]   ;;  %v554_v23 = vld [vmem:[%s911_s0 + $0x74] ss:$8 sps:$4 sm:$0xff]   ;;  %v556_v24 = vld [vmem:[%s911_s0 + $0x30] ss:$8 sps:$4 sm:$0xff]  }
   0x9   :  { %v557_v25 = vld [vmem:[%s911_s0 + $0x70] ss:$8 sps:$4 sm:$0xff]   ;;  %v729_v26 = vld [vmem:[%s912_s2] ss:$0 sm:$0xff] }
   0xa   :  { %212 = vmatpush1.bf16.msra.mxu0 %v527_v3  ;;  %517 = vmatpush1.bf16.msra.mxu1 %v527_v3 }
   0xb   :  { %213 = vmatprep.subr.bf16.mxu0 %v622_v0  ;;  %509 = vmatprep.subr.bf16.mxu1 %v622_v0 }
   0xe   :  { %214 = vmatpush1.bf16.msra.mxu0 %v528_v4  ;;  %518 = vmatpush1.bf16.msra.mxu1 %v528_v4 }
   0xf   :  { %215 = vmatprep.subr.bf16.mxu0 %v622_v0  ;;  %510 = vmatprep.subr.bf16.mxu1 %v622_v0 }
  0x12   :  { %216 = vmatpush1.bf16.msra.mxu0 %v529_v7  ;;  %519 = vmatpush1.bf16.msra.mxu1 %v529_v7 }
  0x13   :  { %217 = vmatprep.subr.bf16.mxu0 %v622_v0  ;;  %511 = vmatprep.subr.bf16.mxu1 %v622_v0 }
  0x16   :  { %218 = vmatpush1.bf16.msra.mxu0 %v530_v8  ;;  %520 = vmatpush1.bf16.msra.mxu1 %v530_v8 }
  0x17   :  { %219 = vmatprep.subr.bf16.mxu0 %v622_v0  ;;  %512 = vmatprep.subr.bf16.mxu1 %v622_v0 }
  0x1a   :  { %220 = vmatpush1.bf16.msra.mxu0 %v531_v9  ;;  %521 = vmatpush1.bf16.msra.mxu1 %v531_v9 }
  0x1b   :  { %221 = vmatprep.subr.bf16.mxu0 %v622_v0  ;;  %513 = vmatprep.subr.bf16.mxu1 %v622_v0 }
  0x1e   :  { %222 = vmatpush1.bf16.msra.mxu0 %v532_v10  ;;  %522 = vmatpush1.bf16.msra.mxu1 %v532_v10 }
  0x1f   :  { %223 = vmatprep.subr.bf16.mxu0 %v622_v0  ;;  %514 = vmatprep.subr.bf16.mxu1 %v622_v0 }
  0x22   :  { %224 = vmatpush1.bf16.msra.mxu0 %v533_v11  ;;  %523 = vmatpush1.bf16.msra.mxu1 %v533_v11 }
  0x25   :  { %240 = vmatmul.mubr.bf16.vlgmr.msra.gmra.mrb[0].mxu0 %v534_v12  ;;  %272 = vmatmul.mubr.bf16.vlgmr.msra.gmra.mrb[0].mxu1 %v537_v13 }
  0x26   :  { %483 = vmatprep.mubr.msk.bf16.mxu0 %vm182_vm0, %v540_v14  ;;  %487 = vmatprep.mubr.msk.bf16.mxu1 %vm182_vm0, %v542_v15 }
  0x2d   :  { %248 = vmatmul.mubr.bf16.gmra.mrb[4].mxu0 %v544_v16  ;;  %280 = vmatmul.mubr.bf16.gmra.mrb[4].mxu1 %v545_v17 }
  0x2e   :  { %484 = vmatprep.mubr.msk.bf16.mxu0 %vm182_vm0, %v546_v18  ;;  %488 = vmatprep.mubr.msk.bf16.mxu1 %vm182_vm0, %v548_v19  ;;  %v777_v18 = vand.u32 127, %v304_v6 }
  0x30   :  { %vm306_vm1 = vcmp.lt.s32.totalorder %v777_v18, 16 }
  0x35   :  { %256 = vmatmul.mubr.bf16.gmra.mrb[8].mxu0 %v550_v20  ;;  %288 = vmatmul.mubr.bf16.gmra.mrb[8].mxu1 %v551_v21 }
  0x36   :  { %485 = vmatprep.mubr.msk.bf16.mxu0 %vm182_vm0, %v552_v22  ;;  %489 = vmatprep.mubr.msk.bf16.mxu1 %vm182_vm0, %v554_v23 }
  0x3d   :  { %264 = vmatmul.mubr.bf16.gmra.mrb[12].mxu0 %v556_v24  ;;  %296 = vmatmul.mubr.bf16.gmra.mrb[12].mxu1 %v557_v25 }
  0xf8   :  { %v241_v27 = vpop.f32.mrb[0].mxu0  ;;  %v273_v28 = vpop.f32.mrb[0].mxu1 }
  0xf9   :  { %v732_v29 = vadd.f32 %v729_v26, %v241_v27  ;;  %v735_v30 = vadd.f32 %v729_v26, %v273_v28  ;;  %v243_v31 = vpop.f32.mrb[1].mxu0  ;;  %v275_v32 = vpop.f32.mrb[1].mxu1 }
  0xfa   :  { %v244_v33 = vpop.f32.mrb[2].mxu0  ;;  %v276_v34 = vpop.f32.mrb[2].mxu1 }
  0xfb   :  { %v490_v35 = vmul.f32 -1.442695, %v732_v29  ;;  %v498_v36 = vmul.f32 -1.442695, %v735_v30  ;;  %v740_v37 = vadd.f32 %v729_v26, %v244_v33  ;;  %v743_v38 = vadd.f32 %v729_v26, %v276_v34  ;;  %v246_v39 = vpop.f32.mrb[3].mxu0  ;;  %v278_v40 = vpop.f32.mrb[3].mxu1 }
  0xfc   :  { %v307_v40 = vmax.f32 %v732_v29, 0.0 }
  0xfd   :  { %558 = vpow2.f32 %v490_v35  ;;  %v491_v41 = vmul.f32 -1.442695, %v740_v37  ;;  %v499_v42 = vmul.f32 -1.442695, %v743_v38 }
  0xfe   :  { %560 = vpow2.f32 %v498_v36 }
  0xff   :  { %562 = vpow2.f32 %v491_v41 }
 0x100   :  { %v249_v43 = vpop.f32.mrb[4].mxu0  ;;  %v281_v44 = vpop.f32.mrb[4].mxu1  ;;  %564 = vpow2.f32 %v499_v42 }
 0x101   :  { %v748_v45 = vadd.f32 %v729_v26, %v249_v43  ;;  %v751_v46 = vadd.f32 %v729_v26, %v281_v44  ;;  %v251_v47 = vpop.f32.mrb[5].mxu0  ;;  %v283_v48 = vpop.f32.mrb[5].mxu1 }
 0x102   :  { %v252_v49 = vpop.f32.mrb[6].mxu0  ;;  %v284_v50 = vpop.f32.mrb[6].mxu1  ;;  %v315_v48 = vmax.f32 %v735_v30, 0.0 }
 0x103   :  { %v492_v51 = vmul.f32 -1.442695, %v748_v45  ;;  %v500_v52 = vmul.f32 -1.442695, %v751_v46  ;;  %v756_v53 = vadd.f32 %v729_v26, %v252_v49  ;;  %v759_v54 = vadd.f32 %v729_v26, %v284_v50  ;;  %v254_v55 = vpop.f32.mrb[7].mxu0  ;;  %v286_v56 = vpop.f32.mrb[7].mxu1 }
 0x104   :  { %v308_v56 = vmax.f32 %v740_v37, 0.0  ;;  %v317_v6 = vmax.f32 %v751_v46, 0.0 }
 0x105   :  { %566 = vpow2.f32 %v492_v51  ;;  %v493_v57 = vmul.f32 -1.442695, %v756_v53  ;;  %v501_v59 = vmul.f32 -1.442695, %v759_v54 }
 0x106   :  { %568 = vpow2.f32 %v500_v52 }
 0x107   :  { %v559_v58 = vpop.eup %558  ;;  %570 = vpow2.f32 %v493_v57 }
 0x108   :  { %v561_v60 = vpop.eup %560  ;;  %v371_v61 = vadd.f32 1.0, %v559_v58  ;;  %v257_v62 = vpop.f32.mrb[8].mxu0  ;;  %572 = vpow2.f32 %v501_v59 }
 0x109   :  { %v289_v63 = vpop.f32.mrb[8].mxu1  ;;  %v379_v0 = vadd.f32 1.0, %v561_v60  ;;  %v764_v1 = vadd.f32 %v729_v26, %v257_v62  ;;  %v259_v3 = vpop.f32.mrb[9].mxu0 }
 0x10a   :  { %v767_v2 = vadd.f32 %v729_v26, %v289_v63  ;;  %v291_v4 = vpop.f32.mrb[9].mxu1  ;;  %v563_v5 = vpop.eup %562  ;;  %574 = vrcp.f32 %v371_v61  ;;  %v309_v3 = vmax.f32 %v748_v45, 0.0 }
 0x10b   :  { %v260_v7 = vpop.f32.mrb[10].mxu0  ;;  %v292_v8 = vpop.f32.mrb[10].mxu1  ;;  %576 = vrcp.f32 %v379_v0  ;;  %v372_v10 = vadd.f32 1.0, %v563_v5  ;;  %v494_v11 = vmul.f32 -1.442695, %v764_v1 }
 0x10c   :  { %v565_v9 = vpop.eup %564  ;;  %v262_v12 = vpop.f32.mrb[11].mxu0  ;;  %v502_v15 = vmul.f32 -1.442695, %v767_v2  ;;  %v772_v16 = vadd.f32 %v729_v26, %v260_v7  ;;  %v775_v17 = vadd.f32 %v729_v26, %v292_v8 }
 0x10d   :  { %v294_v13 = vpop.f32.mrb[11].mxu1  ;;  %v380_v14 = vadd.f32 1.0, %v565_v9  ;;  %578 = vrcp.f32 %v372_v10  ;;  %v318_v12 = vmax.f32 %v759_v54, 0.0 }
 0x10e   :  { %v495_v19 = vmul.f32 -1.442695, %v772_v16  ;;  %v503_v23 = vmul.f32 -1.442695, %v775_v17 }
 0x10f   :  { %580 = vrcp.f32 %v380_v14  ;;  %v567_v20 = vpop.eup %566 }
 0x110   :  { %582 = vpow2.f32 %v494_v11  ;;  %v569_v21 = vpop.eup %568  ;;  %v373_v22 = vadd.f32 1.0, %v567_v20  ;;  %v265_v24 = vpop.f32.mrb[12].mxu0  ;;  %v310_v11 = vmax.f32 %v756_v53, 0.0 }
 0x111   :  { %584 = vpow2.f32 %v502_v15  ;;  %v297_v25 = vpop.f32.mrb[12].mxu1  ;;  %v381_v27 = vadd.f32 1.0, %v569_v21  ;;  %v782_v28 = vadd.f32 %v729_v26, %v265_v24  ;;  %v267_v32 = vpop.f32.mrb[13].mxu0 }
 0x112   :  { %586 = vpow2.f32 %v495_v19  ;;  %v785_v31 = vadd.f32 %v729_v26, %v297_v25  ;;  %v299_v33 = vpop.f32.mrb[13].mxu1  ;;  %v571_v34 = vpop.eup %570  ;;  %v311_v25 = vmax.f32 %v764_v1, 0.0 }
 0x113   :  { %588 = vrcp.f32 %v373_v22  ;;  %v268_v35 = vpop.f32.mrb[14].mxu0  ;;  %v300_v36 = vpop.f32.mrb[14].mxu1  ;;  %v374_v41 = vadd.f32 1.0, %v571_v34  ;;  %v496_v42 = vmul.f32 -1.442695, %v782_v28  ;;  %v319_v33 = vmax.f32 %v767_v2, 0.0 }
 0x114   :  { %v573_v39 = vpop.eup %572  ;;  %590 = vrcp.f32 %v381_v27  ;;  %v270_v43 = vpop.f32.mrb[15].mxu0  ;;  %v504_v50 = vmul.f32 -1.442695, %v785_v31  ;;  %v795_v29 = vadd.f32 %v729_v26, %v268_v35  ;;  %v798_v55 = vadd.f32 %v729_v26, %v300_v36 }
 0x115   :  { %v302_v44 = vpop.f32.mrb[15].mxu1  ;;  %v575_v47 = vpop.eup %574  ;;  %v382_v49 = vadd.f32 1.0, %v573_v39  ;;  %592 = vpow2.f32 %v503_v23  ;;  %v316_v26 = vmax.f32 %v743_v38, 0.0  ;;  %v312_v36 = vmax.f32 %v772_v16, 0.0 }
 0x116   :  { %v577_v51 = vpop.eup %576  ;;  %v419_v52 = vsel %vm306_vm1, %v307_v40, %v575_v47  ;;  %594 = vrcp.f32 %v374_v41  ;;  %v497_v58 = vmul.f32 -1.442695, %v795_v29  ;;  %v505_v61 = vmul.f32 -1.442695, %v798_v55 }
 0x117   :  { %436 = vst.msk [vmem:[%s913_s3] sm:$0xff] %vm435_vm2, %v419_v52  ;;  %v427_v30 = vsel %vm306_vm1, %v315_v48, %v577_v51  ;;  %596 = vrcp.f32 %v382_v49  ;;  %v579_v57 = vpop.eup %578  ;;  %v320_v16 = vmax.f32 %v775_v17, 0.0  ;;  %v321_v44 = vmax.f32 %v785_v31, 0.0 }
 0x118   :  { %444 = vst.msk [vmem:[%s913_s3 + $0x40] sm:$0xff] %vm435_vm2, %v427_v30  ;;  %598 = vpow2.f32 %v496_v42  ;;  %v420_v60 = vsel %vm306_vm1, %v308_v56, %v579_v57  ;;  %v313_v42 = vmax.f32 %v782_v28, 0.0  ;;  %v314_v17 = vmax.f32 %v795_v29, 0.0 }
 0x119   :  { %v581_v59 = vpop.eup %580  ;;  %600 = vpow2.f32 %v504_v50  ;;  %437 = vst.msk [vmem:[%s913_s3 + $0x8] sm:$0xff] %vm435_vm2, %v420_v60  ;;  %v322_v28 = vmax.f32 %v798_v55, 0.0 }
 0x11a   :  { %v583_v37 = vpop.eup %582  ;;  %v428_v62 = vsel %vm306_vm1, %v316_v26, %v581_v59  ;;  %602 = vpow2.f32 %v497_v58 }
 0x11b   :  { %v585_v38 = vpop.eup %584  ;;  %445 = vst.msk [vmem:[%s913_s3 + $0x48] sm:$0xff] %vm435_vm2, %v428_v62  ;;  %v375_v63 = vadd.f32 1.0, %v583_v37  ;;  %604 = vpow2.f32 %v505_v61 }
 0x11c   :  { %v587_v0 = vpop.eup %586  ;;  %v383_v4 = vadd.f32 1.0, %v585_v38 }
 0x11d   :  { %v589_v5 = vpop.eup %588  ;;  %606 = vrcp.f32 %v375_v63  ;;  %v376_v7 = vadd.f32 1.0, %v587_v0 }
 0x11e   :  { %v591_v8 = vpop.eup %590  ;;  %v421_v9 = vsel %vm306_vm1, %v309_v3, %v589_v5  ;;  %608 = vrcp.f32 %v383_v4 }
 0x11f   :  { %v593_v10 = vpop.eup %592  ;;  %438 = vst.msk [vmem:[%s913_s3 + $0x10] sm:$0xff] %vm435_vm2, %v421_v9  ;;  %v429_v45 = vsel %vm306_vm1, %v317_v6, %v591_v8  ;;  %610 = vrcp.f32 %v376_v7 }
 0x120   :  { %v595_v46 = vpop.eup %594  ;;  %446 = vst.msk [vmem:[%s913_s3 + $0x50] sm:$0xff] %vm435_vm2, %v429_v45  ;;  %v384_v13 = vadd.f32 1.0, %v593_v10 }
 0x121   :  { %v597_v14 = vpop.eup %596  ;;  %v422_v15 = vsel %vm306_vm1, %v310_v11, %v595_v46 }
 0x122   :  { %v599_v19 = vpop.eup %598  ;;  %439 = vst.msk [vmem:[%s913_s3 + $0x18] sm:$0xff] %vm435_vm2, %v422_v15  ;;  %v430_v53 = vsel %vm306_vm1, %v318_v12, %v597_v14  ;;  %612 = vrcp.f32 %v384_v13 }
 0x123   :  { %v601_v20 = vpop.eup %600  ;;  %447 = vst.msk [vmem:[%s913_s3 + $0x58] sm:$0xff] %vm435_vm2, %v430_v53  ;;  %v377_v54 = vadd.f32 1.0, %v599_v19 }
 0x124   :  { %v603_v21 = vpop.eup %602  ;;  %v385_v22 = vadd.f32 1.0, %v601_v20 }
 0x125   :  { %v605_v23 = vpop.eup %604  ;;  %614 = vrcp.f32 %v377_v54  ;;  %v378_v24 = vadd.f32 1.0, %v603_v21 }
 0x126   :  { %616 = vrcp.f32 %v385_v22  ;;  %v386_v27 = vadd.f32 1.0, %v605_v23 }
 0x127   :  { %v607_v32 = vpop.eup %606  ;;  %618 = vrcp.f32 %v378_v24 }
 0x128   :  { %v609_v34 = vpop.eup %608  ;;  %v423_v35 = vsel %vm306_vm1, %v311_v25, %v607_v32  ;;  %620 = vrcp.f32 %v386_v27 }
 0x129   :  { %v611_v39 = vpop.eup %610  ;;  %440 = vst.msk [vmem:[%s913_s3 + $0x20] sm:$0xff] %vm435_vm2, %v423_v35  ;;  %v431_v1 = vsel %vm306_vm1, %v319_v33, %v609_v34 }
 0x12a   :  { %448 = vst.msk [vmem:[%s913_s3 + $0x60] sm:$0xff] %vm435_vm2, %v431_v1  ;;  %v424_v2 = vsel %vm306_vm1, %v312_v36, %v611_v39 }
 0x12b   :  { %441 = vst.msk [vmem:[%s913_s3 + $0x28] sm:$0xff] %vm435_vm2, %v424_v2 }
 0x12c   :  { %v613_v40 = vpop.eup %612 }
 0x12d   :  { %v432_v41 = vsel %vm306_vm1, %v320_v16, %v613_v40 }
 0x12e   :  { %449 = vst.msk [vmem:[%s913_s3 + $0x68] sm:$0xff] %vm435_vm2, %v432_v41 }
 0x12f   :  { %v615_v43 = vpop.eup %614 }
 0x130   :  { %v617_v47 = vpop.eup %616  ;;  %v425_v48 = vsel %vm306_vm1, %v313_v42, %v615_v43 }
 0x131   :  { %v619_v49 = vpop.eup %618  ;;  %442 = vst.msk [vmem:[%s913_s3 + $0x30] sm:$0xff] %vm435_vm2, %v425_v48  ;;  %v433_v50 = vsel %vm306_vm1, %v321_v44, %v617_v47 }
 0x132   :  { %v621_v51 = vpop.eup %620  ;;  %450 = vst.msk [vmem:[%s913_s3 + $0x70] sm:$0xff] %vm435_vm2, %v433_v50  ;;  %v426_v31 = vsel %vm306_vm1, %v314_v17, %v619_v49 }
 0x133   :  { %443 = vst.msk [vmem:[%s913_s3 + $0x38] sm:$0xff] %vm435_vm2, %v426_v31  ;;  %v434_v52 = vsel %vm306_vm1, %v322_v28, %v621_v51 }
 0x134   :  { %451 = vst.msk [vmem:[%s913_s3 + $0x78] sm:$0xff] %vm435_vm2, %v434_v52 }

// kernel: mono_depth_inference.18
= control target key start
LH: loop header
LB: loop body
LE: loop exit
PB: predicated region body
PF: predicated region fallthrough
CT: control target
= control target key end

     0   :  { %v1579_v0 = vmov 0   ;;  %vm446_vm0 = vcmask 130048   ;;  %vm1152_vm1 = vcmask 125952   ;;  %s2176_s1 = inlined_call_operand.vmem [shape: bf16[144,16], index: 1, kind: input, shape index: {}]   ;;  %s2177_s0 = inlined_call_operand.vmem [shape: bf16[512,144], index: 0, kind: input, shape index: {}]   ;;  %s2178_s2 = inlined_call_operand.vmem [shape: f32[1,16], index: 2, kind: input, shape index: {}]   ;;  %s2179_s3 = inlined_call_operand.vmem [shape: bf16[512,16], index: 3, kind: output, shape index: {}]  }
   0x1   :  { %543 = vmatprep.subr.bf16.mxu0 %v1579_v0  ;;  %1455 = vmatprep.subr.bf16.mxu1 %v1579_v0  ;;  %v1474_v1 = vld [vmem:[%s2176_s1] sm:$0xff]   ;;  %v1475_v2 = vld [vmem:[%s2176_s1 + $0x8] sm:$0xff]   ;;  %v1476_v3 = vld [vmem:[%s2176_s1 + $0x10] sm:$0xff]  }
   0x2   :  { %544 = vmatpush1.bf16.msra.mxu0 %v1474_v1  ;;  %1464 = vmatpush1.bf16.msra.mxu1 %v1474_v1  ;;  %v1477_v4 = vld [vmem:[%s2176_s1 + $0x18] sm:$0xff]   ;;  %v1485_v5 = vld [vmem:[%s2177_s0 + $0x4] ss:$8 sps:$4 sm:$0xff]   ;;  %v1480_v9 = vld [vmem:[%s2176_s1 + $0x30] sm:$0xff]  }
   0x3   :  { %545 = vmatprep.subr.bf16.mxu0 %v1579_v0  ;;  %1456 = vmatprep.subr.bf16.mxu1 %v1579_v0  ;;  %v1488_v6 = vld [vmem:[%s2177_s0 + $0x104] ss:$8 sps:$4 sm:$0xff]   ;;  %v1481_v10 = vld [vmem:[%s2176_s1 + $0x38] sm:$0xff]   ;;  %v1483_v12 = vld [vmem:[%s2177_s0] ss:$8 sps:$4 sm:$0xff]  }
   0x4   :  { %1295 = vmatprep.mubr.msk.bf16.mxu0 %vm446_vm0, %v1485_v5  ;;  %1311 = vmatprep.mubr.msk.bf16.mxu1 %vm446_vm0, %v1488_v6  ;;  %v1478_v7 = vld [vmem:[%s2176_s1 + $0x20] sm:$0xff]   ;;  %v1479_v8 = vld [vmem:[%s2176_s1 + $0x28] sm:$0xff]   ;;  %v1489_v14 = vld [vmem:[%s2177_s0 + $0x14] ss:$8 sps:$4 sm:$0xff]  }
   0x5   :  { %v1482_v11 = vld [vmem:[%s2176_s1 + $0x40] sm:$0xff]   ;;  %v1491_v15 = vld [vmem:[%s2177_s0 + $0x114] ss:$8 sps:$4 sm:$0xff]   ;;  %v1493_v16 = vld [vmem:[%s2177_s0 + $0x10] ss:$8 sps:$4 sm:$0xff]  }
   0x6   :  { %546 = vmatpush1.bf16.msra.mxu0 %v1475_v2  ;;  %1465 = vmatpush1.bf16.msra.mxu1 %v1475_v2  ;;  %v1486_v13 = vld [vmem:[%s2177_s0 + $0x100] ss:$8 sps:$4 sm:$0xff]   ;;  %v1494_v17 = vld [vmem:[%s2177_s0 + $0x110] ss:$8 sps:$4 sm:$0xff]   ;;  %v1495_v18 = vld [vmem:[%s2177_s0 + $0x24] ss:$8 sps:$4 sm:$0xff]  }
   0x7   :  { %547 = vmatprep.subr.bf16.mxu0 %v1579_v0  ;;  %1457 = vmatprep.subr.bf16.mxu1 %v1579_v0  ;;  %v1497_v19 = vld [vmem:[%s2177_s0 + $0x124] ss:$8 sps:$4 sm:$0xff]   ;;  %v1499_v20 = vld [vmem:[%s2177_s0 + $0x20] ss:$8 sps:$4 sm:$0xff]   ;;  %v1501_v22 = vld [vmem:[%s2177_s0 + $0x34] ss:$8 sps:$4 sm:$0xff]  }
   0x8   :  { %v1500_v21 = vld [vmem:[%s2177_s0 + $0x120] ss:$8 sps:$4 sm:$0xff]   ;;  %v1503_v23 = vld [vmem:[%s2177_s0 + $0x134] ss:$8 sps:$4 sm:$0xff]   ;;  %v1505_v24 = vld [vmem:[%s2177_s0 + $0x30] ss:$8 sps:$4 sm:$0xff]  }
   0x9   :  { %v1506_v25 = vld [vmem:[%s2177_s0 + $0x130] ss:$8 sps:$4 sm:$0xff]   ;;  %v1507_v26 = vld [vmem:[%s2177_s0 + $0x44] ss:$8 sps:$4 sm:$0xff]   ;;  %v1511_v28 = vld [vmem:[%s2177_s0 + $0x40] ss:$8 sps:$4 sm:$0xff]  }
   0xa   :  { %548 = vmatpush1.bf16.msra.mxu0 %v1476_v3  ;;  %1466 = vmatpush1.bf16.msra.mxu1 %v1476_v3  ;;  %v1509_v27 = vld [vmem:[%s2177_s0 + $0x144] ss:$8 sps:$4 sm:$0xff]   ;;  %v1512_v29 = vld [vmem:[%s2177_s0 + $0x140] ss:$8 sps:$4 sm:$0xff]   ;;  %v1513_v30 = vld [vmem:[%s2177_s0 + $0x54] ss:$8 sps:$4 sm:$0xff]  }
   0xb   :  { %549 = vmatprep.subr.bf16.mxu0 %v1579_v0  ;;  %1458 = vmatprep.subr.bf16.mxu1 %v1579_v0  ;;  %v1515_v31 = vld [vmem:[%s2177_s0 + $0x154] ss:$8 sps:$4 sm:$0xff]   ;;  %v1517_v32 = vld [vmem:[%s2177_s0 + $0x50] ss:$8 sps:$4 sm:$0xff]   ;;  %v1519_v34 = vld [vmem:[%s2177_s0 + $0x64] ss:$8 sps:$4 sm:$0xff]  }
   0xc   :  { %v1518_v33 = vld [vmem:[%s2177_s0 + $0x150] ss:$8 sps:$4 sm:$0xff]   ;;  %v1521_v35 = vld [vmem:[%s2177_s0 + $0x164] ss:$8 sps:$4 sm:$0xff]   ;;  %v1523_v36 = vld [vmem:[%s2177_s0 + $0x60] ss:$8 sps:$4 sm:$0xff]  }
   0xd   :  { %v1524_v37 = vld [vmem:[%s2177_s0 + $0x160] ss:$8 sps:$4 sm:$0xff]   ;;  %v1525_v38 = vld [vmem:[%s2177_s0 + $0x74] ss:$8 sps:$4 sm:$0xff]   ;;  %v1529_v40 = vld [vmem:[%s2177_s0 + $0x70] ss:$8 sps:$4 sm:$0xff]  }
   0xe   :  { %550 = vmatpush1.bf16.msra.mxu0 %v1477_v4  ;;  %1467 = vmatpush1.bf16.msra.mxu1 %v1477_v4  ;;  %v1527_v39 = vld [vmem:[%s2177_s0 + $0x174] ss:$8 sps:$4 sm:$0xff]   ;;  %v1530_v41 = vld [vmem:[%s2177_s0 + $0x170] ss:$8 sps:$4 sm:$0xff]   ;;  %v1531_v42 = vld [vmem:[%s2177_s0 + $0x84] ss:$8 sps:$4 sm:$0xff]  }
   0xf   :  { %551 = vmatprep.subr.bf16.mxu0 %v1579_v0  ;;  %1459 = vmatprep.subr.bf16.mxu1 %v1579_v0  ;;  %v1533_v43 = vld [vmem:[%s2177_s0 + $0x184] ss:$8 sps:$4 sm:$0xff]   ;;  %v1535_v44 = vld [vmem:[%s2177_s0 + $0x80] ss:$8 sps:$4 sm:$0xff]   ;;  %v1537_v46 = vld [vmem:[%s2177_s0 + $0x94] ss:$8 sps:$4 sm:$0xff]  }
  0x10   :  { %v1536_v45 = vld [vmem:[%s2177_s0 + $0x180] ss:$8 sps:$4 sm:$0xff]   ;;  %v1539_v47 = vld [vmem:[%s2177_s0 + $0x194] ss:$8 sps:$4 sm:$0xff]   ;;  %v1541_v48 = vld [vmem:[%s2177_s0 + $0x90] ss:$8 sps:$4 sm:$0xff]  }
  0x11   :  { %v1542_v49 = vld [vmem:[%s2177_s0 + $0x190] ss:$8 sps:$4 sm:$0xff]   ;;  %v1543_v50 = vld [vmem:[%s2177_s0 + $0xa4] ss:$8 sps:$4 sm:$0xff]   ;;  %v1547_v52 = vld [vmem:[%s2177_s0 + $0xa0] ss:$8 sps:$4 sm:$0xff]  }
  0x12   :  { %552 = vmatpush1.bf16.msra.mxu0 %v1478_v7  ;;  %1468 = vmatpush1.bf16.msra.mxu1 %v1478_v7  ;;  %v1545_v51 = vld [vmem:[%s2177_s0 + $0x1a4] ss:$8 sps:$4 sm:$0xff]   ;;  %v1548_v53 = vld [vmem:[%s2177_s0 + $0x1a0] ss:$8 sps:$4 sm:$0xff]   ;;  %v1549_v54 = vld [vmem:[%s2177_s0 + $0xb4] ss:$8 sps:$4 sm:$0xff]  }
  0x13   :  { %553 = vmatprep.subr.bf16.mxu0 %v1579_v0  ;;  %1460 = vmatprep.subr.bf16.mxu1 %v1579_v0  ;;  %v1551_v55 = vld [vmem:[%s2177_s0 + $0x1b4] ss:$8 sps:$4 sm:$0xff]   ;;  %v1553_v56 = vld [vmem:[%s2177_s0 + $0xb0] ss:$8 sps:$4 sm:$0xff]   ;;  %v1555_v58 = vld [vmem:[%s2177_s0 + $0xc4] ss:$8 sps:$4 sm:$0xff]  }
  0x14   :  { %v1554_v57 = vld [vmem:[%s2177_s0 + $0x1b0] ss:$8 sps:$4 sm:$0xff]   ;;  %v1557_v59 = vld [vmem:[%s2177_s0 + $0x1c4] ss:$8 sps:$4 sm:$0xff]   ;;  %v1559_v60 = vld [vmem:[%s2177_s0 + $0xc0] ss:$8 sps:$4 sm:$0xff]  }
  0x15   :  { %v1560_v61 = vld [vmem:[%s2177_s0 + $0x1c0] ss:$8 sps:$4 sm:$0xff]   ;;  %v1561_v62 = vld [vmem:[%s2177_s0 + $0xd4] ss:$8 sps:$4 sm:$0xff]   ;;  %v1566_v1 = vld [vmem:[%s2177_s0 + $0x1d0] ss:$8 sps:$4 sm:$0xff]  }
  0x16   :  { %554 = vmatpush1.bf16.msra.mxu0 %v1479_v8  ;;  %1469 = vmatpush1.bf16.msra.mxu1 %v1479_v8  ;;  %v1563_v63 = vld [vmem:[%s2177_s0 + $0x1d4] ss:$8 sps:$4 sm:$0xff]   ;;  %v1567_v2 = vld [vmem:[%s2177_s0 + $0xe4] ss:$8 sps:$4 sm:$0xff]   ;;  %v1571_v4 = vld [vmem:[%s2177_s0 + $0xe0] ss:$8 sps:$4 sm:$0xff]  }
  0x17   :  { %555 = vmatprep.subr.bf16.mxu0 %v1579_v0  ;;  %1461 = vmatprep.subr.bf16.mxu1 %v1579_v0  ;;  %v1569_v3 = vld [vmem:[%s2177_s0 + $0x1e4] ss:$8 sps:$4 sm:$0xff]   ;;  %v1572_v5 = vld [vmem:[%s2177_s0 + $0x1e0] ss:$8 sps:$4 sm:$0xff]   ;;  %v1573_v6 = vld [vmem:[%s2177_s0 + $0xf4] ss:$8 sps:$4 sm:$0xff]  }
  0x18   :  { %v1575_v7 = vld [vmem:[%s2177_s0 + $0x1f4] ss:$8 sps:$4 sm:$0xff]   ;;  %v1577_v8 = vld [vmem:[%s2177_s0 + $0xf0] ss:$8 sps:$4 sm:$0xff]  }
  0x1a   :  { %556 = vmatpush1.bf16.msra.mxu0 %v1480_v9  ;;  %1470 = vmatpush1.bf16.msra.mxu1 %v1480_v9  ;;  %v1578_v9 = vld [vmem:[%s2177_s0 + $0x1f0] ss:$8 sps:$4 sm:$0xff]  }
  0x1b   :  { %557 = vmatprep.subr.bf16.mxu0 %v1579_v0  ;;  %1462 = vmatprep.subr.bf16.mxu1 %v1579_v0 }
  0x1e   :  { %558 = vmatpush1.bf16.msra.mxu0 %v1481_v10  ;;  %1471 = vmatpush1.bf16.msra.mxu1 %v1481_v10  ;;  %v1854_v10 = vld [vmem:[%s2178_s2] ss:$0 sm:$0xff] }
  0x1f   :  { %559 = vmatprep.subr.bf16.mxu0 %v1579_v0  ;;  %1463 = vmatprep.subr.bf16.mxu1 %v1579_v0  ;;  %v1565_v0 = vld [vmem:[%s2177_s0 + $0xd0] ss:$8 sps:$4 sm:$0xff]  }
  0x22   :  { %560 = vmatpush1.bf16.msra.mxu0 %v1482_v11  ;;  %1472 = vmatpush1.bf16.msra.mxu1 %v1482_v11 }
  0x25   :  { %576 = vmatmul.mubr.bf16.vlgmr.msra.gmra.mrb[0].mxu0 %v1483_v12  ;;  %704 = vmatmul.mubr.bf16.vlgmr.msra.gmra.mrb[0].mxu1 %v1486_v13 }
  0x26   :  { %1296 = vmatprep.mubr.msk.bf16.mxu0 %vm446_vm0, %v1489_v14  ;;  %1312 = vmatprep.mubr.msk.bf16.mxu1 %vm446_vm0, %v1491_v15 }
  0x2d   :  { %584 = vmatmul.mubr.bf16.gmra.mrb[4].mxu0 %v1493_v16  ;;  %712 = vmatmul.mubr.bf16.gmra.mrb[4].mxu1 %v1494_v17 }
  0x2e   :  { %1297 = vmatprep.mubr.msk.bf16.mxu0 %vm446_vm0, %v1495_v18  ;;  %1313 = vmatprep.mubr.msk.bf16.mxu1 %vm446_vm0, %v1497_v19 }
  0x35   :  { %592 = vmatmul.mubr.bf16.gmra.mrb[8].mxu0 %v1499_v20  ;;  %720 = vmatmul.mubr.bf16.gmra.mrb[8].mxu1 %v1500_v21 }
  0x36   :  { %1298 = vmatprep.mubr.msk.bf16.mxu0 %vm446_vm0, %v1501_v22  ;;  %1314 = vmatprep.mubr.msk.bf16.mxu1 %vm446_vm0, %v1503_v23 }
  0x3d   :  { %600 = vmatmul.mubr.bf16.gmra.mrb[12].mxu0 %v1505_v24  ;;  %728 = vmatmul.mubr.bf16.gmra.mrb[12].mxu1 %v1506_v25 }
  0x3e   :  { %1299 = vmatprep.mubr.msk.bf16.mxu0 %vm446_vm0, %v1507_v26  ;;  %1315 = vmatprep.mubr.msk.bf16.mxu1 %vm446_vm0, %v1509_v27 }
  0x45   :  { %608 = vmatmul.mubr.bf16.gmra.mrb[16].mxu0 %v1511_v28  ;;  %736 = vmatmul.mubr.bf16.gmra.mrb[16].mxu1 %v1512_v29 }
  0x46   :  { %1300 = vmatprep.mubr.msk.bf16.mxu0 %vm446_vm0, %v1513_v30  ;;  %1316 = vmatprep.mubr.msk.bf16.mxu1 %vm446_vm0, %v1515_v31 }
  0x4d   :  { %616 = vmatmul.mubr.bf16.gmra.mrb[20].mxu0 %v1517_v32  ;;  %744 = vmatmul.mubr.bf16.gmra.mrb[20].mxu1 %v1518_v33 }
  0x4e   :  { %1301 = vmatprep.mubr.msk.bf16.mxu0 %vm446_vm0, %v1519_v34  ;;  %1317 = vmatprep.mubr.msk.bf16.mxu1 %vm446_vm0, %v1521_v35 }
  0x55   :  { %624 = vmatmul.mubr.bf16.gmra.mrb[24].mxu0 %v1523_v36  ;;  %752 = vmatmul.mubr.bf16.gmra.mrb[24].mxu1 %v1524_v37 }
  0x56   :  { %1302 = vmatprep.mubr.msk.bf16.mxu0 %vm446_vm0, %v1525_v38  ;;  %1318 = vmatprep.mubr.msk.bf16.mxu1 %vm446_vm0, %v1527_v39 }
  0x5d   :  { %632 = vmatmul.mubr.bf16.gmra.mrb[28].mxu0 %v1529_v40  ;;  %760 = vmatmul.mubr.bf16.gmra.mrb[28].mxu1 %v1530_v41 }
  0x5e   :  { %1303 = vmatprep.mubr.msk.bf16.mxu0 %vm446_vm0, %v1531_v42  ;;  %1319 = vmatprep.mubr.msk.bf16.mxu1 %vm446_vm0, %v1533_v43 }
  0x65   :  { %640 = vmatmul.mubr.bf16.gmra.mrb[32].mxu0 %v1535_v44  ;;  %768 = vmatmul.mubr.bf16.gmra.mrb[32].mxu1 %v1536_v45 }
  0x66   :  { %1304 = vmatprep.mubr.msk.bf16.mxu0 %vm446_vm0, %v1537_v46  ;;  %1320 = vmatprep.mubr.msk.bf16.mxu1 %vm446_vm0, %v1539_v47 }
  0x6d   :  { %648 = vmatmul.mubr.bf16.gmra.mrb[36].mxu0 %v1541_v48  ;;  %776 = vmatmul.mubr.bf16.gmra.mrb[36].mxu1 %v1542_v49 }
  0x6e   :  { %1305 = vmatprep.mubr.msk.bf16.mxu0 %vm446_vm0, %v1543_v50  ;;  %1321 = vmatprep.mubr.msk.bf16.mxu1 %vm446_vm0, %v1545_v51 }
  0x75   :  { %656 = vmatmul.mubr.bf16.gmra.mrb[40].mxu0 %v1547_v52  ;;  %784 = vmatmul.mubr.bf16.gmra.mrb[40].mxu1 %v1548_v53 }
  0x76   :  { %1306 = vmatprep.mubr.msk.bf16.mxu0 %vm446_vm0, %v1549_v54  ;;  %1322 = vmatprep.mubr.msk.bf16.mxu1 %vm446_vm0, %v1551_v55 }
  0x7d   :  { %664 = vmatmul.mubr.bf16.gmra.mrb[44].mxu0 %v1553_v56  ;;  %792 = vmatmul.mubr.bf16.gmra.mrb[44].mxu1 %v1554_v57 }
  0x7e   :  { %1307 = vmatprep.mubr.msk.bf16.mxu0 %vm446_vm0, %v1555_v58  ;;  %1323 = vmatprep.mubr.msk.bf16.mxu1 %vm446_vm0, %v1557_v59 }
  0x85   :  { %672 = vmatmul.mubr.bf16.gmra.mrb[48].mxu0 %v1559_v60  ;;  %800 = vmatmul.mubr.bf16.gmra.mrb[48].mxu1 %v1560_v61 }
  0x86   :  { %1308 = vmatprep.mubr.msk.bf16.mxu0 %vm446_vm0, %v1561_v62  ;;  %1324 = vmatprep.mubr.msk.bf16.mxu1 %vm446_vm0, %v1563_v63 }
  0x8d   :  { %680 = vmatmul.mubr.bf16.gmra.mrb[52].mxu0 %v1565_v0  ;;  %808 = vmatmul.mubr.bf16.gmra.mrb[52].mxu1 %v1566_v1 }
  0x8e   :  { %1309 = vmatprep.mubr.msk.bf16.mxu0 %vm446_vm0, %v1567_v2  ;;  %1325 = vmatprep.mubr.msk.bf16.mxu1 %vm446_vm0, %v1569_v3 }
  0x95   :  { %688 = vmatmul.mubr.bf16.gmra.mrb[56].mxu0 %v1571_v4  ;;  %816 = vmatmul.mubr.bf16.gmra.mrb[56].mxu1 %v1572_v5 }
  0x96   :  { %1310 = vmatprep.mubr.msk.bf16.mxu0 %vm446_vm0, %v1573_v6  ;;  %1326 = vmatprep.mubr.msk.bf16.mxu1 %vm446_vm0, %v1575_v7 }
  0x9d   :  { %696 = vmatmul.mubr.bf16.gmra.mrb[60].mxu0 %v1577_v8  ;;  %824 = vmatmul.mubr.bf16.gmra.mrb[60].mxu1 %v1578_v9 }
  0xf8   :  { %v577_v11 = vpop.f32.mrb[0].mxu0  ;;  %v705_v12 = vpop.f32.mrb[0].mxu1 }
  0xf9   :  { %v578_v13 = vadd.f32 %v1854_v10, %v577_v11  ;;  %v706_v14 = vadd.f32 %v1854_v10, %v705_v12  ;;  %v579_v15 = vpop.f32.mrb[1].mxu0  ;;  %v707_v16 = vpop.f32.mrb[1].mxu1 }
  0xfa   :  { %v580_v17 = vpop.f32.mrb[2].mxu0  ;;  %v708_v18 = vpop.f32.mrb[2].mxu1 }
  0xfb   :  { %v832_v19 = vmax.f32 %v578_v13, 0.0  ;;  %v864_v20 = vmax.f32 %v706_v14, 0.0  ;;  %v581_v21 = vadd.f32 %v1854_v10, %v580_v17  ;;  %v709_v22 = vadd.f32 %v1854_v10, %v708_v18  ;;  %v582_v23 = vpop.f32.mrb[3].mxu0  ;;  %v710_v24 = vpop.f32.mrb[3].mxu1 }
  0xfd   :  { %v1391_v25 = vpack.c.bf16 %v832_v19, %v832_v19  ;;  %v1423_v26 = vpack.c.bf16 %v864_v20, %v864_v20  ;;  %v833_v27 = vmax.f32 %v581_v21, 0.0  ;;  %v865_v28 = vmax.f32 %v709_v22, 0.0 }
  0xff   :  { %1153 = vst.msk [vmem:[%s2179_s3] sm:$0xf] %vm1152_vm1, %v1391_v25  ;;  %1185 = vst.msk [vmem:[%s2179_s3 + $0x80] sm:$0xf] %vm1152_vm1, %v1423_v26  ;;  %v1392_v29 = vpack.c.bf16 %v833_v27, %v833_v27  ;;  %v1424_v30 = vpack.c.bf16 %v865_v28, %v865_v28 }
 0x100   :  { %v585_v31 = vpop.f32.mrb[4].mxu0  ;;  %v713_v32 = vpop.f32.mrb[4].mxu1 }
 0x101   :  { %1154 = vst.msk [vmem:[%s2179_s3 + $0x4] sm:$0xf] %vm1152_vm1, %v1392_v29  ;;  %1186 = vst.msk [vmem:[%s2179_s3 + $0x84] sm:$0xf] %vm1152_vm1, %v1424_v30  ;;  %v586_v33 = vadd.f32 %v1854_v10, %v585_v31  ;;  %v714_v34 = vadd.f32 %v1854_v10, %v713_v32  ;;  %v587_v35 = vpop.f32.mrb[5].mxu0  ;;  %v715_v36 = vpop.f32.mrb[5].mxu1 }
 0x102   :  { %v588_v37 = vpop.f32.mrb[6].mxu0  ;;  %v716_v38 = vpop.f32.mrb[6].mxu1 }
 0x103   :  { %v834_v39 = vmax.f32 %v586_v33, 0.0  ;;  %v866_v40 = vmax.f32 %v714_v34, 0.0  ;;  %v589_v41 = vadd.f32 %v1854_v10, %v588_v37  ;;  %v717_v42 = vadd.f32 %v1854_v10, %v716_v38  ;;  %v590_v43 = vpop.f32.mrb[7].mxu0  ;;  %v718_v44 = vpop.f32.mrb[7].mxu1 }
 0x105   :  { %v1393_v45 = vpack.c.bf16 %v834_v39, %v834_v39  ;;  %v1425_v46 = vpack.c.bf16 %v866_v40, %v866_v40  ;;  %v835_v47 = vmax.f32 %v589_v41, 0.0  ;;  %v867_v48 = vmax.f32 %v717_v42, 0.0 }
 0x107   :  { %1155 = vst.msk [vmem:[%s2179_s3 + $0x8] sm:$0xf] %vm1152_vm1, %v1393_v45  ;;  %1187 = vst.msk [vmem:[%s2179_s3 + $0x88] sm:$0xf] %vm1152_vm1, %v1425_v46  ;;  %v1394_v49 = vpack.c.bf16 %v835_v47, %v835_v47  ;;  %v1426_v50 = vpack.c.bf16 %v867_v48, %v867_v48 }
 0x108   :  { %v593_v51 = vpop.f32.mrb[8].mxu0  ;;  %v721_v52 = vpop.f32.mrb[8].mxu1 }
 0x109   :  { %1156 = vst.msk [vmem:[%s2179_s3 + $0xc] sm:$0xf] %vm1152_vm1, %v1394_v49  ;;  %1188 = vst.msk [vmem:[%s2179_s3 + $0x8c] sm:$0xf] %vm1152_vm1, %v1426_v50  ;;  %v594_v53 = vadd.f32 %v1854_v10, %v593_v51  ;;  %v722_v54 = vadd.f32 %v1854_v10, %v721_v52  ;;  %v595_v55 = vpop.f32.mrb[9].mxu0  ;;  %v723_v56 = vpop.f32.mrb[9].mxu1 }
 0x10a   :  { %v596_v57 = vpop.f32.mrb[10].mxu0  ;;  %v724_v58 = vpop.f32.mrb[10].mxu1 }
 0x10b   :  { %v836_v59 = vmax.f32 %v594_v53, 0.0  ;;  %v868_v60 = vmax.f32 %v722_v54, 0.0  ;;  %v597_v61 = vadd.f32 %v1854_v10, %v596_v57  ;;  %v725_v62 = vadd.f32 %v1854_v10, %v724_v58  ;;  %v598_v63 = vpop.f32.mrb[11].mxu0  ;;  %v726_v0 = vpop.f32.mrb[11].mxu1 }
 0x10d   :  { %v1395_v1 = vpack.c.bf16 %v836_v59, %v836_v59  ;;  %v1427_v2 = vpack.c.bf16 %v868_v60, %v868_v60  ;;  %v837_v3 = vmax.f32 %v597_v61, 0.0  ;;  %v869_v4 = vmax.f32 %v725_v62, 0.0 }
 0x10f   :  { %1157 = vst.msk [vmem:[%s2179_s3 + $0x10] sm:$0xf] %vm1152_vm1, %v1395_v1  ;;  %1189 = vst.msk [vmem:[%s2179_s3 + $0x90] sm:$0xf] %vm1152_vm1, %v1427_v2  ;;  %v1396_v5 = vpack.c.bf16 %v837_v3, %v837_v3  ;;  %v1428_v6 = vpack.c.bf16 %v869_v4, %v869_v4 }
 0x110   :  { %v601_v7 = vpop.f32.mrb[12].mxu0  ;;  %v729_v8 = vpop.f32.mrb[12].mxu1 }
 0x111   :  { %1158 = vst.msk [vmem:[%s2179_s3 + $0x14] sm:$0xf] %vm1152_vm1, %v1396_v5  ;;  %1190 = vst.msk [vmem:[%s2179_s3 + $0x94] sm:$0xf] %vm1152_vm1, %v1428_v6  ;;  %v602_v9 = vadd.f32 %v1854_v10, %v601_v7  ;;  %v730_v11 = vadd.f32 %v1854_v10, %v729_v8  ;;  %v603_v12 = vpop.f32.mrb[13].mxu0  ;;  %v731_v13 = vpop.f32.mrb[13].mxu1 }
 0x112   :  { %v604_v14 = vpop.f32.mrb[14].mxu0  ;;  %v732_v15 = vpop.f32.mrb[14].mxu1 }
 0x113   :  { %v838_v16 = vmax.f32 %v602_v9, 0.0  ;;  %v870_v17 = vmax.f32 %v730_v11, 0.0  ;;  %v605_v18 = vadd.f32 %v1854_v10, %v604_v14  ;;  %v733_v19 = vadd.f32 %v1854_v10, %v732_v15  ;;  %v606_v20 = vpop.f32.mrb[15].mxu0  ;;  %v734_v21 = vpop.f32.mrb[15].mxu1 }
 0x115   :  { %v1397_v22 = vpack.c.bf16 %v838_v16, %v838_v16  ;;  %v1429_v23 = vpack.c.bf16 %v870_v17, %v870_v17  ;;  %v839_v24 = vmax.f32 %v605_v18, 0.0  ;;  %v871_v25 = vmax.f32 %v733_v19, 0.0 }
 0x117   :  { %1159 = vst.msk [vmem:[%s2179_s3 + $0x18] sm:$0xf] %vm1152_vm1, %v1397_v22  ;;  %1191 = vst.msk [vmem:[%s2179_s3 + $0x98] sm:$0xf] %vm1152_vm1, %v1429_v23  ;;  %v1398_v26 = vpack.c.bf16 %v839_v24, %v839_v24  ;;  %v1430_v27 = vpack.c.bf16 %v871_v25, %v871_v25 }
 0x118   :  { %v609_v28 = vpop.f32.mrb[16].mxu0  ;;  %v737_v29 = vpop.f32.mrb[16].mxu1 }
 0x119   :  { %1160 = vst.msk [vmem:[%s2179_s3 + $0x1c] sm:$0xf] %vm1152_vm1, %v1398_v26  ;;  %1192 = vst.msk [vmem:[%s2179_s3 + $0x9c] sm:$0xf] %vm1152_vm1, %v1430_v27  ;;  %v610_v30 = vadd.f32 %v1854_v10, %v609_v28  ;;  %v738_v31 = vadd.f32 %v1854_v10, %v737_v29  ;;  %v611_v32 = vpop.f32.mrb[17].mxu0  ;;  %v739_v33 = vpop.f32.mrb[17].mxu1 }
 0x11a   :  { %v612_v34 = vpop.f32.mrb[18].mxu0  ;;  %v740_v35 = vpop.f32.mrb[18].mxu1 }
 0x11b   :  { %v840_v36 = vmax.f32 %v610_v30, 0.0  ;;  %v872_v37 = vmax.f32 %v738_v31, 0.0  ;;  %v613_v38 = vadd.f32 %v1854_v10, %v612_v34  ;;  %v741_v39 = vadd.f32 %v1854_v10, %v740_v35  ;;  %v614_v40 = vpop.f32.mrb[19].mxu0  ;;  %v742_v41 = vpop.f32.mrb[19].mxu1 }
 0x11d   :  { %v1399_v42 = vpack.c.bf16 %v840_v36, %v840_v36  ;;  %v1431_v43 = vpack.c.bf16 %v872_v37, %v872_v37  ;;  %v841_v44 = vmax.f32 %v613_v38, 0.0  ;;  %v873_v45 = vmax.f32 %v741_v39, 0.0 }
 0x11f   :  { %1161 = vst.msk [vmem:[%s2179_s3 + $0x20] sm:$0xf] %vm1152_vm1, %v1399_v42  ;;  %1193 = vst.msk [vmem:[%s2179_s3 + $0xa0] sm:$0xf] %vm1152_vm1, %v1431_v43  ;;  %v1400_v46 = vpack.c.bf16 %v841_v44, %v841_v44  ;;  %v1432_v47 = vpack.c.bf16 %v873_v45, %v873_v45 }
 0x120   :  { %v617_v48 = vpop.f32.mrb[20].mxu0  ;;  %v745_v49 = vpop.f32.mrb[20].mxu1 }
 0x121   :  { %1162 = vst.msk [vmem:[%s2179_s3 + $0x24] sm:$0xf] %vm1152_vm1, %v1400_v46  ;;  %1194 = vst.msk [vmem:[%s2179_s3 + $0xa4] sm:$0xf] %vm1152_vm1, %v1432_v47  ;;  %v618_v50 = vadd.f32 %v1854_v10, %v617_v48  ;;  %v746_v51 = vadd.f32 %v1854_v10, %v745_v49  ;;  %v619_v52 = vpop.f32.mrb[21].mxu0  ;;  %v747_v53 = vpop.f32.mrb[21].mxu1 }
 0x122   :  { %v620_v54 = vpop.f32.mrb[22].mxu0  ;;  %v748_v55 = vpop.f32.mrb[22].mxu1 }
 0x123   :  { %v842_v56 = vmax.f32 %v618_v50, 0.0  ;;  %v874_v57 = vmax.f32 %v746_v51, 0.0  ;;  %v621_v58 = vadd.f32 %v1854_v10, %v620_v54  ;;  %v749_v59 = vadd.f32 %v1854_v10, %v748_v55  ;;  %v622_v60 = vpop.f32.mrb[23].mxu0  ;;  %v750_v61 = vpop.f32.mrb[23].mxu1 }
 0x125   :  { %v1401_v62 = vpack.c.bf16 %v842_v56, %v842_v56  ;;  %v1433_v63 = vpack.c.bf16 %v874_v57, %v874_v57  ;;  %v843_v0 = vmax.f32 %v621_v58, 0.0  ;;  %v875_v1 = vmax.f32 %v749_v59, 0.0 }
 0x127   :  { %1163 = vst.msk [vmem:[%s2179_s3 + $0x28] sm:$0xf] %vm1152_vm1, %v1401_v62  ;;  %1195 = vst.msk [vmem:[%s2179_s3 + $0xa8] sm:$0xf] %vm1152_vm1, %v1433_v63  ;;  %v1402_v2 = vpack.c.bf16 %v843_v0, %v843_v0  ;;  %v1434_v3 = vpack.c.bf16 %v875_v1, %v875_v1 }
 0x128   :  { %v625_v4 = vpop.f32.mrb[24].mxu0  ;;  %v753_v5 = vpop.f32.mrb[24].mxu1 }
 0x129   :  { %1164 = vst.msk [vmem:[%s2179_s3 + $0x2c] sm:$0xf] %vm1152_vm1, %v1402_v2  ;;  %1196 = vst.msk [vmem:[%s2179_s3 + $0xac] sm:$0xf] %vm1152_vm1, %v1434_v3  ;;  %v626_v6 = vadd.f32 %v1854_v10, %v625_v4  ;;  %v754_v7 = vadd.f32 %v1854_v10, %v753_v5  ;;  %v627_v8 = vpop.f32.mrb[25].mxu0  ;;  %v755_v9 = vpop.f32.mrb[25].mxu1 }
 0x12a   :  { %v628_v11 = vpop.f32.mrb[26].mxu0  ;;  %v756_v12 = vpop.f32.mrb[26].mxu1 }
 0x12b   :  { %v844_v13 = vmax.f32 %v626_v6, 0.0  ;;  %v876_v14 = vmax.f32 %v754_v7, 0.0  ;;  %v629_v15 = vadd.f32 %v1854_v10, %v628_v11  ;;  %v757_v16 = vadd.f32 %v1854_v10, %v756_v12  ;;  %v630_v17 = vpop.f32.mrb[27].mxu0  ;;  %v758_v18 = vpop.f32.mrb[27].mxu1 }
 0x12d   :  { %v1403_v19 = vpack.c.bf16 %v844_v13, %v844_v13  ;;  %v1435_v20 = vpack.c.bf16 %v876_v14, %v876_v14  ;;  %v845_v21 = vmax.f32 %v629_v15, 0.0  ;;  %v877_v22 = vmax.f32 %v757_v16, 0.0 }
 0x12f   :  { %1165 = vst.msk [vmem:[%s2179_s3 + $0x30] sm:$0xf] %vm1152_vm1, %v1403_v19  ;;  %1197 = vst.msk [vmem:[%s2179_s3 + $0xb0] sm:$0xf] %vm1152_vm1, %v1435_v20  ;;  %v1404_v23 = vpack.c.bf16 %v845_v21, %v845_v21  ;;  %v1436_v24 = vpack.c.bf16 %v877_v22, %v877_v22 }
 0x130   :  { %v633_v25 = vpop.f32.mrb[28].mxu0  ;;  %v761_v26 = vpop.f32.mrb[28].mxu1 }
 0x131   :  { %1166 = vst.msk [vmem:[%s2179_s3 + $0x34] sm:$0xf] %vm1152_vm1, %v1404_v23  ;;  %1198 = vst.msk [vmem:[%s2179_s3 + $0xb4] sm:$0xf] %vm1152_vm1, %v1436_v24  ;;  %v634_v27 = vadd.f32 %v1854_v10, %v633_v25  ;;  %v762_v28 = vadd.f32 %v1854_v10, %v761_v26  ;;  %v635_v29 = vpop.f32.mrb[29].mxu0  ;;  %v763_v30 = vpop.f32.mrb[29].mxu1 }
 0x132   :  { %v636_v31 = vpop.f32.mrb[30].mxu0  ;;  %v764_v32 = vpop.f32.mrb[30].mxu1 }
 0x133   :  { %v846_v33 = vmax.f32 %v634_v27, 0.0  ;;  %v878_v34 = vmax.f32 %v762_v28, 0.0  ;;  %v637_v35 = vadd.f32 %v1854_v10, %v636_v31  ;;  %v765_v36 = vadd.f32 %v1854_v10, %v764_v32  ;;  %v638_v37 = vpop.f32.mrb[31].mxu0  ;;  %v766_v38 = vpop.f32.mrb[31].mxu1 }
 0x135   :  { %v1405_v39 = vpack.c.bf16 %v846_v33, %v846_v33  ;;  %v1437_v40 = vpack.c.bf16 %v878_v34, %v878_v34  ;;  %v847_v41 = vmax.f32 %v637_v35, 0.0  ;;  %v879_v42 = vmax.f32 %v765_v36, 0.0 }
 0x137   :  { %1167 = vst.msk [vmem:[%s2179_s3 + $0x38] sm:$0xf] %vm1152_vm1, %v1405_v39  ;;  %1199 = vst.msk [vmem:[%s2179_s3 + $0xb8] sm:$0xf] %vm1152_vm1, %v1437_v40  ;;  %v1406_v43 = vpack.c.bf16 %v847_v41, %v847_v41  ;;  %v1438_v44 = vpack.c.bf16 %v879_v42, %v879_v42 }
 0x138   :  { %v641_v45 = vpop.f32.mrb[32].mxu0  ;;  %v769_v46 = vpop.f32.mrb[32].mxu1 }
 0x139   :  { %1168 = vst.msk [vmem:[%s2179_s3 + $0x3c] sm:$0xf] %vm1152_vm1, %v1406_v43  ;;  %1200 = vst.msk [vmem:[%s2179_s3 + $0xbc] sm:$0xf] %vm1152_vm1, %v1438_v44  ;;  %v642_v47 = vadd.f32 %v1854_v10, %v641_v45  ;;  %v770_v48 = vadd.f32 %v1854_v10, %v769_v46  ;;  %v643_v49 = vpop.f32.mrb[33].mxu0  ;;  %v771_v50 = vpop.f32.mrb[33].mxu1 }
 0x13a   :  { %v644_v51 = vpop.f32.mrb[34].mxu0  ;;  %v772_v52 = vpop.f32.mrb[34].mxu1 }
 0x13b   :  { %v848_v53 = vmax.f32 %v642_v47, 0.0  ;;  %v880_v54 = vmax.f32 %v770_v48, 0.0  ;;  %v645_v55 = vadd.f32 %v1854_v10, %v644_v51  ;;  %v773_v56 = vadd.f32 %v1854_v10, %v772_v52  ;;  %v646_v57 = vpop.f32.mrb[35].mxu0  ;;  %v774_v58 = vpop.f32.mrb[35].mxu1 }
 0x13d   :  { %v1407_v59 = vpack.c.bf16 %v848_v53, %v848_v53  ;;  %v1439_v60 = vpack.c.bf16 %v880_v54, %v880_v54  ;;  %v849_v61 = vmax.f32 %v645_v55, 0.0  ;;  %v881_v62 = vmax.f32 %v773_v56, 0.0 }
 0x13f   :  { %1169 = vst.msk [vmem:[%s2179_s3 + $0x40] sm:$0xf] %vm1152_vm1, %v1407_v59  ;;  %1201 = vst.msk [vmem:[%s2179_s3 + $0xc0] sm:$0xf] %vm1152_vm1, %v1439_v60  ;;  %v1408_v63 = vpack.c.bf16 %v849_v61, %v849_v61  ;;  %v1440_v0 = vpack.c.bf16 %v881_v62, %v881_v62 }
 0x140   :  { %v649_v1 = vpop.f32.mrb[36].mxu0  ;;  %v777_v2 = vpop.f32.mrb[36].mxu1 }
 0x141   :  { %1170 = vst.msk [vmem:[%s2179_s3 + $0x44] sm:$0xf] %vm1152_vm1, %v1408_v63  ;;  %1202 = vst.msk [vmem:[%s2179_s3 + $0xc4] sm:$0xf] %vm1152_vm1, %v1440_v0  ;;  %v650_v3 = vadd.f32 %v1854_v10, %v649_v1  ;;  %v778_v4 = vadd.f32 %v1854_v10, %v777_v2  ;;  %v651_v5 = vpop.f32.mrb[37].mxu0  ;;  %v779_v6 = vpop.f32.mrb[37].mxu1 }
 0x142   :  { %v652_v7 = vpop.f32.mrb[38].mxu0  ;;  %v780_v8 = vpop.f32.mrb[38].mxu1 }
 0x143   :  { %v850_v9 = vmax.f32 %v650_v3, 0.0  ;;  %v882_v11 = vmax.f32 %v778_v4, 0.0  ;;  %v653_v12 = vadd.f32 %v1854_v10, %v652_v7  ;;  %v781_v13 = vadd.f32 %v1854_v10, %v780_v8  ;;  %v654_v14 = vpop.f32.mrb[39].mxu0  ;;  %v782_v15 = vpop.f32.mrb[39].mxu1 }
 0x145   :  { %v1409_v16 = vpack.c.bf16 %v850_v9, %v850_v9  ;;  %v1441_v17 = vpack.c.bf16 %v882_v11, %v882_v11  ;;  %v851_v18 = vmax.f32 %v653_v12, 0.0  ;;  %v883_v19 = vmax.f32 %v781_v13, 0.0 }
 0x147   :  { %1171 = vst.msk [vmem:[%s2179_s3 + $0x48] sm:$0xf] %vm1152_vm1, %v1409_v16  ;;  %1203 = vst.msk [vmem:[%s2179_s3 + $0xc8] sm:$0xf] %vm1152_vm1, %v1441_v17  ;;  %v1410_v20 = vpack.c.bf16 %v851_v18, %v851_v18  ;;  %v1442_v21 = vpack.c.bf16 %v883_v19, %v883_v19 }
 0x148   :  { %v657_v22 = vpop.f32.mrb[40].mxu0  ;;  %v785_v23 = vpop.f32.mrb[40].mxu1 }
 0x149   :  { %1172 = vst.msk [vmem:[%s2179_s3 + $0x4c] sm:$0xf] %vm1152_vm1, %v1410_v20  ;;  %1204 = vst.msk [vmem:[%s2179_s3 + $0xcc] sm:$0xf] %vm1152_vm1, %v1442_v21  ;;  %v658_v24 = vadd.f32 %v1854_v10, %v657_v22  ;;  %v786_v25 = vadd.f32 %v1854_v10, %v785_v23  ;;  %v659_v26 = vpop.f32.mrb[41].mxu0  ;;  %v787_v27 = vpop.f32.mrb[41].mxu1 }
 0x14a   :  { %v660_v28 = vpop.f32.mrb[42].mxu0  ;;  %v788_v29 = vpop.f32.mrb[42].mxu1 }
 0x14b   :  { %v852_v30 = vmax.f32 %v658_v24, 0.0  ;;  %v884_v31 = vmax.f32 %v786_v25, 0.0  ;;  %v661_v32 = vadd.f32 %v1854_v10, %v660_v28  ;;  %v789_v33 = vadd.f32 %v1854_v10, %v788_v29  ;;  %v662_v34 = vpop.f32.mrb[43].mxu0  ;;  %v790_v35 = vpop.f32.mrb[43].mxu1 }
 0x14d   :  { %v1411_v36 = vpack.c.bf16 %v852_v30, %v852_v30  ;;  %v1443_v37 = vpack.c.bf16 %v884_v31, %v884_v31  ;;  %v853_v38 = vmax.f32 %v661_v32, 0.0  ;;  %v885_v39 = vmax.f32 %v789_v33, 0.0 }
 0x14f   :  { %1173 = vst.msk [vmem:[%s2179_s3 + $0x50] sm:$0xf] %vm1152_vm1, %v1411_v36  ;;  %1205 = vst.msk [vmem:[%s2179_s3 + $0xd0] sm:$0xf] %vm1152_vm1, %v1443_v37  ;;  %v1412_v40 = vpack.c.bf16 %v853_v38, %v853_v38  ;;  %v1444_v41 = vpack.c.bf16 %v885_v39, %v885_v39 }
 0x150   :  { %v665_v42 = vpop.f32.mrb[44].mxu0  ;;  %v793_v43 = vpop.f32.mrb[44].mxu1 }
 0x151   :  { %1174 = vst.msk [vmem:[%s2179_s3 + $0x54] sm:$0xf] %vm1152_vm1, %v1412_v40  ;;  %1206 = vst.msk [vmem:[%s2179_s3 + $0xd4] sm:$0xf] %vm1152_vm1, %v1444_v41  ;;  %v666_v44 = vadd.f32 %v1854_v10, %v665_v42  ;;  %v794_v45 = vadd.f32 %v1854_v10, %v793_v43  ;;  %v667_v46 = vpop.f32.mrb[45].mxu0  ;;  %v795_v47 = vpop.f32.mrb[45].mxu1 }
 0x152   :  { %v668_v48 = vpop.f32.mrb[46].mxu0  ;;  %v796_v49 = vpop.f32.mrb[46].mxu1 }
 0x153   :  { %v854_v50 = vmax.f32 %v666_v44, 0.0  ;;  %v886_v51 = vmax.f32 %v794_v45, 0.0  ;;  %v669_v52 = vadd.f32 %v1854_v10, %v668_v48  ;;  %v797_v53 = vadd.f32 %v1854_v10, %v796_v49  ;;  %v670_v54 = vpop.f32.mrb[47].mxu0  ;;  %v798_v55 = vpop.f32.mrb[47].mxu1 }
 0x155   :  { %v1413_v56 = vpack.c.bf16 %v854_v50, %v854_v50  ;;  %v1445_v57 = vpack.c.bf16 %v886_v51, %v886_v51  ;;  %v855_v58 = vmax.f32 %v669_v52, 0.0  ;;  %v887_v59 = vmax.f32 %v797_v53, 0.0 }
 0x157   :  { %1175 = vst.msk [vmem:[%s2179_s3 + $0x58] sm:$0xf] %vm1152_vm1, %v1413_v56  ;;  %1207 = vst.msk [vmem:[%s2179_s3 + $0xd8] sm:$0xf] %vm1152_vm1, %v1445_v57  ;;  %v1414_v60 = vpack.c.bf16 %v855_v58, %v855_v58  ;;  %v1446_v61 = vpack.c.bf16 %v887_v59, %v887_v59 }
 0x158   :  { %v673_v62 = vpop.f32.mrb[48].mxu0  ;;  %v801_v63 = vpop.f32.mrb[48].mxu1 }
 0x159   :  { %1176 = vst.msk [vmem:[%s2179_s3 + $0x5c] sm:$0xf] %vm1152_vm1, %v1414_v60  ;;  %1208 = vst.msk [vmem:[%s2179_s3 + $0xdc] sm:$0xf] %vm1152_vm1, %v1446_v61  ;;  %v674_v0 = vadd.f32 %v1854_v10, %v673_v62  ;;  %v802_v1 = vadd.f32 %v1854_v10, %v801_v63  ;;  %v675_v2 = vpop.f32.mrb[49].mxu0  ;;  %v803_v3 = vpop.f32.mrb[49].mxu1 }
 0x15a   :  { %v676_v4 = vpop.f32.mrb[50].mxu0  ;;  %v804_v5 = vpop.f32.mrb[50].mxu1 }
 0x15b   :  { %v856_v6 = vmax.f32 %v674_v0, 0.0  ;;  %v888_v7 = vmax.f32 %v802_v1, 0.0  ;;  %v677_v8 = vadd.f32 %v1854_v10, %v676_v4  ;;  %v805_v9 = vadd.f32 %v1854_v10, %v804_v5  ;;  %v678_v11 = vpop.f32.mrb[51].mxu0  ;;  %v806_v12 = vpop.f32.mrb[51].mxu1 }
 0x15d   :  { %v1415_v13 = vpack.c.bf16 %v856_v6, %v856_v6  ;;  %v1447_v14 = vpack.c.bf16 %v888_v7, %v888_v7  ;;  %v857_v15 = vmax.f32 %v677_v8, 0.0  ;;  %v889_v16 = vmax.f32 %v805_v9, 0.0 }
 0x15f   :  { %1177 = vst.msk [vmem:[%s2179_s3 + $0x60] sm:$0xf] %vm1152_vm1, %v1415_v13  ;;  %1209 = vst.msk [vmem:[%s2179_s3 + $0xe0] sm:$0xf] %vm1152_vm1, %v1447_v14  ;;  %v1416_v17 = vpack.c.bf16 %v857_v15, %v857_v15  ;;  %v1448_v18 = vpack.c.bf16 %v889_v16, %v889_v16 }
 0x160   :  { %v681_v19 = vpop.f32.mrb[52].mxu0  ;;  %v809_v20 = vpop.f32.mrb[52].mxu1 }
 0x161   :  { %1178 = vst.msk [vmem:[%s2179_s3 + $0x64] sm:$0xf] %vm1152_vm1, %v1416_v17  ;;  %1210 = vst.msk [vmem:[%s2179_s3 + $0xe4] sm:$0xf] %vm1152_vm1, %v1448_v18  ;;  %v682_v21 = vadd.f32 %v1854_v10, %v681_v19  ;;  %v810_v22 = vadd.f32 %v1854_v10, %v809_v20  ;;  %v683_v23 = vpop.f32.mrb[53].mxu0  ;;  %v811_v24 = vpop.f32.mrb[53].mxu1 }
 0x162   :  { %v684_v25 = vpop.f32.mrb[54].mxu0  ;;  %v812_v26 = vpop.f32.mrb[54].mxu1 }
 0x163   :  { %v858_v27 = vmax.f32 %v682_v21, 0.0  ;;  %v890_v28 = vmax.f32 %v810_v22, 0.0  ;;  %v685_v29 = vadd.f32 %v1854_v10, %v684_v25  ;;  %v813_v30 = vadd.f32 %v1854_v10, %v812_v26  ;;  %v686_v31 = vpop.f32.mrb[55].mxu0  ;;  %v814_v32 = vpop.f32.mrb[55].mxu1 }
 0x165   :  { %v1417_v33 = vpack.c.bf16 %v858_v27, %v858_v27  ;;  %v1449_v34 = vpack.c.bf16 %v890_v28, %v890_v28  ;;  %v859_v35 = vmax.f32 %v685_v29, 0.0  ;;  %v891_v36 = vmax.f32 %v813_v30, 0.0 }
 0x167   :  { %1179 = vst.msk [vmem:[%s2179_s3 + $0x68] sm:$0xf] %vm1152_vm1, %v1417_v33  ;;  %1211 = vst.msk [vmem:[%s2179_s3 + $0xe8] sm:$0xf] %vm1152_vm1, %v1449_v34  ;;  %v1418_v37 = vpack.c.bf16 %v859_v35, %v859_v35  ;;  %v1450_v38 = vpack.c.bf16 %v891_v36, %v891_v36 }
 0x168   :  { %v689_v39 = vpop.f32.mrb[56].mxu0  ;;  %v817_v40 = vpop.f32.mrb[56].mxu1 }
 0x169   :  { %1180 = vst.msk [vmem:[%s2179_s3 + $0x6c] sm:$0xf] %vm1152_vm1, %v1418_v37  ;;  %1212 = vst.msk [vmem:[%s2179_s3 + $0xec] sm:$0xf] %vm1152_vm1, %v1450_v38  ;;  %v690_v41 = vadd.f32 %v1854_v10, %v689_v39  ;;  %v818_v42 = vadd.f32 %v1854_v10, %v817_v40  ;;  %v691_v43 = vpop.f32.mrb[57].mxu0  ;;  %v819_v44 = vpop.f32.mrb[57].mxu1 }
 0x16a   :  { %v692_v45 = vpop.f32.mrb[58].mxu0  ;;  %v820_v46 = vpop.f32.mrb[58].mxu1 }
 0x16b   :  { %v860_v47 = vmax.f32 %v690_v41, 0.0  ;;  %v892_v48 = vmax.f32 %v818_v42, 0.0  ;;  %v693_v49 = vadd.f32 %v1854_v10, %v692_v45  ;;  %v821_v50 = vadd.f32 %v1854_v10, %v820_v46  ;;  %v694_v51 = vpop.f32.mrb[59].mxu0  ;;  %v822_v52 = vpop.f32.mrb[59].mxu1 }
 0x16d   :  { %v1419_v53 = vpack.c.bf16 %v860_v47, %v860_v47  ;;  %v1451_v54 = vpack.c.bf16 %v892_v48, %v892_v48  ;;  %v861_v55 = vmax.f32 %v693_v49, 0.0  ;;  %v893_v56 = vmax.f32 %v821_v50, 0.0 }
 0x16f   :  { %1181 = vst.msk [vmem:[%s2179_s3 + $0x70] sm:$0xf] %vm1152_vm1, %v1419_v53  ;;  %1213 = vst.msk [vmem:[%s2179_s3 + $0xf0] sm:$0xf] %vm1152_vm1, %v1451_v54  ;;  %v1420_v57 = vpack.c.bf16 %v861_v55, %v861_v55  ;;  %v1452_v58 = vpack.c.bf16 %v893_v56, %v893_v56 }
 0x170   :  { %v697_v59 = vpop.f32.mrb[60].mxu0  ;;  %v825_v60 = vpop.f32.mrb[60].mxu1 }
 0x171   :  { %1182 = vst.msk [vmem:[%s2179_s3 + $0x74] sm:$0xf] %vm1152_vm1, %v1420_v57  ;;  %1214 = vst.msk [vmem:[%s2179_s3 + $0xf4] sm:$0xf] %vm1152_vm1, %v1452_v58  ;;  %v698_v61 = vadd.f32 %v1854_v10, %v697_v59  ;;  %v826_v62 = vadd.f32 %v1854_v10, %v825_v60  ;;  %v699_v63 = vpop.f32.mrb[61].mxu0  ;;  %v827_v0 = vpop.f32.mrb[61].mxu1 }
 0x172   :  { %v700_v1 = vpop.f32.mrb[62].mxu0  ;;  %v828_v2 = vpop.f32.mrb[62].mxu1 }
 0x173   :  { %v862_v3 = vmax.f32 %v698_v61, 0.0  ;;  %v894_v4 = vmax.f32 %v826_v62, 0.0  ;;  %v701_v5 = vadd.f32 %v1854_v10, %v700_v1  ;;  %v829_v6 = vadd.f32 %v1854_v10, %v828_v2  ;;  %v702_v7 = vpop.f32.mrb[63].mxu0  ;;  %v830_v8 = vpop.f32.mrb[63].mxu1 }
 0x175   :  { %v1421_v9 = vpack.c.bf16 %v862_v3, %v862_v3  ;;  %v1453_v11 = vpack.c.bf16 %v894_v4, %v894_v4  ;;  %v863_v12 = vmax.f32 %v701_v5, 0.0  ;;  %v895_v13 = vmax.f32 %v829_v6, 0.0 }
 0x177   :  { %1183 = vst.msk [vmem:[%s2179_s3 + $0x78] sm:$0xf] %vm1152_vm1, %v1421_v9  ;;  %1215 = vst.msk [vmem:[%s2179_s3 + $0xf8] sm:$0xf] %vm1152_vm1, %v1453_v11  ;;  %v1422_v14 = vpack.c.bf16 %v863_v12, %v863_v12  ;;  %v1454_v15 = vpack.c.bf16 %v895_v13, %v895_v13 }
 0x179   :  { %1184 = vst.msk [vmem:[%s2179_s3 + $0x7c] sm:$0xf] %vm1152_vm1, %v1422_v14  ;;  %1216 = vst.msk [vmem:[%s2179_s3 + $0xfc] sm:$0xf] %vm1152_vm1, %v1454_v15 }

// kernel: mono_depth_inference.19
= control target key start
LH: loop header
LB: loop body
LE: loop exit
PB: predicated region body
PF: predicated region fallthrough
CT: control target
= control target key end

     0   :  { %v1838_v0 = vmov 0   ;;  %vm448_vm0 = vcmask 130048   ;;  %vm1218_vm1 = vcmask 7168   ;;  %s2437_s1 = inlined_call_operand.vmem [shape: bf16[144,1], index: 1, kind: input, shape index: {}]   ;;  %s2438_s0 = inlined_call_operand.vmem [shape: bf16[512,144], index: 0, kind: input, shape index: {}]   ;;  %s2439_s2 = inlined_call_operand.<no memory space> [shape: f32[1,1], index: 2, kind: input, shape index: {}]   ;;  %s2440_s3 = inlined_call_operand.vmem [shape: f32[512,1], index: 3, kind: output, shape index: {}]  }
   0x1   :  { %545 = vmatprep.subr.bf16.mxu0 %v1838_v0  ;;  %1457 = vmatprep.subr.bf16.mxu1 %v1838_v0  ;;  %v1476_v1 = vld [vmem:[%s2437_s1] sm:$0xff]   ;;  %v1477_v2 = vld [vmem:[%s2437_s1 + $0x8] sm:$0xff]   ;;  %v1478_v3 = vld [vmem:[%s2437_s1 + $0x10] sm:$0xff]   ;;  %v8_v12 = vstv %s2439_s2 }
   0x2   :  { %546 = vmatpush1.bf16.msra.mxu0 %v1476_v1  ;;  %1466 = vmatpush1.bf16.msra.mxu1 %v1476_v1  ;;  %v1479_v4 = vld [vmem:[%s2437_s1 + $0x18] sm:$0xff]   ;;  %v1487_v5 = vld [vmem:[%s2438_s0 + $0x4] ss:$8 sps:$4 sm:$0xff]   ;;  %v1482_v9 = vld [vmem:[%s2437_s1 + $0x30] sm:$0xff]   ;;  %9 = vst [vmem:[#allocation2] sm:$0x1] %v8_v12 }
   0x3   :  { %547 = vmatprep.subr.bf16.mxu0 %v1838_v0  ;;  %1458 = vmatprep.subr.bf16.mxu1 %v1838_v0  ;;  %v1490_v6 = vld [vmem:[%s2438_s0 + $0x104] ss:$8 sps:$4 sm:$0xff]   ;;  %v1483_v10 = vld [vmem:[%s2437_s1 + $0x38] sm:$0xff]   ;;  %v1485_v13 = vld [vmem:[%s2438_s0] ss:$8 sps:$4 sm:$0xff]  }
   0x4   :  { %1361 = vmatprep.mubr.msk.bf16.mxu0 %vm448_vm0, %v1487_v5  ;;  %1377 = vmatprep.mubr.msk.bf16.mxu1 %vm448_vm0, %v1490_v6  ;;  %v1480_v7 = vld [vmem:[%s2437_s1 + $0x20] sm:$0xff]   ;;  %v1481_v8 = vld [vmem:[%s2437_s1 + $0x28] sm:$0xff]   ;;  %v1491_v15 = vld [vmem:[%s2438_s0 + $0x14] ss:$8 sps:$4 sm:$0xff]  }
   0x5   :  { %v1484_v11 = vld [vmem:[%s2437_s1 + $0x40] sm:$0xff]   ;;  %v1493_v16 = vld [vmem:[%s2438_s0 + $0x114] ss:$8 sps:$4 sm:$0xff]   ;;  %v1495_v17 = vld [vmem:[%s2438_s0 + $0x10] ss:$8 sps:$4 sm:$0xff]  }
   0x6   :  { %548 = vmatpush1.bf16.msra.mxu0 %v1477_v2  ;;  %1467 = vmatpush1.bf16.msra.mxu1 %v1477_v2  ;;  %v1488_v14 = vld [vmem:[%s2438_s0 + $0x100] ss:$8 sps:$4 sm:$0xff]   ;;  %v1496_v18 = vld [vmem:[%s2438_s0 + $0x110] ss:$8 sps:$4 sm:$0xff]   ;;  %v1497_v19 = vld [vmem:[%s2438_s0 + $0x24] ss:$8 sps:$4 sm:$0xff]  }
   0x7   :  { %549 = vmatprep.subr.bf16.mxu0 %v1838_v0  ;;  %1459 = vmatprep.subr.bf16.mxu1 %v1838_v0  ;;  %v1499_v20 = vld [vmem:[%s2438_s0 + $0x124] ss:$8 sps:$4 sm:$0xff]   ;;  %v1501_v21 = vld [vmem:[%s2438_s0 + $0x20] ss:$8 sps:$4 sm:$0xff]   ;;  %v1503_v23 = vld [vmem:[%s2438_s0 + $0x34] ss:$8 sps:$4 sm:$0xff]  }
   0x8   :  { %v1502_v22 = vld [vmem:[%s2438_s0 + $0x120] ss:$8 sps:$4 sm:$0xff]   ;;  %v1505_v24 = vld [vmem:[%s2438_s0 + $0x134] ss:$8 sps:$4 sm:$0xff]   ;;  %v1507_v25 = vld [vmem:[%s2438_s0 + $0x30] ss:$8 sps:$4 sm:$0xff]  }
   0x9   :  { %v1508_v26 = vld [vmem:[%s2438_s0 + $0x130] ss:$8 sps:$4 sm:$0xff]   ;;  %v1509_v27 = vld [vmem:[%s2438_s0 + $0x44] ss:$8 sps:$4 sm:$0xff]   ;;  %v1513_v29 = vld [vmem:[%s2438_s0 + $0x40] ss:$8 sps:$4 sm:$0xff]  }
   0xa   :  { %550 = vmatpush1.bf16.msra.mxu0 %v1478_v3  ;;  %1468 = vmatpush1.bf16.msra.mxu1 %v1478_v3  ;;  %v1511_v28 = vld [vmem:[%s2438_s0 + $0x144] ss:$8 sps:$4 sm:$0xff]   ;;  %v1514_v30 = vld [vmem:[%s2438_s0 + $0x140] ss:$8 sps:$4 sm:$0xff]   ;;  %v1515_v31 = vld [vmem:[%s2438_s0 + $0x54] ss:$8 sps:$4 sm:$0xff]  }
   0xb   :  { %551 = vmatprep.subr.bf16.mxu0 %v1838_v0  ;;  %1460 = vmatprep.subr.bf16.mxu1 %v1838_v0  ;;  %v1517_v32 = vld [vmem:[%s2438_s0 + $0x154] ss:$8 sps:$4 sm:$0xff]   ;;  %v1519_v33 = vld [vmem:[%s2438_s0 + $0x50] ss:$8 sps:$4 sm:$0xff]   ;;  %v1521_v35 = vld [vmem:[%s2438_s0 + $0x64] ss:$8 sps:$4 sm:$0xff]  }
   0xc   :  { %v1520_v34 = vld [vmem:[%s2438_s0 + $0x150] ss:$8 sps:$4 sm:$0xff]   ;;  %v1523_v36 = vld [vmem:[%s2438_s0 + $0x164] ss:$8 sps:$4 sm:$0xff]   ;;  %v1525_v37 = vld [vmem:[%s2438_s0 + $0x60] ss:$8 sps:$4 sm:$0xff]  }
   0xd   :  { %v1526_v38 = vld [vmem:[%s2438_s0 + $0x160] ss:$8 sps:$4 sm:$0xff]   ;;  %v1527_v39 = vld [vmem:[%s2438_s0 + $0x74] ss:$8 sps:$4 sm:$0xff]   ;;  %v1531_v41 = vld [vmem:[%s2438_s0 + $0x70] ss:$8 sps:$4 sm:$0xff]  }
   0xe   :  { %552 = vmatpush1.bf16.msra.mxu0 %v1479_v4  ;;  %1469 = vmatpush1.bf16.msra.mxu1 %v1479_v4  ;;  %v1529_v40 = vld [vmem:[%s2438_s0 + $0x174] ss:$8 sps:$4 sm:$0xff]   ;;  %v1532_v42 = vld [vmem:[%s2438_s0 + $0x170] ss:$8 sps:$4 sm:$0xff]   ;;  %v1533_v43 = vld [vmem:[%s2438_s0 + $0x84] ss:$8 sps:$4 sm:$0xff]  }
   0xf   :  { %553 = vmatprep.subr.bf16.mxu0 %v1838_v0  ;;  %1461 = vmatprep.subr.bf16.mxu1 %v1838_v0  ;;  %v1535_v44 = vld [vmem:[%s2438_s0 + $0x184] ss:$8 sps:$4 sm:$0xff]   ;;  %v1537_v45 = vld [vmem:[%s2438_s0 + $0x80] ss:$8 sps:$4 sm:$0xff]   ;;  %v1539_v47 = vld [vmem:[%s2438_s0 + $0x94] ss:$8 sps:$4 sm:$0xff]  }
  0x10   :  { %v1538_v46 = vld [vmem:[%s2438_s0 + $0x180] ss:$8 sps:$4 sm:$0xff]   ;;  %v1541_v48 = vld [vmem:[%s2438_s0 + $0x194] ss:$8 sps:$4 sm:$0xff]   ;;  %v1543_v49 = vld [vmem:[%s2438_s0 + $0x90] ss:$8 sps:$4 sm:$0xff]  }
  0x11   :  { %v1544_v50 = vld [vmem:[%s2438_s0 + $0x190] ss:$8 sps:$4 sm:$0xff]   ;;  %v1545_v51 = vld [vmem:[%s2438_s0 + $0xa4] ss:$8 sps:$4 sm:$0xff]   ;;  %v1549_v53 = vld [vmem:[%s2438_s0 + $0xa0] ss:$8 sps:$4 sm:$0xff]  }
  0x12   :  { %554 = vmatpush1.bf16.msra.mxu0 %v1480_v7  ;;  %1470 = vmatpush1.bf16.msra.mxu1 %v1480_v7  ;;  %v1547_v52 = vld [vmem:[%s2438_s0 + $0x1a4] ss:$8 sps:$4 sm:$0xff]   ;;  %v1550_v54 = vld [vmem:[%s2438_s0 + $0x1a0] ss:$8 sps:$4 sm:$0xff]   ;;  %v1551_v55 = vld [vmem:[%s2438_s0 + $0xb4] ss:$8 sps:$4 sm:$0xff]  }
  0x13   :  { %555 = vmatprep.subr.bf16.mxu0 %v1838_v0  ;;  %1462 = vmatprep.subr.bf16.mxu1 %v1838_v0  ;;  %v1553_v56 = vld [vmem:[%s2438_s0 + $0x1b4] ss:$8 sps:$4 sm:$0xff]   ;;  %v1555_v57 = vld [vmem:[%s2438_s0 + $0xb0] ss:$8 sps:$4 sm:$0xff]   ;;  %v1557_v59 = vld [vmem:[%s2438_s0 + $0xc4] ss:$8 sps:$4 sm:$0xff]  }
  0x14   :  { %v1556_v58 = vld [vmem:[%s2438_s0 + $0x1b0] ss:$8 sps:$4 sm:$0xff]   ;;  %v1559_v60 = vld [vmem:[%s2438_s0 + $0x1c4] ss:$8 sps:$4 sm:$0xff]   ;;  %v1561_v61 = vld [vmem:[%s2438_s0 + $0xc0] ss:$8 sps:$4 sm:$0xff]  }
  0x15   :  { %v1562_v62 = vld [vmem:[%s2438_s0 + $0x1c0] ss:$8 sps:$4 sm:$0xff]   ;;  %v1563_v63 = vld [vmem:[%s2438_s0 + $0xd4] ss:$8 sps:$4 sm:$0xff]   ;;  %v1567_v1 = vld [vmem:[%s2438_s0 + $0xd0] ss:$8 sps:$4 sm:$0xff]  }
  0x16   :  { %556 = vmatpush1.bf16.msra.mxu0 %v1481_v8  ;;  %1471 = vmatpush1.bf16.msra.mxu1 %v1481_v8  ;;  %v1568_v2 = vld [vmem:[%s2438_s0 + $0x1d0] ss:$8 sps:$4 sm:$0xff]   ;;  %v1569_v3 = vld [vmem:[%s2438_s0 + $0xe4] ss:$8 sps:$4 sm:$0xff]   ;;  %v1573_v5 = vld [vmem:[%s2438_s0 + $0xe0] ss:$8 sps:$4 sm:$0xff]  }
  0x17   :  { %557 = vmatprep.subr.bf16.mxu0 %v1838_v0  ;;  %1463 = vmatprep.subr.bf16.mxu1 %v1838_v0  ;;  %v1571_v4 = vld [vmem:[%s2438_s0 + $0x1e4] ss:$8 sps:$4 sm:$0xff]   ;;  %v1574_v6 = vld [vmem:[%s2438_s0 + $0x1e0] ss:$8 sps:$4 sm:$0xff]   ;;  %v1575_v7 = vld [vmem:[%s2438_s0 + $0xf4] ss:$8 sps:$4 sm:$0xff]  }
  0x18   :  { %v1577_v8 = vld [vmem:[%s2438_s0 + $0x1f4] ss:$8 sps:$4 sm:$0xff]  }
  0x1a   :  { %558 = vmatpush1.bf16.msra.mxu0 %v1482_v9  ;;  %1472 = vmatpush1.bf16.msra.mxu1 %v1482_v9  ;;  %v1579_v9 = vld [vmem:[%s2438_s0 + $0xf0] ss:$8 sps:$4 sm:$0xff]  }
  0x1b   :  { %559 = vmatprep.subr.bf16.mxu0 %v1838_v0  ;;  %1464 = vmatprep.subr.bf16.mxu1 %v1838_v0 }
  0x1e   :  { %560 = vmatpush1.bf16.msra.mxu0 %v1483_v10  ;;  %1473 = vmatpush1.bf16.msra.mxu1 %v1483_v10  ;;  %v1580_v10 = vld [vmem:[%s2438_s0 + $0x1f0] ss:$8 sps:$4 sm:$0xff]  }
  0x1f   :  { %561 = vmatprep.subr.bf16.mxu0 %v1838_v0  ;;  %1465 = vmatprep.subr.bf16.mxu1 %v1838_v0  ;;  %v1565_v0 = vld [vmem:[%s2438_s0 + $0x1d4] ss:$8 sps:$4 sm:$0xff]  }
  0x22   :  { %562 = vmatpush1.bf16.msra.mxu0 %v1484_v11  ;;  %1474 = vmatpush1.bf16.msra.mxu1 %v1484_v11  ;;  %v2113_v11 = vld [vmem:[#allocation2] ss:$0 sm:$0xff] }
  0x25   :  { %578 = vmatmul.mubr.bf16.vlgmr.msra.gmra.mrb[0].mxu0 %v1485_v13  ;;  %706 = vmatmul.mubr.bf16.vlgmr.msra.gmra.mrb[0].mxu1 %v1488_v14 }
  0x26   :  { %1362 = vmatprep.mubr.msk.bf16.mxu0 %vm448_vm0, %v1491_v15  ;;  %1378 = vmatprep.mubr.msk.bf16.mxu1 %vm448_vm0, %v1493_v16 }
  0x2d   :  { %586 = vmatmul.mubr.bf16.gmra.mrb[4].mxu0 %v1495_v17  ;;  %714 = vmatmul.mubr.bf16.gmra.mrb[4].mxu1 %v1496_v18 }
  0x2e   :  { %1363 = vmatprep.mubr.msk.bf16.mxu0 %vm448_vm0, %v1497_v19  ;;  %1379 = vmatprep.mubr.msk.bf16.mxu1 %vm448_vm0, %v1499_v20 }
  0x35   :  { %594 = vmatmul.mubr.bf16.gmra.mrb[8].mxu0 %v1501_v21  ;;  %722 = vmatmul.mubr.bf16.gmra.mrb[8].mxu1 %v1502_v22 }
  0x36   :  { %1364 = vmatprep.mubr.msk.bf16.mxu0 %vm448_vm0, %v1503_v23  ;;  %1380 = vmatprep.mubr.msk.bf16.mxu1 %vm448_vm0, %v1505_v24 }
  0x3d   :  { %602 = vmatmul.mubr.bf16.gmra.mrb[12].mxu0 %v1507_v25  ;;  %730 = vmatmul.mubr.bf16.gmra.mrb[12].mxu1 %v1508_v26 }
  0x3e   :  { %1365 = vmatprep.mubr.msk.bf16.mxu0 %vm448_vm0, %v1509_v27  ;;  %1381 = vmatprep.mubr.msk.bf16.mxu1 %vm448_vm0, %v1511_v28 }
  0x45   :  { %610 = vmatmul.mubr.bf16.gmra.mrb[16].mxu0 %v1513_v29  ;;  %738 = vmatmul.mubr.bf16.gmra.mrb[16].mxu1 %v1514_v30 }
  0x46   :  { %1366 = vmatprep.mubr.msk.bf16.mxu0 %vm448_vm0, %v1515_v31  ;;  %1382 = vmatprep.mubr.msk.bf16.mxu1 %vm448_vm0, %v1517_v32 }
  0x4d   :  { %618 = vmatmul.mubr.bf16.gmra.mrb[20].mxu0 %v1519_v33  ;;  %746 = vmatmul.mubr.bf16.gmra.mrb[20].mxu1 %v1520_v34 }
  0x4e   :  { %1367 = vmatprep.mubr.msk.bf16.mxu0 %vm448_vm0, %v1521_v35  ;;  %1383 = vmatprep.mubr.msk.bf16.mxu1 %vm448_vm0, %v1523_v36 }
  0x55   :  { %626 = vmatmul.mubr.bf16.gmra.mrb[24].mxu0 %v1525_v37  ;;  %754 = vmatmul.mubr.bf16.gmra.mrb[24].mxu1 %v1526_v38 }
  0x56   :  { %1368 = vmatprep.mubr.msk.bf16.mxu0 %vm448_vm0, %v1527_v39  ;;  %1384 = vmatprep.mubr.msk.bf16.mxu1 %vm448_vm0, %v1529_v40 }
  0x5d   :  { %634 = vmatmul.mubr.bf16.gmra.mrb[28].mxu0 %v1531_v41  ;;  %762 = vmatmul.mubr.bf16.gmra.mrb[28].mxu1 %v1532_v42 }
  0x5e   :  { %1369 = vmatprep.mubr.msk.bf16.mxu0 %vm448_vm0, %v1533_v43  ;;  %1385 = vmatprep.mubr.msk.bf16.mxu1 %vm448_vm0, %v1535_v44 }
  0x65   :  { %642 = vmatmul.mubr.bf16.gmra.mrb[32].mxu0 %v1537_v45  ;;  %770 = vmatmul.mubr.bf16.gmra.mrb[32].mxu1 %v1538_v46 }
  0x66   :  { %1370 = vmatprep.mubr.msk.bf16.mxu0 %vm448_vm0, %v1539_v47  ;;  %1386 = vmatprep.mubr.msk.bf16.mxu1 %vm448_vm0, %v1541_v48 }
  0x6d   :  { %650 = vmatmul.mubr.bf16.gmra.mrb[36].mxu0 %v1543_v49  ;;  %778 = vmatmul.mubr.bf16.gmra.mrb[36].mxu1 %v1544_v50 }
  0x6e   :  { %1371 = vmatprep.mubr.msk.bf16.mxu0 %vm448_vm0, %v1545_v51  ;;  %1387 = vmatprep.mubr.msk.bf16.mxu1 %vm448_vm0, %v1547_v52 }
  0x75   :  { %658 = vmatmul.mubr.bf16.gmra.mrb[40].mxu0 %v1549_v53  ;;  %786 = vmatmul.mubr.bf16.gmra.mrb[40].mxu1 %v1550_v54 }
  0x76   :  { %1372 = vmatprep.mubr.msk.bf16.mxu0 %vm448_vm0, %v1551_v55  ;;  %1388 = vmatprep.mubr.msk.bf16.mxu1 %vm448_vm0, %v1553_v56 }
  0x7d   :  { %666 = vmatmul.mubr.bf16.gmra.mrb[44].mxu0 %v1555_v57  ;;  %794 = vmatmul.mubr.bf16.gmra.mrb[44].mxu1 %v1556_v58 }
  0x7e   :  { %1373 = vmatprep.mubr.msk.bf16.mxu0 %vm448_vm0, %v1557_v59  ;;  %1389 = vmatprep.mubr.msk.bf16.mxu1 %vm448_vm0, %v1559_v60 }
  0x85   :  { %674 = vmatmul.mubr.bf16.gmra.mrb[48].mxu0 %v1561_v61  ;;  %802 = vmatmul.mubr.bf16.gmra.mrb[48].mxu1 %v1562_v62 }
  0x86   :  { %1374 = vmatprep.mubr.msk.bf16.mxu0 %vm448_vm0, %v1563_v63  ;;  %1390 = vmatprep.mubr.msk.bf16.mxu1 %vm448_vm0, %v1565_v0 }
  0x8d   :  { %682 = vmatmul.mubr.bf16.gmra.mrb[52].mxu0 %v1567_v1  ;;  %810 = vmatmul.mubr.bf16.gmra.mrb[52].mxu1 %v1568_v2 }
  0x8e   :  { %1375 = vmatprep.mubr.msk.bf16.mxu0 %vm448_vm0, %v1569_v3  ;;  %1391 = vmatprep.mubr.msk.bf16.mxu1 %vm448_vm0, %v1571_v4 }
  0x95   :  { %690 = vmatmul.mubr.bf16.gmra.mrb[56].mxu0 %v1573_v5  ;;  %818 = vmatmul.mubr.bf16.gmra.mrb[56].mxu1 %v1574_v6 }
  0x96   :  { %1376 = vmatprep.mubr.msk.bf16.mxu0 %vm448_vm0, %v1575_v7  ;;  %1392 = vmatprep.mubr.msk.bf16.mxu1 %vm448_vm0, %v1577_v8 }
  0x9d   :  { %698 = vmatmul.mubr.bf16.gmra.mrb[60].mxu0 %v1579_v9  ;;  %826 = vmatmul.mubr.bf16.gmra.mrb[60].mxu1 %v1580_v10 }
  0xf8   :  { %v579_v12 = vpop.f32.mrb[0].mxu0  ;;  %v707_v13 = vpop.f32.mrb[0].mxu1 }
  0xf9   :  { %v580_v14 = vadd.f32 %v2113_v11, %v579_v12  ;;  %v708_v15 = vadd.f32 %v2113_v11, %v707_v13  ;;  %v581_v16 = vpop.f32.mrb[1].mxu0  ;;  %v709_v17 = vpop.f32.mrb[1].mxu1 }
  0xfa   :  { %v582_v18 = vpop.f32.mrb[2].mxu0  ;;  %v710_v19 = vpop.f32.mrb[2].mxu1 }
  0xfb   :  { %v1393_v20 = vmul.f32 -1.442695, %v580_v14  ;;  %v1425_v21 = vmul.f32 -1.442695, %v708_v15  ;;  %v583_v22 = vadd.f32 %v2113_v11, %v582_v18  ;;  %v711_v23 = vadd.f32 %v2113_v11, %v710_v19  ;;  %v584_v24 = vpop.f32.mrb[3].mxu0  ;;  %v712_v25 = vpop.f32.mrb[3].mxu1 }
  0xfd   :  { %1581 = vpow2.f32 %v1393_v20  ;;  %v1394_v26 = vmul.f32 -1.442695, %v583_v22  ;;  %v1426_v27 = vmul.f32 -1.442695, %v711_v23 }
  0xfe   :  { %1583 = vpow2.f32 %v1425_v21 }
  0xff   :  { %1585 = vpow2.f32 %v1394_v26 }
 0x100   :  { %1587 = vpow2.f32 %v1426_v27  ;;  %v587_v28 = vpop.f32.mrb[4].mxu0  ;;  %v715_v29 = vpop.f32.mrb[4].mxu1 }
 0x101   :  { %v588_v30 = vadd.f32 %v2113_v11, %v587_v28  ;;  %v716_v31 = vadd.f32 %v2113_v11, %v715_v29  ;;  %v589_v32 = vpop.f32.mrb[5].mxu0  ;;  %v717_v33 = vpop.f32.mrb[5].mxu1 }
 0x102   :  { %v590_v34 = vpop.f32.mrb[6].mxu0  ;;  %v718_v35 = vpop.f32.mrb[6].mxu1 }
 0x103   :  { %v1395_v36 = vmul.f32 -1.442695, %v588_v30  ;;  %v1427_v37 = vmul.f32 -1.442695, %v716_v31  ;;  %v591_v38 = vadd.f32 %v2113_v11, %v590_v34  ;;  %v719_v39 = vadd.f32 %v2113_v11, %v718_v35  ;;  %v592_v40 = vpop.f32.mrb[7].mxu0  ;;  %v720_v41 = vpop.f32.mrb[7].mxu1 }
 0x105   :  { %1589 = vpow2.f32 %v1395_v36  ;;  %v1396_v42 = vmul.f32 -1.442695, %v591_v38  ;;  %v1428_v43 = vmul.f32 -1.442695, %v719_v39 }
 0x106   :  { %1591 = vpow2.f32 %v1427_v37 }
 0x107   :  { %v1582_v44 = vpop.eup %1581  ;;  %1593 = vpow2.f32 %v1396_v42 }
 0x108   :  { %v1584_v45 = vpop.eup %1583  ;;  %v1026_v46 = vadd.f32 1.0, %v1582_v44  ;;  %1595 = vpow2.f32 %v1428_v43  ;;  %v595_v47 = vpop.f32.mrb[8].mxu0 }
 0x109   :  { %v723_v48 = vpop.f32.mrb[8].mxu1  ;;  %v1586_v49 = vpop.eup %1585  ;;  %v1058_v50 = vadd.f32 1.0, %v1584_v45  ;;  %v596_v51 = vadd.f32 %v2113_v11, %v595_v47 }
 0x10a   :  { %v724_v52 = vadd.f32 %v2113_v11, %v723_v48  ;;  %v597_v53 = vpop.f32.mrb[9].mxu0  ;;  %v725_v54 = vpop.f32.mrb[9].mxu1  ;;  %1597 = vrcp.f32 %v1026_v46  ;;  %v1027_v56 = vadd.f32 1.0, %v1586_v49 }
 0x10b   :  { %v1588_v55 = vpop.eup %1587  ;;  %v598_v57 = vpop.f32.mrb[10].mxu0  ;;  %1599 = vrcp.f32 %v1058_v50  ;;  %v1397_v60 = vmul.f32 -1.442695, %v596_v51 }
 0x10c   :  { %v726_v58 = vpop.f32.mrb[10].mxu1  ;;  %v1059_v59 = vadd.f32 1.0, %v1588_v55  ;;  %v1429_v61 = vmul.f32 -1.442695, %v724_v52  ;;  %v600_v62 = vpop.f32.mrb[11].mxu0  ;;  %1601 = vrcp.f32 %v1027_v56  ;;  %v599_v63 = vadd.f32 %v2113_v11, %v598_v57 }
 0x10d   :  { %v727_v0 = vadd.f32 %v2113_v11, %v726_v58  ;;  %v728_v1 = vpop.f32.mrb[11].mxu1 }
 0x10e   :  { %1603 = vrcp.f32 %v1059_v59  ;;  %v1398_v2 = vmul.f32 -1.442695, %v599_v63 }
 0x10f   :  { %1605 = vpow2.f32 %v1397_v60  ;;  %v1430_v3 = vmul.f32 -1.442695, %v727_v0  ;;  %v1590_v4 = vpop.eup %1589 }
 0x110   :  { %1607 = vpow2.f32 %v1429_v61  ;;  %v1592_v5 = vpop.eup %1591  ;;  %v1028_v6 = vadd.f32 1.0, %v1590_v4  ;;  %v603_v7 = vpop.f32.mrb[12].mxu0 }
 0x111   :  { %1609 = vpow2.f32 %v1398_v2  ;;  %v731_v8 = vpop.f32.mrb[12].mxu1  ;;  %v1594_v9 = vpop.eup %1593  ;;  %v1060_v10 = vadd.f32 1.0, %v1592_v5  ;;  %v604_v12 = vadd.f32 %v2113_v11, %v603_v7 }
 0x112   :  { %1611 = vpow2.f32 %v1430_v3  ;;  %v732_v13 = vadd.f32 %v2113_v11, %v731_v8  ;;  %v605_v14 = vpop.f32.mrb[13].mxu0  ;;  %v733_v15 = vpop.f32.mrb[13].mxu1  ;;  %v1029_v17 = vadd.f32 1.0, %v1594_v9 }
 0x113   :  { %v1596_v16 = vpop.eup %1595  ;;  %1613 = vrcp.f32 %v1028_v6  ;;  %v606_v18 = vpop.f32.mrb[14].mxu0  ;;  %v1399_v21 = vmul.f32 -1.442695, %v604_v12 }
 0x114   :  { %v734_v19 = vpop.f32.mrb[14].mxu1  ;;  %1615 = vrcp.f32 %v1060_v10  ;;  %v1061_v20 = vadd.f32 1.0, %v1596_v16  ;;  %v1431_v22 = vmul.f32 -1.442695, %v732_v13  ;;  %v608_v23 = vpop.f32.mrb[15].mxu0  ;;  %v607_v25 = vadd.f32 %v2113_v11, %v606_v18 }
 0x115   :  { %v1598_v24 = vpop.eup %1597  ;;  %1617 = vrcp.f32 %v1029_v17  ;;  %v735_v26 = vadd.f32 %v2113_v11, %v734_v19  ;;  %v736_v27 = vpop.f32.mrb[15].mxu1 }
 0x116   :  { %v1600_v28 = vpop.eup %1599  ;;  %1219 = vst.msk [vmem:[%s2440_s3] sm:$0xff] %vm1218_vm1, %v1598_v24  ;;  %1619 = vrcp.f32 %v1061_v20  ;;  %v1400_v30 = vmul.f32 -1.442695, %v607_v25 }
 0x117   :  { %v1602_v29 = vpop.eup %1601  ;;  %1251 = vst.msk [vmem:[%s2440_s3 + $0x100] sm:$0xff] %vm1218_vm1, %v1600_v28  ;;  %1621 = vpow2.f32 %v1399_v21  ;;  %v1432_v31 = vmul.f32 -1.442695, %v735_v26 }
 0x118   :  { %v1604_v32 = vpop.eup %1603  ;;  %1220 = vst.msk [vmem:[%s2440_s3 + $0x8] sm:$0xff] %vm1218_vm1, %v1602_v29  ;;  %1623 = vpow2.f32 %v1431_v22  ;;  %v611_v34 = vpop.f32.mrb[16].mxu0 }
 0x119   :  { %v1606_v33 = vpop.eup %1605  ;;  %1252 = vst.msk [vmem:[%s2440_s3 + $0x108] sm:$0xff] %vm1218_vm1, %v1604_v32  ;;  %1625 = vpow2.f32 %v1400_v30  ;;  %v739_v35 = vpop.f32.mrb[16].mxu1  ;;  %v612_v38 = vadd.f32 %v2113_v11, %v611_v34 }
 0x11a   :  { %v1608_v36 = vpop.eup %1607  ;;  %v1030_v37 = vadd.f32 1.0, %v1606_v33  ;;  %1627 = vpow2.f32 %v1432_v31  ;;  %v740_v39 = vadd.f32 %v2113_v11, %v739_v35  ;;  %v613_v40 = vpop.f32.mrb[17].mxu0 }
 0x11b   :  { %v741_v41 = vpop.f32.mrb[17].mxu1  ;;  %v1610_v42 = vpop.eup %1609  ;;  %v1062_v43 = vadd.f32 1.0, %v1608_v36  ;;  %v1401_v48 = vmul.f32 -1.442695, %v612_v38 }
 0x11c   :  { %v614_v44 = vpop.f32.mrb[18].mxu0  ;;  %v742_v45 = vpop.f32.mrb[18].mxu1  ;;  %1629 = vrcp.f32 %v1030_v37  ;;  %v1031_v47 = vadd.f32 1.0, %v1610_v42  ;;  %v1433_v49 = vmul.f32 -1.442695, %v740_v39 }
 0x11d   :  { %v1612_v46 = vpop.eup %1611  ;;  %v616_v50 = vpop.f32.mrb[19].mxu0  ;;  %1631 = vrcp.f32 %v1062_v43  ;;  %v615_v53 = vadd.f32 %v2113_v11, %v614_v44  ;;  %v743_v54 = vadd.f32 %v2113_v11, %v742_v45 }
 0x11e   :  { %v1614_v51 = vpop.eup %1613  ;;  %v1063_v52 = vadd.f32 1.0, %v1612_v46  ;;  %v744_v55 = vpop.f32.mrb[19].mxu1  ;;  %1633 = vrcp.f32 %v1031_v47 }
 0x11f   :  { %v1616_v56 = vpop.eup %1615  ;;  %1221 = vst.msk [vmem:[%s2440_s3 + $0x10] sm:$0xff] %vm1218_vm1, %v1614_v51  ;;  %v1402_v58 = vmul.f32 -1.442695, %v615_v53  ;;  %v1434_v59 = vmul.f32 -1.442695, %v743_v54 }
 0x120   :  { %v1618_v57 = vpop.eup %1617  ;;  %1253 = vst.msk [vmem:[%s2440_s3 + $0x110] sm:$0xff] %vm1218_vm1, %v1616_v56  ;;  %1635 = vrcp.f32 %v1063_v52  ;;  %v619_v62 = vpop.f32.mrb[20].mxu0 }
 0x121   :  { %v1620_v60 = vpop.eup %1619  ;;  %1222 = vst.msk [vmem:[%s2440_s3 + $0x18] sm:$0xff] %vm1218_vm1, %v1618_v57  ;;  %1637 = vpow2.f32 %v1401_v48  ;;  %v747_v63 = vpop.f32.mrb[20].mxu1  ;;  %v620_v2 = vadd.f32 %v2113_v11, %v619_v62 }
 0x122   :  { %v1622_v61 = vpop.eup %1621  ;;  %1254 = vst.msk [vmem:[%s2440_s3 + $0x118] sm:$0xff] %vm1218_vm1, %v1620_v60  ;;  %1639 = vpow2.f32 %v1433_v49  ;;  %v748_v3 = vadd.f32 %v2113_v11, %v747_v63  ;;  %v621_v4 = vpop.f32.mrb[21].mxu0 }
 0x123   :  { %v1624_v0 = vpop.eup %1623  ;;  %v1032_v1 = vadd.f32 1.0, %v1622_v61  ;;  %1641 = vpow2.f32 %v1402_v58  ;;  %v749_v5 = vpop.f32.mrb[21].mxu1  ;;  %v1403_v13 = vmul.f32 -1.442695, %v620_v2 }
 0x124   :  { %v1626_v6 = vpop.eup %1625  ;;  %v1064_v7 = vadd.f32 1.0, %v1624_v0  ;;  %1643 = vpow2.f32 %v1434_v59  ;;  %v622_v8 = vpop.f32.mrb[22].mxu0  ;;  %v1435_v14 = vmul.f32 -1.442695, %v748_v3 }
 0x125   :  { %v750_v9 = vpop.f32.mrb[22].mxu1  ;;  %v1628_v10 = vpop.eup %1627  ;;  %1645 = vrcp.f32 %v1032_v1  ;;  %v1033_v12 = vadd.f32 1.0, %v1626_v6  ;;  %v623_v17 = vadd.f32 %v2113_v11, %v622_v8 }
 0x126   :  { %v624_v15 = vpop.f32.mrb[23].mxu0  ;;  %1647 = vrcp.f32 %v1064_v7  ;;  %v1065_v16 = vadd.f32 1.0, %v1628_v10  ;;  %v751_v18 = vadd.f32 %v2113_v11, %v750_v9  ;;  %v752_v19 = vpop.f32.mrb[23].mxu1 }
 0x127   :  { %v1630_v20 = vpop.eup %1629  ;;  %1649 = vrcp.f32 %v1033_v12  ;;  %v1404_v22 = vmul.f32 -1.442695, %v623_v17 }
 0x128   :  { %v1632_v21 = vpop.eup %1631  ;;  %1223 = vst.msk [vmem:[%s2440_s3 + $0x20] sm:$0xff] %vm1218_vm1, %v1630_v20  ;;  %1651 = vrcp.f32 %v1065_v16  ;;  %v1436_v23 = vmul.f32 -1.442695, %v751_v18  ;;  %v627_v26 = vpop.f32.mrb[24].mxu0 }
 0x129   :  { %v1634_v24 = vpop.eup %1633  ;;  %1255 = vst.msk [vmem:[%s2440_s3 + $0x120] sm:$0xff] %vm1218_vm1, %v1632_v21  ;;  %1653 = vpow2.f32 %v1403_v13  ;;  %v755_v27 = vpop.f32.mrb[24].mxu1  ;;  %v628_v29 = vadd.f32 %v2113_v11, %v627_v26 }
 0x12a   :  { %v1636_v25 = vpop.eup %1635  ;;  %1224 = vst.msk [vmem:[%s2440_s3 + $0x28] sm:$0xff] %vm1218_vm1, %v1634_v24  ;;  %1655 = vpow2.f32 %v1435_v14  ;;  %v756_v30 = vadd.f32 %v2113_v11, %v755_v27  ;;  %v629_v31 = vpop.f32.mrb[25].mxu0 }
 0x12b   :  { %v1638_v28 = vpop.eup %1637  ;;  %1256 = vst.msk [vmem:[%s2440_s3 + $0x128] sm:$0xff] %vm1218_vm1, %v1636_v25  ;;  %1657 = vpow2.f32 %v1404_v22  ;;  %v757_v32 = vpop.f32.mrb[25].mxu1  ;;  %v1405_v43 = vmul.f32 -1.442695, %v628_v29 }
 0x12c   :  { %v1640_v33 = vpop.eup %1639  ;;  %v1034_v34 = vadd.f32 1.0, %v1638_v28  ;;  %1659 = vpow2.f32 %v1436_v23  ;;  %v630_v35 = vpop.f32.mrb[26].mxu0  ;;  %v1437_v48 = vmul.f32 -1.442695, %v756_v30 }
 0x12d   :  { %v758_v36 = vpop.f32.mrb[26].mxu1  ;;  %v1642_v37 = vpop.eup %1641  ;;  %v1066_v38 = vadd.f32 1.0, %v1640_v33  ;;  %v631_v39 = vadd.f32 %v2113_v11, %v630_v35 }
 0x12e   :  { %v632_v40 = vpop.f32.mrb[27].mxu0  ;;  %v1644_v41 = vpop.eup %1643  ;;  %1661 = vrcp.f32 %v1034_v34  ;;  %v1035_v42 = vadd.f32 1.0, %v1642_v37  ;;  %v759_v44 = vadd.f32 %v2113_v11, %v758_v36 }
 0x12f   :  { %v760_v45 = vpop.f32.mrb[27].mxu1  ;;  %v1646_v46 = vpop.eup %1645  ;;  %1663 = vrcp.f32 %v1066_v38  ;;  %v1067_v47 = vadd.f32 1.0, %v1644_v41  ;;  %v1406_v50 = vmul.f32 -1.442695, %v631_v39 }
 0x130   :  { %v1648_v49 = vpop.eup %1647  ;;  %1225 = vst.msk [vmem:[%s2440_s3 + $0x30] sm:$0xff] %vm1218_vm1, %v1646_v46  ;;  %1665 = vrcp.f32 %v1035_v42  ;;  %v1438_v52 = vmul.f32 -1.442695, %v759_v44  ;;  %v635_v54 = vpop.f32.mrb[28].mxu0 }
 0x131   :  { %v1650_v51 = vpop.eup %1649  ;;  %1257 = vst.msk [vmem:[%s2440_s3 + $0x130] sm:$0xff] %vm1218_vm1, %v1648_v49  ;;  %1667 = vrcp.f32 %v1067_v47  ;;  %v763_v55 = vpop.f32.mrb[28].mxu1  ;;  %v636_v57 = vadd.f32 %v2113_v11, %v635_v54 }
 0x132   :  { %v1652_v53 = vpop.eup %1651  ;;  %1226 = vst.msk [vmem:[%s2440_s3 + $0x38] sm:$0xff] %vm1218_vm1, %v1650_v51  ;;  %1669 = vpow2.f32 %v1405_v43  ;;  %v764_v58 = vadd.f32 %v2113_v11, %v763_v55  ;;  %v637_v59 = vpop.f32.mrb[29].mxu0 }
 0x133   :  { %v1654_v56 = vpop.eup %1653  ;;  %1258 = vst.msk [vmem:[%s2440_s3 + $0x138] sm:$0xff] %vm1218_vm1, %v1652_v53  ;;  %1671 = vpow2.f32 %v1437_v48  ;;  %v765_v60 = vpop.f32.mrb[29].mxu1  ;;  %v1407_v3 = vmul.f32 -1.442695, %v636_v57 }
 0x134   :  { %v1656_v61 = vpop.eup %1655  ;;  %v1036_v62 = vadd.f32 1.0, %v1654_v56  ;;  %1673 = vpow2.f32 %v1406_v50  ;;  %v638_v63 = vpop.f32.mrb[30].mxu0  ;;  %v1439_v12 = vmul.f32 -1.442695, %v764_v58 }
 0x135   :  { %v766_v0 = vpop.f32.mrb[30].mxu1  ;;  %v1658_v1 = vpop.eup %1657  ;;  %v1068_v2 = vadd.f32 1.0, %v1656_v61  ;;  %1675 = vpow2.f32 %v1438_v52  ;;  %v639_v7 = vadd.f32 %v2113_v11, %v638_v63 }
 0x136   :  { %v640_v4 = vpop.f32.mrb[31].mxu0  ;;  %v1660_v5 = vpop.eup %1659  ;;  %1677 = vrcp.f32 %v1036_v62  ;;  %v1037_v6 = vadd.f32 1.0, %v1658_v1  ;;  %v767_v8 = vadd.f32 %v2113_v11, %v766_v0 }
 0x137   :  { %v768_v9 = vpop.f32.mrb[31].mxu1  ;;  %1679 = vrcp.f32 %v1068_v2  ;;  %v1069_v10 = vadd.f32 1.0, %v1660_v5  ;;  %v1408_v14 = vmul.f32 -1.442695, %v639_v7 }
 0x138   :  { %v1662_v13 = vpop.eup %1661  ;;  %1681 = vrcp.f32 %v1037_v6  ;;  %v1440_v16 = vmul.f32 -1.442695, %v767_v8  ;;  %v643_v18 = vpop.f32.mrb[32].mxu0 }
 0x139   :  { %v1664_v15 = vpop.eup %1663  ;;  %1227 = vst.msk [vmem:[%s2440_s3 + $0x40] sm:$0xff] %vm1218_vm1, %v1662_v13  ;;  %1683 = vrcp.f32 %v1069_v10  ;;  %v771_v19 = vpop.f32.mrb[32].mxu1  ;;  %v644_v21 = vadd.f32 %v2113_v11, %v643_v18 }
 0x13a   :  { %v1666_v17 = vpop.eup %1665  ;;  %1259 = vst.msk [vmem:[%s2440_s3 + $0x140] sm:$0xff] %vm1218_vm1, %v1664_v15  ;;  %1685 = vpow2.f32 %v1407_v3  ;;  %v645_v22 = vpop.f32.mrb[33].mxu0  ;;  %v772_v25 = vadd.f32 %v2113_v11, %v771_v19 }
 0x13b   :  { %v1668_v20 = vpop.eup %1667  ;;  %1228 = vst.msk [vmem:[%s2440_s3 + $0x48] sm:$0xff] %vm1218_vm1, %v1666_v17  ;;  %1687 = vpow2.f32 %v1439_v12  ;;  %v773_v23 = vpop.f32.mrb[33].mxu1  ;;  %v1409_v38 = vmul.f32 -1.442695, %v644_v21 }
 0x13c   :  { %v1670_v24 = vpop.eup %1669  ;;  %1260 = vst.msk [vmem:[%s2440_s3 + $0x148] sm:$0xff] %vm1218_vm1, %v1668_v20  ;;  %1689 = vpow2.f32 %v1408_v14  ;;  %v646_v26 = vpop.f32.mrb[34].mxu0  ;;  %v1441_v41 = vmul.f32 -1.442695, %v772_v25 }
 0x13d   :  { %v774_v27 = vpop.f32.mrb[34].mxu1  ;;  %v1672_v28 = vpop.eup %1671  ;;  %v1038_v29 = vadd.f32 1.0, %v1670_v24  ;;  %1691 = vpow2.f32 %v1440_v16  ;;  %v647_v33 = vadd.f32 %v2113_v11, %v646_v26 }
 0x13e   :  { %v648_v30 = vpop.f32.mrb[35].mxu0  ;;  %v1674_v31 = vpop.eup %1673  ;;  %v1070_v32 = vadd.f32 1.0, %v1672_v28  ;;  %v775_v34 = vadd.f32 %v2113_v11, %v774_v27 }
 0x13f   :  { %v776_v35 = vpop.f32.mrb[35].mxu1  ;;  %v1676_v36 = vpop.eup %1675  ;;  %1693 = vrcp.f32 %v1038_v29  ;;  %v1039_v37 = vadd.f32 1.0, %v1674_v31  ;;  %v1410_v43 = vmul.f32 -1.442695, %v647_v33 }
 0x140   :  { %v1678_v39 = vpop.eup %1677  ;;  %1695 = vrcp.f32 %v1070_v32  ;;  %v1071_v40 = vadd.f32 1.0, %v1676_v36  ;;  %v1442_v45 = vmul.f32 -1.442695, %v775_v34  ;;  %v651_v46 = vpop.f32.mrb[36].mxu0 }
 0x141   :  { %v1680_v42 = vpop.eup %1679  ;;  %1229 = vst.msk [vmem:[%s2440_s3 + $0x50] sm:$0xff] %vm1218_vm1, %v1678_v39  ;;  %1697 = vrcp.f32 %v1039_v37  ;;  %v779_v47 = vpop.f32.mrb[36].mxu1  ;;  %v652_v49 = vadd.f32 %v2113_v11, %v651_v46 }
 0x142   :  { %v1682_v44 = vpop.eup %1681  ;;  %1261 = vst.msk [vmem:[%s2440_s3 + $0x150] sm:$0xff] %vm1218_vm1, %v1680_v42  ;;  %1699 = vrcp.f32 %v1071_v40  ;;  %v653_v50 = vpop.f32.mrb[37].mxu0  ;;  %v780_v53 = vadd.f32 %v2113_v11, %v779_v47 }
 0x143   :  { %v1684_v48 = vpop.eup %1683  ;;  %1230 = vst.msk [vmem:[%s2440_s3 + $0x58] sm:$0xff] %vm1218_vm1, %v1682_v44  ;;  %1701 = vpow2.f32 %v1409_v38  ;;  %v781_v51 = vpop.f32.mrb[37].mxu1  ;;  %v1411_v2 = vmul.f32 -1.442695, %v652_v49 }
 0x144   :  { %v1686_v52 = vpop.eup %1685  ;;  %1262 = vst.msk [vmem:[%s2440_s3 + $0x158] sm:$0xff] %vm1218_vm1, %v1684_v48  ;;  %1703 = vpow2.f32 %v1441_v41  ;;  %v654_v54 = vpop.f32.mrb[38].mxu0  ;;  %v1443_v4 = vmul.f32 -1.442695, %v780_v53 }
 0x145   :  { %v782_v55 = vpop.f32.mrb[38].mxu1  ;;  %v1688_v56 = vpop.eup %1687  ;;  %v1040_v57 = vadd.f32 1.0, %v1686_v52  ;;  %1705 = vpow2.f32 %v1410_v43  ;;  %v655_v61 = vadd.f32 %v2113_v11, %v654_v54 }
 0x146   :  { %v656_v58 = vpop.f32.mrb[39].mxu0  ;;  %v1690_v59 = vpop.eup %1689  ;;  %v1072_v60 = vadd.f32 1.0, %v1688_v56  ;;  %1707 = vpow2.f32 %v1442_v45  ;;  %v783_v62 = vadd.f32 %v2113_v11, %v782_v55 }
 0x147   :  { %v784_v63 = vpop.f32.mrb[39].mxu1  ;;  %v1692_v0 = vpop.eup %1691  ;;  %1709 = vrcp.f32 %v1040_v57  ;;  %v1041_v1 = vadd.f32 1.0, %v1690_v59  ;;  %v1412_v6 = vmul.f32 -1.442695, %v655_v61 }
 0x148   :  { %1711 = vrcp.f32 %v1072_v60  ;;  %v1073_v3 = vadd.f32 1.0, %v1692_v0  ;;  %v1444_v8 = vmul.f32 -1.442695, %v783_v62  ;;  %v659_v9 = vpop.f32.mrb[40].mxu0  ;;  %v787_v10 = vpop.f32.mrb[40].mxu1 }
 0x149   :  { %v1694_v5 = vpop.eup %1693  ;;  %1713 = vrcp.f32 %v1041_v1  ;;  %v660_v13 = vadd.f32 %v2113_v11, %v659_v9  ;;  %v661_v14 = vpop.f32.mrb[41].mxu0  ;;  %v788_v17 = vadd.f32 %v2113_v11, %v787_v10 }
 0x14a   :  { %v1696_v7 = vpop.eup %1695  ;;  %1231 = vst.msk [vmem:[%s2440_s3 + $0x60] sm:$0xff] %vm1218_vm1, %v1694_v5  ;;  %1715 = vrcp.f32 %v1073_v3  ;;  %v789_v15 = vpop.f32.mrb[41].mxu1 }
 0x14b   :  { %v1698_v12 = vpop.eup %1697  ;;  %1263 = vst.msk [vmem:[%s2440_s3 + $0x160] sm:$0xff] %vm1218_vm1, %v1696_v7  ;;  %1717 = vpow2.f32 %v1411_v2  ;;  %v662_v18 = vpop.f32.mrb[42].mxu0  ;;  %v1413_v21 = vmul.f32 -1.442695, %v660_v13  ;;  %v1445_v32 = vmul.f32 -1.442695, %v788_v17 }
 0x14c   :  { %v1700_v16 = vpop.eup %1699  ;;  %1232 = vst.msk [vmem:[%s2440_s3 + $0x68] sm:$0xff] %vm1218_vm1, %v1698_v12  ;;  %1719 = vpow2.f32 %v1443_v4  ;;  %v790_v19 = vpop.f32.mrb[42].mxu1  ;;  %v663_v22 = vadd.f32 %v2113_v11, %v662_v18 }
 0x14d   :  { %v1702_v20 = vpop.eup %1701  ;;  %1264 = vst.msk [vmem:[%s2440_s3 + $0x168] sm:$0xff] %vm1218_vm1, %v1700_v16  ;;  %1721 = vpow2.f32 %v1412_v6  ;;  %v664_v23 = vpop.f32.mrb[43].mxu0  ;;  %v791_v27 = vadd.f32 %v2113_v11, %v790_v19 }
 0x14e   :  { %v792_v24 = vpop.f32.mrb[43].mxu1  ;;  %v1704_v25 = vpop.eup %1703  ;;  %v1042_v26 = vadd.f32 1.0, %v1702_v20  ;;  %1723 = vpow2.f32 %v1444_v8  ;;  %v1414_v35 = vmul.f32 -1.442695, %v663_v22 }
 0x14f   :  { %v1706_v28 = vpop.eup %1705  ;;  %v1074_v29 = vadd.f32 1.0, %v1704_v25  ;;  %1725 = vpow2.f32 %v1413_v21  ;;  %v1446_v37 = vmul.f32 -1.442695, %v791_v27 }
 0x150   :  { %v1708_v30 = vpop.eup %1707  ;;  %1727 = vrcp.f32 %v1042_v26  ;;  %v1043_v31 = vadd.f32 1.0, %v1706_v28  ;;  %v667_v38 = vpop.f32.mrb[44].mxu0 }
 0x151   :  { %v1710_v33 = vpop.eup %1709  ;;  %1729 = vrcp.f32 %v1074_v29  ;;  %v1075_v34 = vadd.f32 1.0, %v1708_v30  ;;  %v795_v39 = vpop.f32.mrb[44].mxu1  ;;  %v668_v41 = vadd.f32 %v2113_v11, %v667_v38 }
 0x152   :  { %v1712_v36 = vpop.eup %1711  ;;  %1233 = vst.msk [vmem:[%s2440_s3 + $0x70] sm:$0xff] %vm1218_vm1, %v1710_v33  ;;  %1731 = vrcp.f32 %v1043_v31  ;;  %v669_v42 = vpop.f32.mrb[45].mxu0  ;;  %v796_v49 = vadd.f32 %v2113_v11, %v795_v39 }
 0x153   :  { %v1714_v40 = vpop.eup %1713  ;;  %1265 = vst.msk [vmem:[%s2440_s3 + $0x170] sm:$0xff] %vm1218_vm1, %v1712_v36  ;;  %1733 = vrcp.f32 %v1075_v34  ;;  %v797_v43 = vpop.f32.mrb[45].mxu1  ;;  %v1415_v48 = vmul.f32 -1.442695, %v668_v41 }
 0x154   :  { %v1716_v44 = vpop.eup %1715  ;;  %1234 = vst.msk [vmem:[%s2440_s3 + $0x78] sm:$0xff] %vm1218_vm1, %v1714_v40  ;;  %1735 = vpow2.f32 %v1445_v32  ;;  %v670_v45 = vpop.f32.mrb[46].mxu0  ;;  %v1447_v62 = vmul.f32 -1.442695, %v796_v49 }
 0x155   :  { %v798_v46 = vpop.f32.mrb[46].mxu1  ;;  %v1718_v47 = vpop.eup %1717  ;;  %1266 = vst.msk [vmem:[%s2440_s3 + $0x178] sm:$0xff] %vm1218_vm1, %v1716_v44  ;;  %1737 = vpow2.f32 %v1414_v35  ;;  %v671_v54 = vadd.f32 %v2113_v11, %v670_v45 }
 0x156   :  { %v672_v50 = vpop.f32.mrb[47].mxu0  ;;  %v800_v51 = vpop.f32.mrb[47].mxu1  ;;  %v1044_v53 = vadd.f32 1.0, %v1718_v47  ;;  %1739 = vpow2.f32 %v1446_v37  ;;  %v799_v57 = vadd.f32 %v2113_v11, %v798_v46 }
 0x157   :  { %v1720_v52 = vpop.eup %1719  ;;  %1741 = vpow2.f32 %v1415_v48  ;;  %v1416_v1 = vmul.f32 -1.442695, %v671_v54 }
 0x158   :  { %v1722_v55 = vpop.eup %1721  ;;  %v1076_v56 = vadd.f32 1.0, %v1720_v52  ;;  %1743 = vrcp.f32 %v1044_v53  ;;  %v675_v2 = vpop.f32.mrb[48].mxu0  ;;  %v1448_v5 = vmul.f32 -1.442695, %v799_v57 }
 0x159   :  { %v1724_v58 = vpop.eup %1723  ;;  %v1045_v59 = vadd.f32 1.0, %v1722_v55  ;;  %v803_v3 = vpop.f32.mrb[48].mxu1  ;;  %v676_v6 = vadd.f32 %v2113_v11, %v675_v2 }
 0x15a   :  { %v1726_v60 = vpop.eup %1725  ;;  %1745 = vrcp.f32 %v1076_v56  ;;  %v1077_v61 = vadd.f32 1.0, %v1724_v58  ;;  %v677_v7 = vpop.f32.mrb[49].mxu0  ;;  %v804_v15 = vadd.f32 %v2113_v11, %v803_v3 }
 0x15b   :  { %v1728_v63 = vpop.eup %1727  ;;  %1747 = vrcp.f32 %v1045_v59  ;;  %v1046_v0 = vadd.f32 1.0, %v1726_v60  ;;  %v805_v8 = vpop.f32.mrb[49].mxu1  ;;  %v1417_v14 = vmul.f32 -1.442695, %v676_v6 }
 0x15c   :  { %v1730_v4 = vpop.eup %1729  ;;  %1235 = vst.msk [vmem:[%s2440_s3 + $0x80] sm:$0xff] %vm1218_vm1, %v1728_v63  ;;  %1749 = vrcp.f32 %v1077_v61  ;;  %v678_v10 = vpop.f32.mrb[50].mxu0  ;;  %v1449_v27 = vmul.f32 -1.442695, %v804_v15 }
 0x15d   :  { %v1732_v9 = vpop.eup %1731  ;;  %1267 = vst.msk [vmem:[%s2440_s3 + $0x180] sm:$0xff] %vm1218_vm1, %v1730_v4  ;;  %1751 = vrcp.f32 %v1046_v0  ;;  %v806_v12 = vpop.f32.mrb[50].mxu1  ;;  %v679_v19 = vadd.f32 %v2113_v11, %v678_v10  ;;  %v2336_v0 = vld [vmem:[#allocation2] ss:$0 sm:$0xff] }
 0x15e   :  { %v1734_v13 = vpop.eup %1733  ;;  %1236 = vst.msk [vmem:[%s2440_s3 + $0x88] sm:$0xff] %vm1218_vm1, %v1732_v9  ;;  %1753 = vpow2.f32 %v1447_v62  ;;  %v680_v16 = vpop.f32.mrb[51].mxu0  ;;  %v807_v22 = vadd.f32 %v2113_v11, %v806_v12 }
 0x15f   :  { %v808_v17 = vpop.f32.mrb[51].mxu1  ;;  %v1736_v18 = vpop.eup %1735  ;;  %1268 = vst.msk [vmem:[%s2440_s3 + $0x188] sm:$0xff] %vm1218_vm1, %v1734_v13  ;;  %1755 = vpow2.f32 %v1416_v1  ;;  %v1418_v30 = vmul.f32 -1.442695, %v679_v19 }
 0x160   :  { %v1738_v20 = vpop.eup %1737  ;;  %v1078_v21 = vadd.f32 1.0, %v1736_v18  ;;  %1757 = vpow2.f32 %v1448_v5  ;;  %v683_v31 = vpop.f32.mrb[52].mxu0  ;;  %v1450_v34 = vmul.f32 -1.442695, %v807_v22 }
 0x161   :  { %v1740_v23 = vpop.eup %1739  ;;  %v1047_v24 = vadd.f32 1.0, %v1738_v20  ;;  %1759 = vpow2.f32 %v1417_v14  ;;  %v811_v32 = vpop.f32.mrb[52].mxu1  ;;  %v684_v35 = vadd.f32 %v2113_v11, %v683_v31 }
 0x162   :  { %v1742_v25 = vpop.eup %1741  ;;  %1761 = vrcp.f32 %v1078_v21  ;;  %v1079_v26 = vadd.f32 1.0, %v1740_v23  ;;  %v812_v36 = vadd.f32 %v2113_v11, %v811_v32  ;;  %v685_v37 = vpop.f32.mrb[53].mxu0 }
 0x163   :  { %v1744_v28 = vpop.eup %1743  ;;  %1763 = vrcp.f32 %v1047_v24  ;;  %v1048_v29 = vadd.f32 1.0, %v1742_v25  ;;  %v813_v38 = vpop.f32.mrb[53].mxu1  ;;  %v1419_v43 = vmul.f32 -1.442695, %v684_v35 }
 0x164   :  { %v1746_v33 = vpop.eup %1745  ;;  %1237 = vst.msk [vmem:[%s2440_s3 + $0x90] sm:$0xff] %vm1218_vm1, %v1744_v28  ;;  %1765 = vrcp.f32 %v1079_v26  ;;  %v686_v40 = vpop.f32.mrb[54].mxu0  ;;  %v1451_v44 = vmul.f32 -1.442695, %v812_v36 }
 0x165   :  { %v1748_v39 = vpop.eup %1747  ;;  %1269 = vst.msk [vmem:[%s2440_s3 + $0x190] sm:$0xff] %vm1218_vm1, %v1746_v33  ;;  %1767 = vrcp.f32 %v1048_v29  ;;  %v814_v41 = vpop.f32.mrb[54].mxu1  ;;  %v687_v45 = vadd.f32 %v2113_v11, %v686_v40 }
 0x166   :  { %v1750_v42 = vpop.eup %1749  ;;  %1238 = vst.msk [vmem:[%s2440_s3 + $0x98] sm:$0xff] %vm1218_vm1, %v1748_v39  ;;  %1769 = vpow2.f32 %v1449_v27  ;;  %v688_v46 = vpop.f32.mrb[55].mxu0  ;;  %v815_v49 = vadd.f32 %v2113_v11, %v814_v41 }
 0x167   :  { %v816_v47 = vpop.f32.mrb[55].mxu1  ;;  %v1752_v48 = vpop.eup %1751  ;;  %1270 = vst.msk [vmem:[%s2440_s3 + $0x198] sm:$0xff] %vm1218_vm1, %v1750_v42  ;;  %1771 = vpow2.f32 %v1418_v30  ;;  %v1420_v55 = vmul.f32 -1.442695, %v687_v45 }
 0x168   :  { %v1754_v50 = vpop.eup %1753  ;;  %1239 = vst.msk [vmem:[%s2440_s3 + $0xa0] sm:$0xff] %vm1218_vm1, %v1752_v48  ;;  %1773 = vpow2.f32 %v1450_v34  ;;  %v1452_v58 = vmul.f32 -1.442695, %v815_v49  ;;  %v691_v59 = vpop.f32.mrb[56].mxu0 }
 0x169   :  { %v1756_v51 = vpop.eup %1755  ;;  %v1080_v52 = vadd.f32 1.0, %v1754_v50  ;;  %1775 = vpow2.f32 %v1419_v43  ;;  %v819_v60 = vpop.f32.mrb[56].mxu1  ;;  %v692_v63 = vadd.f32 %v2113_v11, %v691_v59 }
 0x16a   :  { %v1758_v53 = vpop.eup %1757  ;;  %v1049_v54 = vadd.f32 1.0, %v1756_v51  ;;  %1777 = vpow2.f32 %v1451_v44  ;;  %v820_v1 = vadd.f32 %v2336_v0, %v819_v60  ;;  %v693_v2 = vpop.f32.mrb[57].mxu0 }
 0x16b   :  { %v1760_v56 = vpop.eup %1759  ;;  %1779 = vrcp.f32 %v1080_v52  ;;  %v1081_v57 = vadd.f32 1.0, %v1758_v53  ;;  %v821_v3 = vpop.f32.mrb[57].mxu1  ;;  %v1421_v11 = vmul.f32 -1.442695, %v692_v63 }
 0x16c   :  { %v1762_v61 = vpop.eup %1761  ;;  %1781 = vrcp.f32 %v1049_v54  ;;  %v1050_v62 = vadd.f32 1.0, %v1760_v56  ;;  %v694_v5 = vpop.f32.mrb[58].mxu0  ;;  %v1453_v8 = vmul.f32 -1.442695, %v820_v1 }
 0x16d   :  { %v1764_v4 = vpop.eup %1763  ;;  %1271 = vst.msk [vmem:[%s2440_s3 + $0x1a0] sm:$0xff] %vm1218_vm1, %v1762_v61  ;;  %1783 = vrcp.f32 %v1081_v57  ;;  %v822_v6 = vpop.f32.mrb[58].mxu1  ;;  %v695_v13 = vadd.f32 %v2336_v0, %v694_v5 }
 0x16e   :  { %v1766_v7 = vpop.eup %1765  ;;  %1240 = vst.msk [vmem:[%s2440_s3 + $0xa8] sm:$0xff] %vm1218_vm1, %v1764_v4  ;;  %1785 = vrcp.f32 %v1050_v62  ;;  %v696_v9 = vpop.f32.mrb[59].mxu0  ;;  %v823_v17 = vadd.f32 %v2336_v0, %v822_v6 }
 0x16f   :  { %v824_v10 = vpop.f32.mrb[59].mxu1  ;;  %v1768_v12 = vpop.eup %1767  ;;  %1272 = vst.msk [vmem:[%s2440_s3 + $0x1a8] sm:$0xff] %vm1218_vm1, %v1766_v7  ;;  %1787 = vpow2.f32 %v1420_v55  ;;  %v1422_v22 = vmul.f32 -1.442695, %v695_v13 }
 0x170   :  { %v1770_v14 = vpop.eup %1769  ;;  %1241 = vst.msk [vmem:[%s2440_s3 + $0xb0] sm:$0xff] %vm1218_vm1, %v1768_v12  ;;  %1789 = vpow2.f32 %v1452_v58  ;;  %v699_v23 = vpop.f32.mrb[60].mxu0  ;;  %v1454_v33 = vmul.f32 -1.442695, %v823_v17 }
 0x171   :  { %v1772_v15 = vpop.eup %1771  ;;  %v1082_v16 = vadd.f32 1.0, %v1770_v14  ;;  %1791 = vpow2.f32 %v1421_v11  ;;  %v827_v24 = vpop.f32.mrb[60].mxu1  ;;  %v700_v27 = vadd.f32 %v2336_v0, %v699_v23 }
 0x172   :  { %v1774_v18 = vpop.eup %1773  ;;  %v1051_v19 = vadd.f32 1.0, %v1772_v15  ;;  %1793 = vpow2.f32 %v1453_v8  ;;  %v828_v28 = vadd.f32 %v2336_v0, %v827_v24  ;;  %v701_v29 = vpop.f32.mrb[61].mxu0 }
 0x173   :  { %v1776_v20 = vpop.eup %1775  ;;  %1795 = vrcp.f32 %v1082_v16  ;;  %v1083_v21 = vadd.f32 1.0, %v1774_v18  ;;  %v829_v30 = vpop.f32.mrb[61].mxu1  ;;  %v1423_v37 = vmul.f32 -1.442695, %v700_v27 }
 0x174   :  { %v1778_v25 = vpop.eup %1777  ;;  %1797 = vrcp.f32 %v1051_v19  ;;  %v1052_v26 = vadd.f32 1.0, %v1776_v20  ;;  %v702_v34 = vpop.f32.mrb[62].mxu0  ;;  %v1455_v41 = vmul.f32 -1.442695, %v828_v28 }
 0x175   :  { %v1780_v31 = vpop.eup %1779  ;;  %1799 = vrcp.f32 %v1083_v21  ;;  %v1084_v32 = vadd.f32 1.0, %v1778_v25  ;;  %v830_v35 = vpop.f32.mrb[62].mxu1  ;;  %v703_v43 = vadd.f32 %v2336_v0, %v702_v34 }
 0x176   :  { %v1782_v36 = vpop.eup %1781  ;;  %1273 = vst.msk [vmem:[%s2440_s3 + $0x1b0] sm:$0xff] %vm1218_vm1, %v1780_v31  ;;  %1801 = vrcp.f32 %v1052_v26  ;;  %v704_v38 = vpop.f32.mrb[63].mxu0  ;;  %v831_v45 = vadd.f32 %v2336_v0, %v830_v35 }
 0x177   :  { %v832_v39 = vpop.f32.mrb[63].mxu1  ;;  %v1784_v40 = vpop.eup %1783  ;;  %1242 = vst.msk [vmem:[%s2440_s3 + $0xb8] sm:$0xff] %vm1218_vm1, %v1782_v36  ;;  %1803 = vrcp.f32 %v1084_v32  ;;  %v1424_v52 = vmul.f32 -1.442695, %v703_v43 }
 0x178   :  { %v1786_v42 = vpop.eup %1785  ;;  %1274 = vst.msk [vmem:[%s2440_s3 + $0x1b8] sm:$0xff] %vm1218_vm1, %v1784_v40  ;;  %1805 = vpow2.f32 %v1422_v22  ;;  %v1456_v55 = vmul.f32 -1.442695, %v831_v45 }
 0x179   :  { %v1788_v44 = vpop.eup %1787  ;;  %1243 = vst.msk [vmem:[%s2440_s3 + $0xc0] sm:$0xff] %vm1218_vm1, %v1786_v42  ;;  %1807 = vpow2.f32 %v1454_v33 }
 0x17a   :  { %v1790_v46 = vpop.eup %1789  ;;  %v1053_v47 = vadd.f32 1.0, %v1788_v44  ;;  %1809 = vpow2.f32 %v1423_v37 }
 0x17b   :  { %v1792_v48 = vpop.eup %1791  ;;  %v1085_v49 = vadd.f32 1.0, %v1790_v46  ;;  %1811 = vpow2.f32 %v1455_v41 }
 0x17c   :  { %v1794_v50 = vpop.eup %1793  ;;  %1813 = vrcp.f32 %v1053_v47  ;;  %v1054_v51 = vadd.f32 1.0, %v1792_v48 }
 0x17d   :  { %v1796_v53 = vpop.eup %1795  ;;  %1815 = vrcp.f32 %v1085_v49  ;;  %v1086_v54 = vadd.f32 1.0, %v1794_v50 }
 0x17e   :  { %v1798_v56 = vpop.eup %1797  ;;  %1275 = vst.msk [vmem:[%s2440_s3 + $0x1c0] sm:$0xff] %vm1218_vm1, %v1796_v53  ;;  %1817 = vrcp.f32 %v1054_v51 }
 0x17f   :  { %v1800_v57 = vpop.eup %1799  ;;  %1244 = vst.msk [vmem:[%s2440_s3 + $0xc8] sm:$0xff] %vm1218_vm1, %v1798_v56  ;;  %1819 = vrcp.f32 %v1086_v54 }
 0x180   :  { %v1802_v58 = vpop.eup %1801  ;;  %1276 = vst.msk [vmem:[%s2440_s3 + $0x1c8] sm:$0xff] %vm1218_vm1, %v1800_v57  ;;  %1821 = vpow2.f32 %v1424_v52 }
 0x181   :  { %v1804_v59 = vpop.eup %1803  ;;  %1245 = vst.msk [vmem:[%s2440_s3 + $0xd0] sm:$0xff] %vm1218_vm1, %v1802_v58  ;;  %1823 = vpow2.f32 %v1456_v55 }
 0x182   :  { %v1806_v60 = vpop.eup %1805  ;;  %1277 = vst.msk [vmem:[%s2440_s3 + $0x1d0] sm:$0xff] %vm1218_vm1, %v1804_v59 }
 0x183   :  { %v1808_v61 = vpop.eup %1807  ;;  %v1055_v62 = vadd.f32 1.0, %v1806_v60 }
 0x184   :  { %v1810_v63 = vpop.eup %1809  ;;  %v1087_v0 = vadd.f32 1.0, %v1808_v61 }
 0x185   :  { %v1812_v1 = vpop.eup %1811  ;;  %1825 = vrcp.f32 %v1055_v62  ;;  %v1056_v2 = vadd.f32 1.0, %v1810_v63 }
 0x186   :  { %v1814_v3 = vpop.eup %1813  ;;  %1827 = vrcp.f32 %v1087_v0  ;;  %v1088_v4 = vadd.f32 1.0, %v1812_v1 }
 0x187   :  { %v1816_v5 = vpop.eup %1815  ;;  %1246 = vst.msk [vmem:[%s2440_s3 + $0xd8] sm:$0xff] %vm1218_vm1, %v1814_v3  ;;  %1829 = vrcp.f32 %v1056_v2 }
 0x188   :  { %v1818_v6 = vpop.eup %1817  ;;  %1278 = vst.msk [vmem:[%s2440_s3 + $0x1d8] sm:$0xff] %vm1218_vm1, %v1816_v5  ;;  %1831 = vrcp.f32 %v1088_v4 }
 0x189   :  { %v1820_v7 = vpop.eup %1819  ;;  %1247 = vst.msk [vmem:[%s2440_s3 + $0xe0] sm:$0xff] %vm1218_vm1, %v1818_v6 }
 0x18a   :  { %v1822_v11 = vpop.eup %1821  ;;  %1279 = vst.msk [vmem:[%s2440_s3 + $0x1e0] sm:$0xff] %vm1218_vm1, %v1820_v7 }
 0x18b   :  { %v1824_v8 = vpop.eup %1823  ;;  %v1057_v9 = vadd.f32 1.0, %v1822_v11 }
 0x18c   :  { %v1089_v10 = vadd.f32 1.0, %v1824_v8 }
 0x18d   :  { %1833 = vrcp.f32 %v1057_v9 }
 0x18e   :  { %1835 = vrcp.f32 %v1089_v10 }
 0x18f   :  { %v1826_v12 = vpop.eup %1825 }
 0x190   :  { %v1828_v13 = vpop.eup %1827  ;;  %1248 = vst.msk [vmem:[%s2440_s3 + $0xe8] sm:$0xff] %vm1218_vm1, %v1826_v12 }
 0x191   :  { %v1830_v14 = vpop.eup %1829  ;;  %1280 = vst.msk [vmem:[%s2440_s3 + $0x1e8] sm:$0xff] %vm1218_vm1, %v1828_v13 }
 0x192   :  { %v1832_v15 = vpop.eup %1831  ;;  %1249 = vst.msk [vmem:[%s2440_s3 + $0xf0] sm:$0xff] %vm1218_vm1, %v1830_v14 }
 0x193   :  { %1281 = vst.msk [vmem:[%s2440_s3 + $0x1f0] sm:$0xff] %vm1218_vm1, %v1832_v15 }
 0x197   :  { %v1834_v16 = vpop.eup %1833 }
 0x198   :  { %v1836_v17 = vpop.eup %1835  ;;  %1250 = vst.msk [vmem:[%s2440_s3 + $0xf8] sm:$0xff] %vm1218_vm1, %v1834_v16 }
 0x199   :  { %1282 = vst.msk [vmem:[%s2440_s3 + $0x1f8] sm:$0xff] %vm1218_vm1, %v1836_v17 }

</bundles_post_ra>
